<compile_context>
chip_gen: v6e
topology: v6e:2x2x1
jax: 0.10.0
libtpu: 0.0.40
codegen_flags: <defaults>
</compile_context>

<pallas_src>
import jax
import jax.numpy as jnp
from jax import lax
from jax.experimental import pallas as pl
from jax.experimental.pallas import tpu as pltpu


# ----------------------------------------------------------------------------- kernel

def _fused_forward_kernel(sel_ref, adj_ref,
                          w_ih1_ref, w_hh1_ref, b1_ref, w_rgcn1_ref, b_rgcn1_ref,
                          w_ih2_ref, w_hh2_ref, b2_ref, w_rgcn2_ref, b_rgcn2_ref,
                          out_ref, xw_scratch):
    """Both LSTM-RGCN layers (incl. layer-2 projection + neighbour gather) in one kernel.

    sel_ref:      (L*N, N)    bf16  one-hot neighbour selection (row t*N+n -> node neighbors[n,t])
    adj_ref:      (R, N, N)   bf16  normalized adjacency coefficients
    w_ih*_ref:    (D, 4H)     bf16  LSTM input weights (gate-padded to 128 lanes per gate)
    w_hh*_ref:    (H, 4H)     bf16  LSTM recurrent weights
    b*_ref:       (1, 4H)     f32   combined b_ih + b_hh
    w_rgcn*_ref:  (R*H, F)    bf16  stacked per-relation RGCN weights
    b_rgcn*_ref:  (1, F)      f32
    out_ref:      (N, F)      f32   final node embeddings (lane-padded)
    xw_scratch:   (L*N, 4H)   f32   reused input-projection buffer for both layers
    PyTorch LSTM gate ordering (i, f, g, o); zero initial (h0, c0).
    """
    LN, N = sel_ref.shape
    L = LN // N
    R = adj_ref.shape[0]
    H = w_hh1_ref.shape[0]      # padded hidden width (=128)
    G = w_hh1_ref.shape[1]      # 4*H

    sel = sel_ref[...]          # (L*N, N) bf16

    def lstm_rgcn(w_hh_ref, w_rgcn_ref, b_rgcn_ref):
        """LSTM over xw_scratch, then fused RGCN relation reduction."""

        def step(t, carry):
            h_bf, c = carry                                   # h: bf16, c: f32
            start = pl.multiple_of(t * N, N)
            gates = xw_scratch[pl.ds(start, N), :] + jnp.dot(
                h_bf, w_hh_ref[...], preferred_element_type=jnp.float32)   # (N, 4H) f32
            i = jax.nn.sigmoid(gates[:, 0 * H:1 * H])         # full 128-lane vreg slices
            f = jax.nn.sigmoid(gates[:, 1 * H:2 * H])
            g = jnp.tanh(gates[:, 2 * H:3 * H])
            o = jax.nn.sigmoid(gates[:, 3 * H:4 * H])
            c = f * c + i * g
            h = o * jnp.tanh(c)
            return h.astype(jnp.bfloat16), c                  # bf16 cast off the critical path

        h_bf, _ = lax.fori_loop(
            0, L, step,
            (jnp.zeros((N, H), jnp.bfloat16), jnp.zeros((N, H), jnp.float32)),
            unroll=True)

        # Per-relation messages, lane-concatenated -> ONE MXU contraction over K = R*H.
        msgs = [jnp.dot(adj_ref[r], h_bf, preferred_element_type=jnp.float32)
                for r in range(R)]                            # R x (N, H) f32
        msg = jnp.concatenate(msgs, axis=1).astype(jnp.bfloat16)            # (N, R*H)
        out = jnp.dot(msg, w_rgcn_ref[...], preferred_element_type=jnp.float32)
        # TODO(synk): original activation is config-driven (encoder_config['activation']); ReLU used.
        return jnp.maximum(out + b_rgcn_ref[...], 0.0)

    # ---- layer 1: one-hot features => input projection is a row gather of W_ih1
    xw_scratch[...] = jnp.dot(sel, w_ih1_ref[...],
                              preferred_element_type=jnp.float32) + b1_ref[...]
    x1 = lstm_rgcn(w_hh1_ref, w_rgcn1_ref, b_rgcn1_ref)       # (N, H) f32

    # ---- layer 2: PROJECT-THEN-GATHER (project N rows once, then one-hot gather)
    proj = jnp.dot(x1.astype(jnp.bfloat16), w_ih2_ref[...],
                   preferred_element_type=jnp.float32)        # (N, 4H) f32
    xw_scratch[...] = jnp.dot(sel, proj.astype(jnp.bfloat16),
                              preferred_element_type=jnp.float32) + b2_ref[...]
    x2 = lstm_rgcn(w_hh2_ref, w_rgcn2_ref, b_rgcn2_ref)       # (N, F) f32

    out_ref[...] = x2


# ----------------------------------------------------------------------------- wrappers

def fused_encoder(sel, adj, params):
    """Single pallas_call for the whole 2-layer LSTM-RGCN encoder."""
    N = adj.shape[1]
    LN = sel.shape[0]
    H = params["w_hh1"].shape[0]
    G = params["w_hh1"].shape[1]
    return pl.pallas_call(
        _fused_forward_kernel,
        out_shape=jax.ShapeDtypeStruct((N, H), jnp.float32),
        in_specs=[pl.BlockSpec(memory_space=pltpu.MemorySpace.VMEM)] * 12,
        out_specs=pl.BlockSpec(memory_space=pltpu.MemorySpace.VMEM),
        scratch_shapes=[pltpu.VMEM((LN, G), jnp.float32)],
    )(sel, adj,
      params["w_ih1"], params["w_hh1"], params["b1"], params["w_rgcn1"], params["b_rgcn1"],
      params["w_ih2"], params["w_hh2"], params["b2"], params["w_rgcn2"], params["b_rgcn2"])


@jax.jit
def relation_predictor_forward(sel, adj, triples, params):
    """Forward of RelationPredictor (2 LSTM-RGCN layers + DistMult).

    Returns (scores, penalty, x_padded) where x_padded is (N, 128) with the real
    nhid2-dim embedding in the leading lanes (zero padding elsewhere).
    """
    x = fused_encoder(sel, adj, params)                       # (N, 128) f32

    # ---- DistMult decoder + L2 penalty in plain JAX (tiny; kernel would be launch overhead)
    relations = params["decoder_relations"]                   # (nrel, 128), zero-padded
    s_emb = x[triples[:, 0]]
    r_emb = relations[triples[:, 1]]
    o_emb = x[triples[:, 2]]
    scores = jnp.sum(s_emb * r_emb * o_emb, axis=-1)          # padding lanes are zero
    penalty = jnp.sum(relations * relations)                  # == relations.pow(2).sum()
    return scores, penalty, x


# ----------------------------------------------------------------------------- params

def _make_params(key, N, R, NREL, nemb, nhid1, nhid2, h_pad=128):
    """All feature dims zero-padded to h_pad=128; matmul operands pre-cast to bf16 once."""
    ks = jax.random.split(key, 11)
    scale = 0.1

    def nrm(k, shape):
        return (scale * jax.random.normal(k, shape)).astype(jnp.float32)

    def gate_pad(w):  # (D, 4, h) -> (D, 4*h_pad): each gate zero-padded to h_pad lanes
        D, _, h = w.shape
        out = jnp.zeros((D, 4, h_pad), jnp.float32).at[:, :, :h].set(w)
        return out.reshape(D, 4 * h_pad)

    def pad_to(a, shape):
        return jnp.zeros(shape, a.dtype).at[tuple(slice(0, s) for s in a.shape)].set(a)

    bf = lambda a: a.astype(jnp.bfloat16)

    # TODO(synk): PyTorch nn.LSTM carries two bias vectors (b_ih, b_hh); a single
    #             combined bias is used here (forward-equivalent).
    # layer 1 (input features are one-hot rows of eye(N) -> W_ih rows gathered by node id)
    w_ih1 = gate_pad(nrm(ks[0], (N, 4, nemb)))                                         # (N, 4*h_pad)
    w_hh1 = pad_to(gate_pad(nrm(ks[1], (nemb, 4, nemb))), (h_pad, 4 * h_pad))
    b1 = gate_pad(nrm(ks[2], (1, 4, nemb)))
    w_rgcn1 = pad_to(nrm(ks[3], (R, nemb, nhid1)), (R, h_pad, h_pad)).reshape(R * h_pad, h_pad)
    b_rgcn1 = pad_to(nrm(ks[4], (1, nhid1)), (1, h_pad))
    # layer 2 (input is the padded layer-1 output)
    w_ih2 = pad_to(gate_pad(nrm(ks[5], (nhid1, 4, nemb))), (h_pad, 4 * h_pad))
    w_hh2 = pad_to(gate_pad(nrm(ks[6], (nemb, 4, nemb))), (h_pad, 4 * h_pad))
    b2 = gate_pad(nrm(ks[7], (1, 4, nemb)))
    w_rgcn2 = pad_to(nrm(ks[8], (R, nemb, nhid2)), (R, h_pad, h_pad)).reshape(R * h_pad, h_pad)
    b_rgcn2 = pad_to(nrm(ks[9], (1, nhid2)), (1, h_pad))

    decoder_relations = pad_to(nrm(ks[10], (NREL, nhid2)), (NREL, h_pad))

    return dict(
        w_ih1=bf(w_ih1), w_hh1=bf(w_hh1), b1=b1, w_rgcn1=bf(w_rgcn1), b_rgcn1=b_rgcn1,
        w_ih2=bf(w_ih2), w_hh2=bf(w_hh2), b2=b2, w_rgcn2=bf(w_rgcn2), b_rgcn2=b_rgcn2,
        decoder_relations=decoder_relations)


# ----------------------------------------------------------------------------- main

if __name__ == "__main__":
    # Small, deterministic synthetic problem consistent with the module:
    #   nnodes=16, nrel=3 (=> num_relations = 2*3+1 = 7), nemb=nhid1=nhid2=16,
    #   neighbour-list length 8, batch of 8 triples.  Feature dims padded to 128.
    N, NREL, NEMB, NHID1, NHID2, L, B = 16, 3, 16, 16, 16, 8, 8
    R = 2 * NREL + 1
    H_PAD = 128

    root = jax.random.PRNGKey(0)
    k_adj, k_mask, k_neigh, k_s, k_r, k_o, k_par = jax.random.split(root, 7)

    # Synthetic normalized adjacency coefficients (stand-in for generate_adj_coefficient),
    # cast to bf16 ONCE outside the jitted forward.
    adj_raw = jax.random.uniform(k_adj, (R, N, N), dtype=jnp.float32)
    adj_mask = (jax.random.uniform(k_mask, (R, N, N)) < 0.3).astype(jnp.float32)
    adj = adj_raw * adj_mask
    adj = adj / jnp.clip(adj.sum(axis=-1, keepdims=True), 1e-6, None)
    adj_bf16 = adj.astype(jnp.bfloat16)

    # Synthetic neighbour lists (stand-in for generate_neighbors_lists) and the
    # precomputed one-hot selection matrix used for both the layer-1 row gather
    # and the layer-2 project-then-gather (row t*N+n selects node neighbors[n, t]).
    neighbors = jax.random.randint(k_neigh, (N, L), 0, N, dtype=jnp.int32)
    sel = jax.nn.one_hot(neighbors.T.reshape(L * N), N, dtype=jnp.bfloat16)   # (L*N, N)

    # Batch of (subject, relation, object) triples.
    triples = jnp.stack([
        jax.random.randint(k_s, (B,), 0, N, dtype=jnp.int32),
        jax.random.randint(k_r, (B,), 0, NREL, dtype=jnp.int32),
        jax.random.randint(k_o, (B,), 0, N, dtype=jnp.int32),
    ], axis=1)

    params = _make_params(k_par, N, R, NREL, NEMB, NHID1, NHID2, h_pad=H_PAD)

    scores, penalty, x_padded = relation_predictor_forward(sel, adj_bf16, triples, params)
    jax.block_until_ready((scores, penalty, x_padded))

    embeddings = x_padded[:, :NHID2]     # strip lane padding -> logical (N, nhid2)
    assert scores.shape == (B,)
    assert embeddings.shape == (N, NHID2)
    assert bool(jnp.all(jnp.isfinite(scores))) and bool(jnp.isfinite(penalty))
    print("KERNEL_OK")
</pallas_src>

<mosaic_0001>
module attributes {stable_mosaic.version = 11 : i64} {
  func.func @_fused_forward_kernel(%arg0: memref<128x16xbf16, #tpu.memory_space<vmem>>, %arg1: memref<7x16x16xbf16, #tpu.memory_space<vmem>>, %arg2: memref<16x512xbf16, #tpu.memory_space<vmem>>, %arg3: memref<128x512xbf16, #tpu.memory_space<vmem>>, %arg4: memref<1x512xf32, #tpu.memory_space<vmem>>, %arg5: memref<896x128xbf16, #tpu.memory_space<vmem>>, %arg6: memref<1x128xf32, #tpu.memory_space<vmem>>, %arg7: memref<128x512xbf16, #tpu.memory_space<vmem>>, %arg8: memref<128x512xbf16, #tpu.memory_space<vmem>>, %arg9: memref<1x512xf32, #tpu.memory_space<vmem>>, %arg10: memref<896x128xbf16, #tpu.memory_space<vmem>>, %arg11: memref<1x128xf32, #tpu.memory_space<vmem>>, %arg12: memref<16x128xf32, #tpu.memory_space<vmem>>, %arg13: memref<128x512xf32, #tpu.memory_space<vmem>>) attributes {dimension_semantics = [], scalar_prefetch = 0 : i64, scratch_operands = 1 : i64, tpu.core_type = #tpu.core_type<tc>} {
    %c0 = arith.constant 0 : index
    %c0_0 = arith.constant 0 : index
    %0 = vector.load %arg0[%c0, %c0_0] : memref<128x16xbf16, #tpu.memory_space<vmem>>, vector<128x16xbf16>
    %c0_1 = arith.constant 0 : index
    %c0_2 = arith.constant 0 : index
    %1 = vector.load %arg2[%c0_1, %c0_2] : memref<16x512xbf16, #tpu.memory_space<vmem>>, vector<16x512xbf16>
    %cst = arith.constant dense<0.000000e+00> : vector<128x512xf32>
    %2 = tpu.matmul %0, %1, %cst {dimension_numbers = #tpu.dot_dimension_numbers<[1], [0], [0], [1], [0, 0, 1, 1], [], []>} : vector<128x16xbf16>, vector<16x512xbf16>, vector<128x512xf32> -> vector<128x512xf32>
    %c0_3 = arith.constant 0 : index
    %c0_4 = arith.constant 0 : index
    %3 = vector.load %arg4[%c0_3, %c0_4] : memref<1x512xf32, #tpu.memory_space<vmem>>, vector<1x512xf32>
    %4 = vector.broadcast %3 : vector<1x512xf32> to vector<128x512xf32>
    %5 = arith.addf %2, %4 : vector<128x512xf32>
    %c0_5 = arith.constant 0 : index
    %c0_6 = arith.constant 0 : index
    %6 = vector.load %arg13[%c0_5, %c0_6] : memref<128x512xf32, #tpu.memory_space<vmem>>, vector<128x512xf32>
    tpu.vector_store %arg13[%c0_5, %c0_6], %5 {strides = array<i32>} : memref<128x512xf32, #tpu.memory_space<vmem>>, vector<128x512xf32>,
    %cst_7 = arith.constant 0.000000e+00 : bf16
    %7 = vector.broadcast %cst_7 : bf16 to vector<16x128xbf16>
    %cst_8 = arith.constant 0.000000e+00 : f32
    %8 = vector.broadcast %cst_8 : f32 to vector<16x128xf32>
    %c0_i32 = arith.constant 0 : i32
    %c16_i32 = arith.constant 16 : i32
    %9 = arith.muli %c0_i32, %c16_i32 : i32
    %10 = tpu.assume_multiple %9, 16 : i32
    %11 = arith.index_cast %10 : i32 to index
    %c0_9 = arith.constant 0 : index
    %12 = vector.load %arg13[%11, %c0_9] : memref<128x512xf32, #tpu.memory_space<vmem>>, vector<16x512xf32>
    %c0_10 = arith.constant 0 : index
    %c0_11 = arith.constant 0 : index
    %13 = vector.load %arg3[%c0_10, %c0_11] : memref<128x512xbf16, #tpu.memory_space<vmem>>, vector<128x512xbf16>
    %cst_12 = arith.constant dense<0.000000e+00> : vector<16x512xf32>
    %14 = tpu.matmul %7, %13, %cst_12 {dimension_numbers = #tpu.dot_dimension_numbers<[1], [0], [0], [1], [0, 0, 1, 1], [], []>} : vector<16x128xbf16>, vector<128x512xbf16>, vector<16x512xf32> -> vector<16x512xf32>
    %15 = arith.addf %12, %14 : vector<16x512xf32>
    %16 = vector.extract_strided_slice %15 {offsets = [0, 0], sizes = [16, 128], strides = [1, 1]} : vector<16x512xf32> to vector<16x128xf32>
    %17 = arith.negf %16 : vector<16x128xf32>
    %18 = math.exp %17 : vector<16x128xf32>
    %cst_13 = arith.constant 1.000000e+00 : f32
    %19 = vector.broadcast %cst_13 : f32 to vector<16x128xf32>
    %20 = arith.addf %19, %18 : vector<16x128xf32>
    %21 = arith.divf %19, %20 : vector<16x128xf32>
    %22 = vector.extract_strided_slice %15 {offsets = [0, 128], sizes = [16, 128], strides = [1, 1]} : vector<16x512xf32> to vector<16x128xf32>
    %23 = arith.negf %22 : vector<16x128xf32>
    %24 = math.exp %23 : vector<16x128xf32>
    %cst_14 = arith.constant 1.000000e+00 : f32
    %25 = vector.broadcast %cst_14 : f32 to vector<16x128xf32>
    %26 = arith.addf %25, %24 : vector<16x128xf32>
    %27 = arith.divf %25, %26 : vector<16x128xf32>
    %28 = vector.extract_strided_slice %15 {offsets = [0, 256], sizes = [16, 128], strides = [1, 1]} : vector<16x512xf32> to vector<16x128xf32>
    %29 = math.tanh %28 : vector<16x128xf32>
    %30 = vector.extract_strided_slice %15 {offsets = [0, 384], sizes = [16, 128], strides = [1, 1]} : vector<16x512xf32> to vector<16x128xf32>
    %31 = arith.negf %30 : vector<16x128xf32>
    %32 = math.exp %31 : vector<16x128xf32>
    %cst_15 = arith.constant 1.000000e+00 : f32
    %33 = vector.broadcast %cst_15 : f32 to vector<16x128xf32>
    %34 = arith.addf %33, %32 : vector<16x128xf32>
    %35 = arith.divf %33, %34 : vector<16x128xf32>
    %36 = arith.mulf %27, %8 : vector<16x128xf32>
    %37 = arith.mulf %21, %29 : vector<16x128xf32>
    %38 = arith.addf %36, %37 : vector<16x128xf32>
    %39 = math.tanh %38 : vector<16x128xf32>
    %40 = arith.mulf %35, %39 : vector<16x128xf32>
    %41 = arith.truncf %40 : vector<16x128xf32> to vector<16x128xbf16>
    %c1_i32 = arith.constant 1 : i32
    %c16_i32_16 = arith.constant 16 : i32
    %42 = arith.muli %c1_i32, %c16_i32_16 : i32
    %43 = tpu.assume_multiple %42, 16 : i32
    %44 = arith.index_cast %43 : i32 to index
    %c0_17 = arith.constant 0 : index
    %45 = vector.load %arg13[%44, %c0_17] : memref<128x512xf32, #tpu.memory_space<vmem>>, vector<16x512xf32>
    %c0_18 = arith.constant 0 : index
    %c0_19 = arith.constant 0 : index
    %46 = vector.load %arg3[%c0_18, %c0_19] : memref<128x512xbf16, #tpu.memory_space<vmem>>, vector<128x512xbf16>
    %cst_20 = arith.constant dense<0.000000e+00> : vector<16x512xf32>
    %47 = tpu.matmul %41, %46, %cst_20 {dimension_numbers = #tpu.dot_dimension_numbers<[1], [0], [0], [1], [0, 0, 1, 1], [], []>} : vector<16x128xbf16>, vector<128x512xbf16>, vector<16x512xf32> -> vector<16x512xf32>
    %48 = arith.addf %45, %47 : vector<16x512xf32>
    %49 = vector.extract_strided_slice %48 {offsets = [0, 0], sizes = [16, 128], strides = [1, 1]} : vector<16x512xf32> to vector<16x128xf32>
    %50 = arith.negf %49 : vector<16x128xf32>
    %51 = math.exp %50 : vector<16x128xf32>
    %cst_21 = arith.constant 1.000000e+00 : f32
    %52 = vector.broadcast %cst_21 : f32 to vector<16x128xf32>
    %53 = arith.addf %52, %51 : vector<16x128xf32>
    %54 = arith.divf %52, %53 : vector<16x128xf32>
    %55 = vector.extract_strided_slice %48 {offsets = [0, 128], sizes = [16, 128], strides = [1, 1]} : vector<16x512xf32> to vector<16x128xf32>
    %56 = arith.negf %55 : vector<16x128xf32>
    %57 = math.exp %56 : vector<16x128xf32>
    %cst_22 = arith.constant 1.000000e+00 : f32
    %58 = vector.broadcast %cst_22 : f32 to vector<16x128xf32>
    %59 = arith.addf %58, %57 : vector<16x128xf32>
    %60 = arith.divf %58, %59 : vector<16x128xf32>
    %61 = vector.extract_strided_slice %48 {offsets = [0, 256], sizes = [16, 128], strides = [1, 1]} : vector<16x512xf32> to vector<16x128xf32>
    %62 = math.tanh %61 : vector<16x128xf32>
    %63 = vector.extract_strided_slice %48 {offsets = [0, 384], sizes = [16, 128], strides = [1, 1]} : vector<16x512xf32> to vector<16x128xf32>
    %64 = arith.negf %63 : vector<16x128xf32>
    %65 = math.exp %64 : vector<16x128xf32>
    %cst_23 = arith.constant 1.000000e+00 : f32
    %66 = vector.broadcast %cst_23 : f32 to vector<16x128xf32>
    %67 = arith.addf %66, %65 : vector<16x128xf32>
    %68 = arith.divf %66, %67 : vector<16x128xf32>
    %69 = arith.mulf %60, %38 : vector<16x128xf32>
    %70 = arith.mulf %54, %62 : vector<16x128xf32>
    %71 = arith.addf %69, %70 : vector<16x128xf32>
    %72 = math.tanh %71 : vector<16x128xf32>
    %73 = arith.mulf %68, %72 : vector<16x128xf32>
    %74 = arith.truncf %73 : vector<16x128xf32> to vector<16x128xbf16>
    %c2_i32 = arith.constant 2 : i32
    %c16_i32_24 = arith.constant 16 : i32
    %75 = arith.muli %c2_i32, %c16_i32_24 : i32
    %76 = tpu.assume_multiple %75, 16 : i32
    %77 = arith.index_cast %76 : i32 to index
    %c0_25 = arith.constant 0 : index
    %78 = vector.load %arg13[%77, %c0_25] : memref<128x512xf32, #tpu.memory_space<vmem>>, vector<16x512xf32>
    %c0_26 = arith.constant 0 : index
    %c0_27 = arith.constant 0 : index
    %79 = vector.load %arg3[%c0_26, %c0_27] : memref<128x512xbf16, #tpu.memory_space<vmem>>, vector<128x512xbf16>
    %cst_28 = arith.constant dense<0.000000e+00> : vector<16x512xf32>
    %80 = tpu.matmul %74, %79, %cst_28 {dimension_numbers = #tpu.dot_dimension_numbers<[1], [0], [0], [1], [0, 0, 1, 1], [], []>} : vector<16x128xbf16>, vector<128x512xbf16>, vector<16x512xf32> -> vector<16x512xf32>
    %81 = arith.addf %78, %80 : vector<16x512xf32>
    %82 = vector.extract_strided_slice %81 {offsets = [0, 0], sizes = [16, 128], strides = [1, 1]} : vector<16x512xf32> to vector<16x128xf32>
    %83 = arith.negf %82 : vector<16x128xf32>
    %84 = math.exp %83 : vector<16x128xf32>
    %cst_29 = arith.constant 1.000000e+00 : f32
    %85 = vector.broadcast %cst_29 : f32 to vector<16x128xf32>
    %86 = arith.addf %85, %84 : vector<16x128xf32>
    %87 = arith.divf %85, %86 : vector<16x128xf32>
    %88 = vector.extract_strided_slice %81 {offsets = [0, 128], sizes = [16, 128], strides = [1, 1]} : vector<16x512xf32> to vector<16x128xf32>
    %89 = arith.negf %88 : vector<16x128xf32>
    %90 = math.exp %89 : vector<16x128xf32>
    %cst_30 = arith.constant 1.000000e+00 : f32
    %91 = vector.broadcast %cst_30 : f32 to vector<16x128xf32>
    %92 = arith.addf %91, %90 : vector<16x128xf32>
    %93 = arith.divf %91, %92 : vector<16x128xf32>
    %94 = vector.extract_strided_slice %81 {offsets = [0, 256], sizes = [16, 128], strides = [1, 1]} : vector<16x512xf32> to vector<16x128xf32>
    %95 = math.tanh %94 : vector<16x128xf32>
    %96 = vector.extract_strided_slice %81 {offsets = [0, 384], sizes = [16, 128], strides = [1, 1]} : vector<16x512xf32> to vector<16x128xf32>
    %97 = arith.negf %96 : vector<16x128xf32>
    %98 = math.exp %97 : vector<16x128xf32>
    %cst_31 = arith.constant 1.000000e+00 : f32
    %99 = vector.broadcast %cst_31 : f32 to vector<16x128xf32>
    %100 = arith.addf %99, %98 : vector<16x128xf32>
    %101 = arith.divf %99, %100 : vector<16x128xf32>
    %102 = arith.mulf %93, %71 : vector<16x128xf32>
    %103 = arith.mulf %87, %95 : vector<16x128xf32>
    %104 = arith.addf %102, %103 : vector<16x128xf32>
    %105 = math.tanh %104 : vector<16x128xf32>
    %106 = arith.mulf %101, %105 : vector<16x128xf32>
    %107 = arith.truncf %106 : vector<16x128xf32> to vector<16x128xbf16>
    %c3_i32 = arith.constant 3 : i32
    %c16_i32_32 = arith.constant 16 : i32
    %108 = arith.muli %c3_i32, %c16_i32_32 : i32
    %109 = tpu.assume_multiple %108, 16 : i32
    %110 = arith.index_cast %109 : i32 to index
    %c0_33 = arith.constant 0 : index
    %111 = vector.load %arg13[%110, %c0_33] : memref<128x512xf32, #tpu.memory_space<vmem>>, vector<16x512xf32>
    %c0_34 = arith.constant 0 : index
    %c0_35 = arith.constant 0 : index
    %112 = vector.load %arg3[%c0_34, %c0_35] : memref<128x512xbf16, #tpu.memory_space<vmem>>, vector<128x512xbf16>
    %cst_36 = arith.constant dense<0.000000e+00> : vector<16x512xf32>
    %113 = tpu.matmul %107, %112, %cst_36 {dimension_numbers = #tpu.dot_dimension_numbers<[1], [0], [0], [1], [0, 0, 1, 1], [], []>} : vector<16x128xbf16>, vector<128x512xbf16>, vector<16x512xf32> -> vector<16x512xf32>
    %114 = arith.addf %111, %113 : vector<16x512xf32>
    %115 = vector.extract_strided_slice %114 {offsets = [0, 0], sizes = [16, 128], strides = [1, 1]} : vector<16x512xf32> to vector<16x128xf32>
    %116 = arith.negf %115 : vector<16x128xf32>
    %117 = math.exp %116 : vector<16x128xf32>
    %cst_37 = arith.constant 1.000000e+00 : f32
    %118 = vector.broadcast %cst_37 : f32 to vector<16x128xf32>
    %119 = arith.addf %118, %117 : vector<16x128xf32>
    %120 = arith.divf %118, %119 : vector<16x128xf32>
    %121 = vector.extract_strided_slice %114 {offsets = [0, 128], sizes = [16, 128], strides = [1, 1]} : vector<16x512xf32> to vector<16x128xf32>
    %122 = arith.negf %121 : vector<16x128xf32>
    %123 = math.exp %122 : vector<16x128xf32>
    %cst_38 = arith.constant 1.000000e+00 : f32
    %124 = vector.broadcast %cst_38 : f32 to vector<16x128xf32>
    %125 = arith.addf %124, %123 : vector<16x128xf32>
    %126 = arith.divf %124, %125 : vector<16x128xf32>
    %127 = vector.extract_strided_slice %114 {offsets = [0, 256], sizes = [16, 128], strides = [1, 1]} : vector<16x512xf32> to vector<16x128xf32>
    %128 = math.tanh %127 : vector<16x128xf32>
    %129 = vector.extract_strided_slice %114 {offsets = [0, 384], sizes = [16, 128], strides = [1, 1]} : vector<16x512xf32> to vector<16x128xf32>
    %130 = arith.negf %129 : vector<16x128xf32>
    %131 = math.exp %130 : vector<16x128xf32>
    %cst_39 = arith.constant 1.000000e+00 : f32
    %132 = vector.broadcast %cst_39 : f32 to vector<16x128xf32>
    %133 = arith.addf %132, %131 : vector<16x128xf32>
    %134 = arith.divf %132, %133 : vector<16x128xf32>
    %135 = arith.mulf %126, %104 : vector<16x128xf32>
    %136 = arith.mulf %120, %128 : vector<16x128xf32>
    %137 = arith.addf %135, %136 : vector<16x128xf32>
    %138 = math.tanh %137 : vector<16x128xf32>
    %139 = arith.mulf %134, %138 : vector<16x128xf32>
    %140 = arith.truncf %139 : vector<16x128xf32> to vector<16x128xbf16>
    %c4_i32 = arith.constant 4 : i32
    %c16_i32_40 = arith.constant 16 : i32
    %141 = arith.muli %c4_i32, %c16_i32_40 : i32
    %142 = tpu.assume_multiple %141, 16 : i32
    %143 = arith.index_cast %142 : i32 to index
    %c0_41 = arith.constant 0 : index
    %144 = vector.load %arg13[%143, %c0_41] : memref<128x512xf32, #tpu.memory_space<vmem>>, vector<16x512xf32>
    %c0_42 = arith.constant 0 : index
    %c0_43 = arith.constant 0 : index
    %145 = vector.load %arg3[%c0_42, %c0_43] : memref<128x512xbf16, #tpu.memory_space<vmem>>, vector<128x512xbf16>
    %cst_44 = arith.constant dense<0.000000e+00> : vector<16x512xf32>
    %146 = tpu.matmul %140, %145, %cst_44 {dimension_numbers = #tpu.dot_dimension_numbers<[1], [0], [0], [1], [0, 0, 1, 1], [], []>} : vector<16x128xbf16>, vector<128x512xbf16>, vector<16x512xf32> -> vector<16x512xf32>
    %147 = arith.addf %144, %146 : vector<16x512xf32>
    %148 = vector.extract_strided_slice %147 {offsets = [0, 0], sizes = [16, 128], strides = [1, 1]} : vector<16x512xf32> to vector<16x128xf32>
    %149 = arith.negf %148 : vector<16x128xf32>
    %150 = math.exp %149 : vector<16x128xf32>
    %cst_45 = arith.constant 1.000000e+00 : f32
    %151 = vector.broadcast %cst_45 : f32 to vector<16x128xf32>
    %152 = arith.addf %151, %150 : vector<16x128xf32>
    %153 = arith.divf %151, %152 : vector<16x128xf32>
    %154 = vector.extract_strided_slice %147 {offsets = [0, 128], sizes = [16, 128], strides = [1, 1]} : vector<16x512xf32> to vector<16x128xf32>
    %155 = arith.negf %154 : vector<16x128xf32>
    %156 = math.exp %155 : vector<16x128xf32>
    %cst_46 = arith.constant 1.000000e+00 : f32
    %157 = vector.broadcast %cst_46 : f32 to vector<16x128xf32>
    %158 = arith.addf %157, %156 : vector<16x128xf32>
    %159 = arith.divf %157, %158 : vector<16x128xf32>
    %160 = vector.extract_strided_slice %147 {offsets = [0, 256], sizes = [16, 128], strides = [1, 1]} : vector<16x512xf32> to vector<16x128xf32>
    %161 = math.tanh %160 : vector<16x128xf32>
    %162 = vector.extract_strided_slice %147 {offsets = [0, 384], sizes = [16, 128], strides = [1, 1]} : vector<16x512xf32> to vector<16x128xf32>
    %163 = arith.negf %162 : vector<16x128xf32>
    %164 = math.exp %163 : vector<16x128xf32>
    %cst_47 = arith.constant 1.000000e+00 : f32
    %165 = vector.broadcast %cst_47 : f32 to vector<16x128xf32>
    %166 = arith.addf %165, %164 : vector<16x128xf32>
    %167 = arith.divf %165, %166 : vector<16x128xf32>
    %168 = arith.mulf %159, %137 : vector<16x128xf32>
    %169 = arith.mulf %153, %161 : vector<16x128xf32>
    %170 = arith.addf %168, %169 : vector<16x128xf32>
    %171 = math.tanh %170 : vector<16x128xf32>
    %172 = arith.mulf %167, %171 : vector<16x128xf32>
    %173 = arith.truncf %172 : vector<16x128xf32> to vector<16x128xbf16>
    %c5_i32 = arith.constant 5 : i32
    %c16_i32_48 = arith.constant 16 : i32
    %174 = arith.muli %c5_i32, %c16_i32_48 : i32
    %175 = tpu.assume_multiple %174, 16 : i32
    %176 = arith.index_cast %175 : i32 to index
    %c0_49 = arith.constant 0 : index
    %177 = vector.load %arg13[%176, %c0_49] : memref<128x512xf32, #tpu.memory_space<vmem>>, vector<16x512xf32>
    %c0_50 = arith.constant 0 : index
    %c0_51 = arith.constant 0 : index
    %178 = vector.load %arg3[%c0_50, %c0_51] : memref<128x512xbf16, #tpu.memory_space<vmem>>, vector<128x512xbf16>
    %cst_52 = arith.constant dense<0.000000e+00> : vector<16x512xf32>
    %179 = tpu.matmul %173, %178, %cst_52 {dimension_numbers = #tpu.dot_dimension_numbers<[1], [0], [0], [1], [0, 0, 1, 1], [], []>} : vector<16x128xbf16>, vector<128x512xbf16>, vector<16x512xf32> -> vector<16x512xf32>
    %180 = arith.addf %177, %179 : vector<16x512xf32>
    %181 = vector.extract_strided_slice %180 {offsets = [0, 0], sizes = [16, 128], strides = [1, 1]} : vector<16x512xf32> to vector<16x128xf32>
    %182 = arith.negf %181 : vector<16x128xf32>
    %183 = math.exp %182 : vector<16x128xf32>
    %cst_53 = arith.constant 1.000000e+00 : f32
    %184 = vector.broadcast %cst_53 : f32 to vector<16x128xf32>
    %185 = arith.addf %184, %183 : vector<16x128xf32>
    %186 = arith.divf %184, %185 : vector<16x128xf32>
    %187 = vector.extract_strided_slice %180 {offsets = [0, 128], sizes = [16, 128], strides = [1, 1]} : vector<16x512xf32> to vector<16x128xf32>
    %188 = arith.negf %187 : vector<16x128xf32>
    %189 = math.exp %188 : vector<16x128xf32>
    %cst_54 = arith.constant 1.000000e+00 : f32
    %190 = vector.broadcast %cst_54 : f32 to vector<16x128xf32>
    %191 = arith.addf %190, %189 : vector<16x128xf32>
    %192 = arith.divf %190, %191 : vector<16x128xf32>
    %193 = vector.extract_strided_slice %180 {offsets = [0, 256], sizes = [16, 128], strides = [1, 1]} : vector<16x512xf32> to vector<16x128xf32>
    %194 = math.tanh %193 : vector<16x128xf32>
    %195 = vector.extract_strided_slice %180 {offsets = [0, 384], sizes = [16, 128], strides = [1, 1]} : vector<16x512xf32> to vector<16x128xf32>
    %196 = arith.negf %195 : vector<16x128xf32>
    %197 = math.exp %196 : vector<16x128xf32>
    %cst_55 = arith.constant 1.000000e+00 : f32
    %198 = vector.broadcast %cst_55 : f32 to vector<16x128xf32>
    %199 = arith.addf %198, %197 : vector<16x128xf32>
    %200 = arith.divf %198, %199 : vector<16x128xf32>
    %201 = arith.mulf %192, %170 : vector<16x128xf32>
    %202 = arith.mulf %186, %194 : vector<16x128xf32>
    %203 = arith.addf %201, %202 : vector<16x128xf32>
    %204 = math.tanh %203 : vector<16x128xf32>
    %205 = arith.mulf %200, %204 : vector<16x128xf32>
    %206 = arith.truncf %205 : vector<16x128xf32> to vector<16x128xbf16>
    %c6_i32 = arith.constant 6 : i32
    %c16_i32_56 = arith.constant 16 : i32
    %207 = arith.muli %c6_i32, %c16_i32_56 : i32
    %208 = tpu.assume_multiple %207, 16 : i32
    %209 = arith.index_cast %208 : i32 to index
    %c0_57 = arith.constant 0 : index
    %210 = vector.load %arg13[%209, %c0_57] : memref<128x512xf32, #tpu.memory_space<vmem>>, vector<16x512xf32>
    %c0_58 = arith.constant 0 : index
    %c0_59 = arith.constant 0 : index
    %211 = vector.load %arg3[%c0_58, %c0_59] : memref<128x512xbf16, #tpu.memory_space<vmem>>, vector<128x512xbf16>
    %cst_60 = arith.constant dense<0.000000e+00> : vector<16x512xf32>
    %212 = tpu.matmul %206, %211, %cst_60 {dimension_numbers = #tpu.dot_dimension_numbers<[1], [0], [0], [1], [0, 0, 1, 1], [], []>} : vector<16x128xbf16>, vector<128x512xbf16>, vector<16x512xf32> -> vector<16x512xf32>
    %213 = arith.addf %210, %212 : vector<16x512xf32>
    %214 = vector.extract_strided_slice %213 {offsets = [0, 0], sizes = [16, 128], strides = [1, 1]} : vector<16x512xf32> to vector<16x128xf32>
    %215 = arith.negf %214 : vector<16x128xf32>
    %216 = math.exp %215 : vector<16x128xf32>
    %cst_61 = arith.constant 1.000000e+00 : f32
    %217 = vector.broadcast %cst_61 : f32 to vector<16x128xf32>
    %218 = arith.addf %217, %216 : vector<16x128xf32>
    %219 = arith.divf %217, %218 : vector<16x128xf32>
    %220 = vector.extract_strided_slice %213 {offsets = [0, 128], sizes = [16, 128], strides = [1, 1]} : vector<16x512xf32> to vector<16x128xf32>
    %221 = arith.negf %220 : vector<16x128xf32>
    %222 = math.exp %221 : vector<16x128xf32>
    %cst_62 = arith.constant 1.000000e+00 : f32
    %223 = vector.broadcast %cst_62 : f32 to vector<16x128xf32>
    %224 = arith.addf %223, %222 : vector<16x128xf32>
    %225 = arith.divf %223, %224 : vector<16x128xf32>
    %226 = vector.extract_strided_slice %213 {offsets = [0, 256], sizes = [16, 128], strides = [1, 1]} : vector<16x512xf32> to vector<16x128xf32>
    %227 = math.tanh %226 : vector<16x128xf32>
    %228 = vector.extract_strided_slice %213 {offsets = [0, 384], sizes = [16, 128], strides = [1, 1]} : vector<16x512xf32> to vector<16x128xf32>
    %229 = arith.negf %228 : vector<16x128xf32>
    %230 = math.exp %229 : vector<16x128xf32>
    %cst_63 = arith.constant 1.000000e+00 : f32
    %231 = vector.broadcast %cst_63 : f32 to vector<16x128xf32>
    %232 = arith.addf %231, %230 : vector<16x128xf32>
    %233 = arith.divf %231, %232 : vector<16x128xf32>
    %234 = arith.mulf %225, %203 : vector<16x128xf32>
    %235 = arith.mulf %219, %227 : vector<16x128xf32>
    %236 = arith.addf %234, %235 : vector<16x128xf32>
    %237 = math.tanh %236 : vector<16x128xf32>
    %238 = arith.mulf %233, %237 : vector<16x128xf32>
    %239 = arith.truncf %238 : vector<16x128xf32> to vector<16x128xbf16>
    %c7_i32 = arith.constant 7 : i32
    %c16_i32_64 = arith.constant 16 : i32
    %240 = arith.muli %c7_i32, %c16_i32_64 : i32
    %241 = tpu.assume_multiple %240, 16 : i32
    %242 = arith.index_cast %241 : i32 to index
    %c0_65 = arith.constant 0 : index
    %243 = vector.load %arg13[%242, %c0_65] : memref<128x512xf32, #tpu.memory_space<vmem>>, vector<16x512xf32>
    %c0_66 = arith.constant 0 : index
    %c0_67 = arith.constant 0 : index
    %244 = vector.load %arg3[%c0_66, %c0_67] : memref<128x512xbf16, #tpu.memory_space<vmem>>, vector<128x512xbf16>
    %cst_68 = arith.constant dense<0.000000e+00> : vector<16x512xf32>
    %245 = tpu.matmul %239, %244, %cst_68 {dimension_numbers = #tpu.dot_dimension_numbers<[1], [0], [0], [1], [0, 0, 1, 1], [], []>} : vector<16x128xbf16>, vector<128x512xbf16>, vector<16x512xf32> -> vector<16x512xf32>
    %246 = arith.addf %243, %245 : vector<16x512xf32>
    %247 = vector.extract_strided_slice %246 {offsets = [0, 0], sizes = [16, 128], strides = [1, 1]} : vector<16x512xf32> to vector<16x128xf32>
    %248 = arith.negf %247 : vector<16x128xf32>
    %249 = math.exp %248 : vector<16x128xf32>
    %cst_69 = arith.constant 1.000000e+00 : f32
    %250 = vector.broadcast %cst_69 : f32 to vector<16x128xf32>
    %251 = arith.addf %250, %249 : vector<16x128xf32>
    %252 = arith.divf %250, %251 : vector<16x128xf32>
    %253 = vector.extract_strided_slice %246 {offsets = [0, 128], sizes = [16, 128], strides = [1, 1]} : vector<16x512xf32> to vector<16x128xf32>
    %254 = arith.negf %253 : vector<16x128xf32>
    %255 = math.exp %254 : vector<16x128xf32>
    %cst_70 = arith.constant 1.000000e+00 : f32
    %256 = vector.broadcast %cst_70 : f32 to vector<16x128xf32>
    %257 = arith.addf %256, %255 : vector<16x128xf32>
    %258 = arith.divf %256, %257 : vector<16x128xf32>
    %259 = vector.extract_strided_slice %246 {offsets = [0, 256], sizes = [16, 128], strides = [1, 1]} : vector<16x512xf32> to vector<16x128xf32>
    %260 = math.tanh %259 : vector<16x128xf32>
    %261 = vector.extract_strided_slice %246 {offsets = [0, 384], sizes = [16, 128], strides = [1, 1]} : vector<16x512xf32> to vector<16x128xf32>
    %262 = arith.negf %261 : vector<16x128xf32>
    %263 = math.exp %262 : vector<16x128xf32>
    %cst_71 = arith.constant 1.000000e+00 : f32
    %264 = vector.broadcast %cst_71 : f32 to vector<16x128xf32>
    %265 = arith.addf %264, %263 : vector<16x128xf32>
    %266 = arith.divf %264, %265 : vector<16x128xf32>
    %267 = arith.mulf %258, %236 : vector<16x128xf32>
    %268 = arith.mulf %252, %260 : vector<16x128xf32>
    %269 = arith.addf %267, %268 : vector<16x128xf32>
    %270 = math.tanh %269 : vector<16x128xf32>
    %271 = arith.mulf %266, %270 : vector<16x128xf32>
    %272 = arith.truncf %271 : vector<16x128xf32> to vector<16x128xbf16>
    %c8_i32 = arith.constant 8 : i32
    %c0_72 = arith.constant 0 : index
    %c0_73 = arith.constant 0 : index
    %c0_74 = arith.constant 0 : index
    %273 = vector.load %arg1[%c0_72, %c0_73, %c0_74] : memref<7x16x16xbf16, #tpu.memory_space<vmem>>, vector<1x16x16xbf16>
    %274 = vector.shape_cast %273 : vector<1x16x16xbf16> to vector<16x16xbf16>
    %cst_75 = arith.constant dense<0.000000e+00> : vector<16x128xf32>
    %275 = tpu.matmul %274, %272, %cst_75 {dimension_numbers = #tpu.dot_dimension_numbers<[1], [0], [0], [1], [0, 0, 1, 1], [], []>} : vector<16x16xbf16>, vector<16x128xbf16>, vector<16x128xf32> -> vector<16x128xf32>
    %c1 = arith.constant 1 : index
    %c0_76 = arith.constant 0 : index
    %c0_77 = arith.constant 0 : index
    %276 = vector.load %arg1[%c1, %c0_76, %c0_77] : memref<7x16x16xbf16, #tpu.memory_space<vmem>>, vector<1x16x16xbf16>
    %277 = vector.shape_cast %276 : vector<1x16x16xbf16> to vector<16x16xbf16>
    %cst_78 = arith.constant dense<0.000000e+00> : vector<16x128xf32>
    %278 = tpu.matmul %277, %272, %cst_78 {dimension_numbers = #tpu.dot_dimension_numbers<[1], [0], [0], [1], [0, 0, 1, 1], [], []>} : vector<16x16xbf16>, vector<16x128xbf16>, vector<16x128xf32> -> vector<16x128xf32>
    %c2 = arith.constant 2 : index
    %c0_79 = arith.constant 0 : index
    %c0_80 = arith.constant 0 : index
    %279 = vector.load %arg1[%c2, %c0_79, %c0_80] : memref<7x16x16xbf16, #tpu.memory_space<vmem>>, vector<1x16x16xbf16>
    %280 = vector.shape_cast %279 : vector<1x16x16xbf16> to vector<16x16xbf16>
    %cst_81 = arith.constant dense<0.000000e+00> : vector<16x128xf32>
    %281 = tpu.matmul %280, %272, %cst_81 {dimension_numbers = #tpu.dot_dimension_numbers<[1], [0], [0], [1], [0, 0, 1, 1], [], []>} : vector<16x16xbf16>, vector<16x128xbf16>, vector<16x128xf32> -> vector<16x128xf32>
    %c3 = arith.constant 3 : index
    %c0_82 = arith.constant 0 : index
    %c0_83 = arith.constant 0 : index
    %282 = vector.load %arg1[%c3, %c0_82, %c0_83] : memref<7x16x16xbf16, #tpu.memory_space<vmem>>, vector<1x16x16xbf16>
    %283 = vector.shape_cast %282 : vector<1x16x16xbf16> to vector<16x16xbf16>
    %cst_84 = arith.constant dense<0.000000e+00> : vector<16x128xf32>
    %284 = tpu.matmul %283, %272, %cst_84 {dimension_numbers = #tpu.dot_dimension_numbers<[1], [0], [0], [1], [0, 0, 1, 1], [], []>} : vector<16x16xbf16>, vector<16x128xbf16>, vector<16x128xf32> -> vector<16x128xf32>
    %c4 = arith.constant 4 : index
    %c0_85 = arith.constant 0 : index
    %c0_86 = arith.constant 0 : index
    %285 = vector.load %arg1[%c4, %c0_85, %c0_86] : memref<7x16x16xbf16, #tpu.memory_space<vmem>>, vector<1x16x16xbf16>
    %286 = vector.shape_cast %285 : vector<1x16x16xbf16> to vector<16x16xbf16>
    %cst_87 = arith.constant dense<0.000000e+00> : vector<16x128xf32>
    %287 = tpu.matmul %286, %272, %cst_87 {dimension_numbers = #tpu.dot_dimension_numbers<[1], [0], [0], [1], [0, 0, 1, 1], [], []>} : vector<16x16xbf16>, vector<16x128xbf16>, vector<16x128xf32> -> vector<16x128xf32>
    %c5 = arith.constant 5 : index
    %c0_88 = arith.constant 0 : index
    %c0_89 = arith.constant 0 : index
    %288 = vector.load %arg1[%c5, %c0_88, %c0_89] : memref<7x16x16xbf16, #tpu.memory_space<vmem>>, vector<1x16x16xbf16>
    %289 = vector.shape_cast %288 : vector<1x16x16xbf16> to vector<16x16xbf16>
    %cst_90 = arith.constant dense<0.000000e+00> : vector<16x128xf32>
    %290 = tpu.matmul %289, %272, %cst_90 {dimension_numbers = #tpu.dot_dimension_numbers<[1], [0], [0], [1], [0, 0, 1, 1], [], []>} : vector<16x16xbf16>, vector<16x128xbf16>, vector<16x128xf32> -> vector<16x128xf32>
    %c6 = arith.constant 6 : index
    %c0_91 = arith.constant 0 : index
    %c0_92 = arith.constant 0 : index
    %291 = vector.load %arg1[%c6, %c0_91, %c0_92] : memref<7x16x16xbf16, #tpu.memory_space<vmem>>, vector<1x16x16xbf16>
    %292 = vector.shape_cast %291 : vector<1x16x16xbf16> to vector<16x16xbf16>
    %cst_93 = arith.constant dense<0.000000e+00> : vector<16x128xf32>
    %293 = tpu.matmul %292, %272, %cst_93 {dimension_numbers = #tpu.dot_dimension_numbers<[1], [0], [0], [1], [0, 0, 1, 1], [], []>} : vector<16x16xbf16>, vector<16x128xbf16>, vector<16x128xf32> -> vector<16x128xf32>
    %294 = tpu.concatenate %275, %278, %281, %284, %287, %290, %293 in 1 : vector<16x128xf32>, vector<16x128xf32>, vector<16x128xf32>, vector<16x128xf32>, vector<16x128xf32>, vector<16x128xf32>, vector<16x128xf32> -> vector<16x896xf32>
    %295 = arith.truncf %294 : vector<16x896xf32> to vector<16x896xbf16>
    %c0_94 = arith.constant 0 : index
    %c0_95 = arith.constant 0 : index
    %296 = vector.load %arg5[%c0_94, %c0_95] : memref<896x128xbf16, #tpu.memory_space<vmem>>, vector<896x128xbf16>
    %cst_96 = arith.constant dense<0.000000e+00> : vector<16x128xf32>
    %297 = tpu.matmul %295, %296, %cst_96 {dimension_numbers = #tpu.dot_dimension_numbers<[1], [0], [0], [1], [0, 0, 1, 1], [], []>} : vector<16x896xbf16>, vector<896x128xbf16>, vector<16x128xf32> -> vector<16x128xf32>
    %c0_97 = arith.constant 0 : index
    %c0_98 = arith.constant 0 : index
    %298 = vector.load %arg6[%c0_97, %c0_98] : memref<1x128xf32, #tpu.memory_space<vmem>>, vector<1x128xf32>
    %299 = vector.broadcast %298 : vector<1x128xf32> to vector<16x128xf32>
    %300 = arith.addf %297, %299 : vector<16x128xf32>
    %cst_99 = arith.constant 0.000000e+00 : f32
    %301 = vector.broadcast %cst_99 : f32 to vector<16x128xf32>
    %302 = arith.maximumf %300, %301 : vector<16x128xf32>
    %303 = arith.truncf %302 : vector<16x128xf32> to vector<16x128xbf16>
    %c0_100 = arith.constant 0 : index
    %c0_101 = arith.constant 0 : index
    %304 = vector.load %arg7[%c0_100, %c0_101] : memref<128x512xbf16, #tpu.memory_space<vmem>>, vector<128x512xbf16>
    %cst_102 = arith.constant dense<0.000000e+00> : vector<16x512xf32>
    %305 = tpu.matmul %303, %304, %cst_102 {dimension_numbers = #tpu.dot_dimension_numbers<[1], [0], [0], [1], [0, 0, 1, 1], [], []>} : vector<16x128xbf16>, vector<128x512xbf16>, vector<16x512xf32> -> vector<16x512xf32>
    %306 = arith.truncf %305 : vector<16x512xf32> to vector<16x512xbf16>
    %cst_103 = arith.constant dense<0.000000e+00> : vector<128x512xf32>
    %307 = tpu.matmul %0, %306, %cst_103 {dimension_numbers = #tpu.dot_dimension_numbers<[1], [0], [0], [1], [0, 0, 1, 1], [], []>} : vector<128x16xbf16>, vector<16x512xbf16>, vector<128x512xf32> -> vector<128x512xf32>
    %c0_104 = arith.constant 0 : index
    %c0_105 = arith.constant 0 : index
    %308 = vector.load %arg9[%c0_104, %c0_105] : memref<1x512xf32, #tpu.memory_space<vmem>>, vector<1x512xf32>
    %309 = vector.broadcast %308 : vector<1x512xf32> to vector<128x512xf32>
    %310 = arith.addf %307, %309 : vector<128x512xf32>
    %c0_106 = arith.constant 0 : index
    %c0_107 = arith.constant 0 : index
    %311 = vector.load %arg13[%c0_106, %c0_107] : memref<128x512xf32, #tpu.memory_space<vmem>>, vector<128x512xf32>
    tpu.vector_store %arg13[%c0_106, %c0_107], %310 {strides = array<i32>} : memref<128x512xf32, #tpu.memory_space<vmem>>, vector<128x512xf32>,
    %cst_108 = arith.constant 0.000000e+00 : bf16
    %312 = vector.broadcast %cst_108 : bf16 to vector<16x128xbf16>
    %cst_109 = arith.constant 0.000000e+00 : f32
    %313 = vector.broadcast %cst_109 : f32 to vector<16x128xf32>
    %c0_i32_110 = arith.constant 0 : i32
    %c16_i32_111 = arith.constant 16 : i32
    %314 = arith.muli %c0_i32_110, %c16_i32_111 : i32
    %315 = tpu.assume_multiple %314, 16 : i32
    %316 = arith.index_cast %315 : i32 to index
    %c0_112 = arith.constant 0 : index
    %317 = vector.load %arg13[%316, %c0_112] : memref<128x512xf32, #tpu.memory_space<vmem>>, vector<16x512xf32>
    %c0_113 = arith.constant 0 : index
    %c0_114 = arith.constant 0 : index
    %318 = vector.load %arg8[%c0_113, %c0_114] : memref<128x512xbf16, #tpu.memory_space<vmem>>, vector<128x512xbf16>
    %cst_115 = arith.constant dense<0.000000e+00> : vector<16x512xf32>
    %319 = tpu.matmul %312, %318, %cst_115 {dimension_numbers = #tpu.dot_dimension_numbers<[1], [0], [0], [1], [0, 0, 1, 1], [], []>} : vector<16x128xbf16>, vector<128x512xbf16>, vector<16x512xf32> -> vector<16x512xf32>
    %320 = arith.addf %317, %319 : vector<16x512xf32>
    %321 = vector.extract_strided_slice %320 {offsets = [0, 0], sizes = [16, 128], strides = [1, 1]} : vector<16x512xf32> to vector<16x128xf32>
    %322 = arith.negf %321 : vector<16x128xf32>
    %323 = math.exp %322 : vector<16x128xf32>
    %cst_116 = arith.constant 1.000000e+00 : f32
    %324 = vector.broadcast %cst_116 : f32 to vector<16x128xf32>
    %325 = arith.addf %324, %323 : vector<16x128xf32>
    %326 = arith.divf %324, %325 : vector<16x128xf32>
    %327 = vector.extract_strided_slice %320 {offsets = [0, 128], sizes = [16, 128], strides = [1, 1]} : vector<16x512xf32> to vector<16x128xf32>
    %328 = arith.negf %327 : vector<16x128xf32>
    %329 = math.exp %328 : vector<16x128xf32>
    %cst_117 = arith.constant 1.000000e+00 : f32
    %330 = vector.broadcast %cst_117 : f32 to vector<16x128xf32>
    %331 = arith.addf %330, %329 : vector<16x128xf32>
    %332 = arith.divf %330, %331 : vector<16x128xf32>
    %333 = vector.extract_strided_slice %320 {offsets = [0, 256], sizes = [16, 128], strides = [1, 1]} : vector<16x512xf32> to vector<16x128xf32>
    %334 = math.tanh %333 : vector<16x128xf32>
    %335 = vector.extract_strided_slice %320 {offsets = [0, 384], sizes = [16, 128], strides = [1, 1]} : vector<16x512xf32> to vector<16x128xf32>
    %336 = arith.negf %335 : vector<16x128xf32>
    %337 = math.exp %336 : vector<16x128xf32>
    %cst_118 = arith.constant 1.000000e+00 : f32
    %338 = vector.broadcast %cst_118 : f32 to vector<16x128xf32>
    %339 = arith.addf %338, %337 : vector<16x128xf32>
    %340 = arith.divf %338, %339 : vector<16x128xf32>
    %341 = arith.mulf %332, %313 : vector<16x128xf32>
    %342 = arith.mulf %326, %334 : vector<16x128xf32>
    %343 = arith.addf %341, %342 : vector<16x128xf32>
    %344 = math.tanh %343 : vector<16x128xf32>
    %345 = arith.mulf %340, %344 : vector<16x128xf32>
    %346 = arith.truncf %345 : vector<16x128xf32> to vector<16x128xbf16>
    %c1_i32_119 = arith.constant 1 : i32
    %c16_i32_120 = arith.constant 16 : i32
    %347 = arith.muli %c1_i32_119, %c16_i32_120 : i32
    %348 = tpu.assume_multiple %347, 16 : i32
    %349 = arith.index_cast %348 : i32 to index
    %c0_121 = arith.constant 0 : index
    %350 = vector.load %arg13[%349, %c0_121] : memref<128x512xf32, #tpu.memory_space<vmem>>, vector<16x512xf32>
    %c0_122 = arith.constant 0 : index
    %c0_123 = arith.constant 0 : index
    %351 = vector.load %arg8[%c0_122, %c0_123] : memref<128x512xbf16, #tpu.memory_space<vmem>>, vector<128x512xbf16>
    %cst_124 = arith.constant dense<0.000000e+00> : vector<16x512xf32>
    %352 = tpu.matmul %346, %351, %cst_124 {dimension_numbers = #tpu.dot_dimension_numbers<[1], [0], [0], [1], [0, 0, 1, 1], [], []>} : vector<16x128xbf16>, vector<128x512xbf16>, vector<16x512xf32> -> vector<16x512xf32>
    %353 = arith.addf %350, %352 : vector<16x512xf32>
    %354 = vector.extract_strided_slice %353 {offsets = [0, 0], sizes = [16, 128], strides = [1, 1]} : vector<16x512xf32> to vector<16x128xf32>
    %355 = arith.negf %354 : vector<16x128xf32>
    %356 = math.exp %355 : vector<16x128xf32>
    %cst_125 = arith.constant 1.000000e+00 : f32
    %357 = vector.broadcast %cst_125 : f32 to vector<16x128xf32>
    %358 = arith.addf %357, %356 : vector<16x128xf32>
    %359 = arith.divf %357, %358 : vector<16x128xf32>
    %360 = vector.extract_strided_slice %353 {offsets = [0, 128], sizes = [16, 128], strides = [1, 1]} : vector<16x512xf32> to vector<16x128xf32>
    %361 = arith.negf %360 : vector<16x128xf32>
    %362 = math.exp %361 : vector<16x128xf32>
    %cst_126 = arith.constant 1.000000e+00 : f32
    %363 = vector.broadcast %cst_126 : f32 to vector<16x128xf32>
    %364 = arith.addf %363, %362 : vector<16x128xf32>
    %365 = arith.divf %363, %364 : vector<16x128xf32>
    %366 = vector.extract_strided_slice %353 {offsets = [0, 256], sizes = [16, 128], strides = [1, 1]} : vector<16x512xf32> to vector<16x128xf32>
    %367 = math.tanh %366 : vector<16x128xf32>
    %368 = vector.extract_strided_slice %353 {offsets = [0, 384], sizes = [16, 128], strides = [1, 1]} : vector<16x512xf32> to vector<16x128xf32>
    %369 = arith.negf %368 : vector<16x128xf32>
    %370 = math.exp %369 : vector<16x128xf32>
    %cst_127 = arith.constant 1.000000e+00 : f32
    %371 = vector.broadcast %cst_127 : f32 to vector<16x128xf32>
    %372 = arith.addf %371, %370 : vector<16x128xf32>
    %373 = arith.divf %371, %372 : vector<16x128xf32>
    %374 = arith.mulf %365, %343 : vector<16x128xf32>
    %375 = arith.mulf %359, %367 : vector<16x128xf32>
    %376 = arith.addf %374, %375 : vector<16x128xf32>
    %377 = math.tanh %376 : vector<16x128xf32>
    %378 = arith.mulf %373, %377 : vector<16x128xf32>
    %379 = arith.truncf %378 : vector<16x128xf32> to vector<16x128xbf16>
    %c2_i32_128 = arith.constant 2 : i32
    %c16_i32_129 = arith.constant 16 : i32
    %380 = arith.muli %c2_i32_128, %c16_i32_129 : i32
    %381 = tpu.assume_multiple %380, 16 : i32
    %382 = arith.index_cast %381 : i32 to index
    %c0_130 = arith.constant 0 : index
    %383 = vector.load %arg13[%382, %c0_130] : memref<128x512xf32, #tpu.memory_space<vmem>>, vector<16x512xf32>
    %c0_131 = arith.constant 0 : index
    %c0_132 = arith.constant 0 : index
    %384 = vector.load %arg8[%c0_131, %c0_132] : memref<128x512xbf16, #tpu.memory_space<vmem>>, vector<128x512xbf16>
    %cst_133 = arith.constant dense<0.000000e+00> : vector<16x512xf32>
    %385 = tpu.matmul %379, %384, %cst_133 {dimension_numbers = #tpu.dot_dimension_numbers<[1], [0], [0], [1], [0, 0, 1, 1], [], []>} : vector<16x128xbf16>, vector<128x512xbf16>, vector<16x512xf32> -> vector<16x512xf32>
    %386 = arith.addf %383, %385 : vector<16x512xf32>
    %387 = vector.extract_strided_slice %386 {offsets = [0, 0], sizes = [16, 128], strides = [1, 1]} : vector<16x512xf32> to vector<16x128xf32>
    %388 = arith.negf %387 : vector<16x128xf32>
    %389 = math.exp %388 : vector<16x128xf32>
    %cst_134 = arith.constant 1.000000e+00 : f32
    %390 = vector.broadcast %cst_134 : f32 to vector<16x128xf32>
    %391 = arith.addf %390, %389 : vector<16x128xf32>
    %392 = arith.divf %390, %391 : vector<16x128xf32>
    %393 = vector.extract_strided_slice %386 {offsets = [0, 128], sizes = [16, 128], strides = [1, 1]} : vector<16x512xf32> to vector<16x128xf32>
    %394 = arith.negf %393 : vector<16x128xf32>
    %395 = math.exp %394 : vector<16x128xf32>
    %cst_135 = arith.constant 1.000000e+00 : f32
    %396 = vector.broadcast %cst_135 : f32 to vector<16x128xf32>
    %397 = arith.addf %396, %395 : vector<16x128xf32>
    %398 = arith.divf %396, %397 : vector<16x128xf32>
    %399 = vector.extract_strided_slice %386 {offsets = [0, 256], sizes = [16, 128], strides = [1, 1]} : vector<16x512xf32> to vector<16x128xf32>
    %400 = math.tanh %399 : vector<16x128xf32>
    %401 = vector.extract_strided_slice %386 {offsets = [0, 384], sizes = [16, 128], strides = [1, 1]} : vector<16x512xf32> to vector<16x128xf32>
    %402 = arith.negf %401 : vector<16x128xf32>
    %403 = math.exp %402 : vector<16x128xf32>
    %cst_136 = arith.constant 1.000000e+00 : f32
    %404 = vector.broadcast %cst_136 : f32 to vector<16x128xf32>
    %405 = arith.addf %404, %403 : vector<16x128xf32>
    %406 = arith.divf %404, %405 : vector<16x128xf32>
    %407 = arith.mulf %398, %376 : vector<16x128xf32>
    %408 = arith.mulf %392, %400 : vector<16x128xf32>
    %409 = arith.addf %407, %408 : vector<16x128xf32>
    %410 = math.tanh %409 : vector<16x128xf32>
    %411 = arith.mulf %406, %410 : vector<16x128xf32>
    %412 = arith.truncf %411 : vector<16x128xf32> to vector<16x128xbf16>
    %c3_i32_137 = arith.constant 3 : i32
    %c16_i32_138 = arith.constant 16 : i32
    %413 = arith.muli %c3_i32_137, %c16_i32_138 : i32
    %414 = tpu.assume_multiple %413, 16 : i32
    %415 = arith.index_cast %414 : i32 to index
    %c0_139 = arith.constant 0 : index
    %416 = vector.load %arg13[%415, %c0_139] : memref<128x512xf32, #tpu.memory_space<vmem>>, vector<16x512xf32>
    %c0_140 = arith.constant 0 : index
    %c0_141 = arith.constant 0 : index
    %417 = vector.load %arg8[%c0_140, %c0_141] : memref<128x512xbf16, #tpu.memory_space<vmem>>, vector<128x512xbf16>
    %cst_142 = arith.constant dense<0.000000e+00> : vector<16x512xf32>
    %418 = tpu.matmul %412, %417, %cst_142 {dimension_numbers = #tpu.dot_dimension_numbers<[1], [0], [0], [1], [0, 0, 1, 1], [], []>} : vector<16x128xbf16>, vector<128x512xbf16>, vector<16x512xf32> -> vector<16x512xf32>
    %419 = arith.addf %416, %418 : vector<16x512xf32>
    %420 = vector.extract_strided_slice %419 {offsets = [0, 0], sizes = [16, 128], strides = [1, 1]} : vector<16x512xf32> to vector<16x128xf32>
    %421 = arith.negf %420 : vector<16x128xf32>
    %422 = math.exp %421 : vector<16x128xf32>
    %cst_143 = arith.constant 1.000000e+00 : f32
    %423 = vector.broadcast %cst_143 : f32 to vector<16x128xf32>
    %424 = arith.addf %423, %422 : vector<16x128xf32>
    %425 = arith.divf %423, %424 : vector<16x128xf32>
    %426 = vector.extract_strided_slice %419 {offsets = [0, 128], sizes = [16, 128], strides = [1, 1]} : vector<16x512xf32> to vector<16x128xf32>
    %427 = arith.negf %426 : vector<16x128xf32>
    %428 = math.exp %427 : vector<16x128xf32>
    %cst_144 = arith.constant 1.000000e+00 : f32
    %429 = vector.broadcast %cst_144 : f32 to vector<16x128xf32>
    %430 = arith.addf %429, %428 : vector<16x128xf32>
    %431 = arith.divf %429, %430 : vector<16x128xf32>
    %432 = vector.extract_strided_slice %419 {offsets = [0, 256], sizes = [16, 128], strides = [1, 1]} : vector<16x512xf32> to vector<16x128xf32>
    %433 = math.tanh %432 : vector<16x128xf32>
    %434 = vector.extract_strided_slice %419 {offsets = [0, 384], sizes = [16, 128], strides = [1, 1]} : vector<16x512xf32> to vector<16x128xf32>
    %435 = arith.negf %434 : vector<16x128xf32>
    %436 = math.exp %435 : vector<16x128xf32>
    %cst_145 = arith.constant 1.000000e+00 : f32
    %437 = vector.broadcast %cst_145 : f32 to vector<16x128xf32>
    %438 = arith.addf %437, %436 : vector<16x128xf32>
    %439 = arith.divf %437, %438 : vector<16x128xf32>
    %440 = arith.mulf %431, %409 : vector<16x128xf32>
    %441 = arith.mulf %425, %433 : vector<16x128xf32>
    %442 = arith.addf %440, %441 : vector<16x128xf32>
    %443 = math.tanh %442 : vector<16x128xf32>
    %444 = arith.mulf %439, %443 : vector<16x128xf32>
    %445 = arith.truncf %444 : vector<16x128xf32> to vector<16x128xbf16>
    %c4_i32_146 = arith.constant 4 : i32
    %c16_i32_147 = arith.constant 16 : i32
    %446 = arith.muli %c4_i32_146, %c16_i32_147 : i32
    %447 = tpu.assume_multiple %446, 16 : i32
    %448 = arith.index_cast %447 : i32 to index
    %c0_148 = arith.constant 0 : index
    %449 = vector.load %arg13[%448, %c0_148] : memref<128x512xf32, #tpu.memory_space<vmem>>, vector<16x512xf32>
    %c0_149 = arith.constant 0 : index
    %c0_150 = arith.constant 0 : index
    %450 = vector.load %arg8[%c0_149, %c0_150] : memref<128x512xbf16, #tpu.memory_space<vmem>>, vector<128x512xbf16>
    %cst_151 = arith.constant dense<0.000000e+00> : vector<16x512xf32>
    %451 = tpu.matmul %445, %450, %cst_151 {dimension_numbers = #tpu.dot_dimension_numbers<[1], [0], [0], [1], [0, 0, 1, 1], [], []>} : vector<16x128xbf16>, vector<128x512xbf16>, vector<16x512xf32> -> vector<16x512xf32>
    %452 = arith.addf %449, %451 : vector<16x512xf32>
    %453 = vector.extract_strided_slice %452 {offsets = [0, 0], sizes = [16, 128], strides = [1, 1]} : vector<16x512xf32> to vector<16x128xf32>
    %454 = arith.negf %453 : vector<16x128xf32>
    %455 = math.exp %454 : vector<16x128xf32>
    %cst_152 = arith.constant 1.000000e+00 : f32
    %456 = vector.broadcast %cst_152 : f32 to vector<16x128xf32>
    %457 = arith.addf %456, %455 : vector<16x128xf32>
    %458 = arith.divf %456, %457 : vector<16x128xf32>
    %459 = vector.extract_strided_slice %452 {offsets = [0, 128], sizes = [16, 128], strides = [1, 1]} : vector<16x512xf32> to vector<16x128xf32>
    %460 = arith.negf %459 : vector<16x128xf32>
    %461 = math.exp %460 : vector<16x128xf32>
    %cst_153 = arith.constant 1.000000e+00 : f32
    %462 = vector.broadcast %cst_153 : f32 to vector<16x128xf32>
    %463 = arith.addf %462, %461 : vector<16x128xf32>
    %464 = arith.divf %462, %463 : vector<16x128xf32>
    %465 = vector.extract_strided_slice %452 {offsets = [0, 256], sizes = [16, 128], strides = [1, 1]} : vector<16x512xf32> to vector<16x128xf32>
    %466 = math.tanh %465 : vector<16x128xf32>
    %467 = vector.extract_strided_slice %452 {offsets = [0, 384], sizes = [16, 128], strides = [1, 1]} : vector<16x512xf32> to vector<16x128xf32>
    %468 = arith.negf %467 : vector<16x128xf32>
    %469 = math.exp %468 : vector<16x128xf32>
    %cst_154 = arith.constant 1.000000e+00 : f32
    %470 = vector.broadcast %cst_154 : f32 to vector<16x128xf32>
    %471 = arith.addf %470, %469 : vector<16x128xf32>
    %472 = arith.divf %470, %471 : vector<16x128xf32>
    %473 = arith.mulf %464, %442 : vector<16x128xf32>
    %474 = arith.mulf %458, %466 : vector<16x128xf32>
    %475 = arith.addf %473, %474 : vector<16x128xf32>
    %476 = math.tanh %475 : vector<16x128xf32>
    %477 = arith.mulf %472, %476 : vector<16x128xf32>
    %478 = arith.truncf %477 : vector<16x128xf32> to vector<16x128xbf16>
    %c5_i32_155 = arith.constant 5 : i32
    %c16_i32_156 = arith.constant 16 : i32
    %479 = arith.muli %c5_i32_155, %c16_i32_156 : i32
    %480 = tpu.assume_multiple %479, 16 : i32
    %481 = arith.index_cast %480 : i32 to index
    %c0_157 = arith.constant 0 : index
    %482 = vector.load %arg13[%481, %c0_157] : memref<128x512xf32, #tpu.memory_space<vmem>>, vector<16x512xf32>
    %c0_158 = arith.constant 0 : index
    %c0_159 = arith.constant 0 : index
    %483 = vector.load %arg8[%c0_158, %c0_159] : memref<128x512xbf16, #tpu.memory_space<vmem>>, vector<128x512xbf16>
    %cst_160 = arith.constant dense<0.000000e+00> : vector<16x512xf32>
    %484 = tpu.matmul %478, %483, %cst_160 {dimension_numbers = #tpu.dot_dimension_numbers<[1], [0], [0], [1], [0, 0, 1, 1], [], []>} : vector<16x128xbf16>, vector<128x512xbf16>, vector<16x512xf32> -> vector<16x512xf32>
    %485 = arith.addf %482, %484 : vector<16x512xf32>
    %486 = vector.extract_strided_slice %485 {offsets = [0, 0], sizes = [16, 128], strides = [1, 1]} : vector<16x512xf32> to vector<16x128xf32>
    %487 = arith.negf %486 : vector<16x128xf32>
    %488 = math.exp %487 : vector<16x128xf32>
    %cst_161 = arith.constant 1.000000e+00 : f32
    %489 = vector.broadcast %cst_161 : f32 to vector<16x128xf32>
    %490 = arith.addf %489, %488 : vector<16x128xf32>
    %491 = arith.divf %489, %490 : vector<16x128xf32>
    %492 = vector.extract_strided_slice %485 {offsets = [0, 128], sizes = [16, 128], strides = [1, 1]} : vector<16x512xf32> to vector<16x128xf32>
    %493 = arith.negf %492 : vector<16x128xf32>
    %494 = math.exp %493 : vector<16x128xf32>
    %cst_162 = arith.constant 1.000000e+00 : f32
    %495 = vector.broadcast %cst_162 : f32 to vector<16x128xf32>
    %496 = arith.addf %495, %494 : vector<16x128xf32>
    %497 = arith.divf %495, %496 : vector<16x128xf32>
    %498 = vector.extract_strided_slice %485 {offsets = [0, 256], sizes = [16, 128], strides = [1, 1]} : vector<16x512xf32> to vector<16x128xf32>
    %499 = math.tanh %498 : vector<16x128xf32>
    %500 = vector.extract_strided_slice %485 {offsets = [0, 384], sizes = [16, 128], strides = [1, 1]} : vector<16x512xf32> to vector<16x128xf32>
    %501 = arith.negf %500 : vector<16x128xf32>
    %502 = math.exp %501 : vector<16x128xf32>
    %cst_163 = arith.constant 1.000000e+00 : f32
    %503 = vector.broadcast %cst_163 : f32 to vector<16x128xf32>
    %504 = arith.addf %503, %502 : vector<16x128xf32>
    %505 = arith.divf %503, %504 : vector<16x128xf32>
    %506 = arith.mulf %497, %475 : vector<16x128xf32>
    %507 = arith.mulf %491, %499 : vector<16x128xf32>
    %508 = arith.addf %506, %507 : vector<16x128xf32>
    %509 = math.tanh %508 : vector<16x128xf32>
    %510 = arith.mulf %505, %509 : vector<16x128xf32>
    %511 = arith.truncf %510 : vector<16x128xf32> to vector<16x128xbf16>
    %c6_i32_164 = arith.constant 6 : i32
    %c16_i32_165 = arith.constant 16 : i32
    %512 = arith.muli %c6_i32_164, %c16_i32_165 : i32
    %513 = tpu.assume_multiple %512, 16 : i32
    %514 = arith.index_cast %513 : i32 to index
    %c0_166 = arith.constant 0 : index
    %515 = vector.load %arg13[%514, %c0_166] : memref<128x512xf32, #tpu.memory_space<vmem>>, vector<16x512xf32>
    %c0_167 = arith.constant 0 : index
    %c0_168 = arith.constant 0 : index
    %516 = vector.load %arg8[%c0_167, %c0_168] : memref<128x512xbf16, #tpu.memory_space<vmem>>, vector<128x512xbf16>
    %cst_169 = arith.constant dense<0.000000e+00> : vector<16x512xf32>
    %517 = tpu.matmul %511, %516, %cst_169 {dimension_numbers = #tpu.dot_dimension_numbers<[1], [0], [0], [1], [0, 0, 1, 1], [], []>} : vector<16x128xbf16>, vector<128x512xbf16>, vector<16x512xf32> -> vector<16x512xf32>
    %518 = arith.addf %515, %517 : vector<16x512xf32>
    %519 = vector.extract_strided_slice %518 {offsets = [0, 0], sizes = [16, 128], strides = [1, 1]} : vector<16x512xf32> to vector<16x128xf32>
    %520 = arith.negf %519 : vector<16x128xf32>
    %521 = math.exp %520 : vector<16x128xf32>
    %cst_170 = arith.constant 1.000000e+00 : f32
    %522 = vector.broadcast %cst_170 : f32 to vector<16x128xf32>
    %523 = arith.addf %522, %521 : vector<16x128xf32>
    %524 = arith.divf %522, %523 : vector<16x128xf32>
    %525 = vector.extract_strided_slice %518 {offsets = [0, 128], sizes = [16, 128], strides = [1, 1]} : vector<16x512xf32> to vector<16x128xf32>
    %526 = arith.negf %525 : vector<16x128xf32>
    %527 = math.exp %526 : vector<16x128xf32>
    %cst_171 = arith.constant 1.000000e+00 : f32
    %528 = vector.broadcast %cst_171 : f32 to vector<16x128xf32>
    %529 = arith.addf %528, %527 : vector<16x128xf32>
    %530 = arith.divf %528, %529 : vector<16x128xf32>
    %531 = vector.extract_strided_slice %518 {offsets = [0, 256], sizes = [16, 128], strides = [1, 1]} : vector<16x512xf32> to vector<16x128xf32>
    %532 = math.tanh %531 : vector<16x128xf32>
    %533 = vector.extract_strided_slice %518 {offsets = [0, 384], sizes = [16, 128], strides = [1, 1]} : vector<16x512xf32> to vector<16x128xf32>
    %534 = arith.negf %533 : vector<16x128xf32>
    %535 = math.exp %534 : vector<16x128xf32>
    %cst_172 = arith.constant 1.000000e+00 : f32
    %536 = vector.broadcast %cst_172 : f32 to vector<16x128xf32>
    %537 = arith.addf %536, %535 : vector<16x128xf32>
    %538 = arith.divf %536, %537 : vector<16x128xf32>
    %539 = arith.mulf %530, %508 : vector<16x128xf32>
    %540 = arith.mulf %524, %532 : vector<16x128xf32>
    %541 = arith.addf %539, %540 : vector<16x128xf32>
    %542 = math.tanh %541 : vector<16x128xf32>
    %543 = arith.mulf %538, %542 : vector<16x128xf32>
    %544 = arith.truncf %543 : vector<16x128xf32> to vector<16x128xbf16>
    %c7_i32_173 = arith.constant 7 : i32
    %c16_i32_174 = arith.constant 16 : i32
    %545 = arith.muli %c7_i32_173, %c16_i32_174 : i32
    %546 = tpu.assume_multiple %545, 16 : i32
    %547 = arith.index_cast %546 : i32 to index
    %c0_175 = arith.constant 0 : index
    %548 = vector.load %arg13[%547, %c0_175] : memref<128x512xf32, #tpu.memory_space<vmem>>, vector<16x512xf32>
    %c0_176 = arith.constant 0 : index
    %c0_177 = arith.constant 0 : index
    %549 = vector.load %arg8[%c0_176, %c0_177] : memref<128x512xbf16, #tpu.memory_space<vmem>>, vector<128x512xbf16>
    %cst_178 = arith.constant dense<0.000000e+00> : vector<16x512xf32>
    %550 = tpu.matmul %544, %549, %cst_178 {dimension_numbers = #tpu.dot_dimension_numbers<[1], [0], [0], [1], [0, 0, 1, 1], [], []>} : vector<16x128xbf16>, vector<128x512xbf16>, vector<16x512xf32> -> vector<16x512xf32>
    %551 = arith.addf %548, %550 : vector<16x512xf32>
    %552 = vector.extract_strided_slice %551 {offsets = [0, 0], sizes = [16, 128], strides = [1, 1]} : vector<16x512xf32> to vector<16x128xf32>
    %553 = arith.negf %552 : vector<16x128xf32>
    %554 = math.exp %553 : vector<16x128xf32>
    %cst_179 = arith.constant 1.000000e+00 : f32
    %555 = vector.broadcast %cst_179 : f32 to vector<16x128xf32>
    %556 = arith.addf %555, %554 : vector<16x128xf32>
    %557 = arith.divf %555, %556 : vector<16x128xf32>
    %558 = vector.extract_strided_slice %551 {offsets = [0, 128], sizes = [16, 128], strides = [1, 1]} : vector<16x512xf32> to vector<16x128xf32>
    %559 = arith.negf %558 : vector<16x128xf32>
    %560 = math.exp %559 : vector<16x128xf32>
    %cst_180 = arith.constant 1.000000e+00 : f32
    %561 = vector.broadcast %cst_180 : f32 to vector<16x128xf32>
    %562 = arith.addf %561, %560 : vector<16x128xf32>
    %563 = arith.divf %561, %562 : vector<16x128xf32>
    %564 = vector.extract_strided_slice %551 {offsets = [0, 256], sizes = [16, 128], strides = [1, 1]} : vector<16x512xf32> to vector<16x128xf32>
    %565 = math.tanh %564 : vector<16x128xf32>
    %566 = vector.extract_strided_slice %551 {offsets = [0, 384], sizes = [16, 128], strides = [1, 1]} : vector<16x512xf32> to vector<16x128xf32>
    %567 = arith.negf %566 : vector<16x128xf32>
    %568 = math.exp %567 : vector<16x128xf32>
    %cst_181 = arith.constant 1.000000e+00 : f32
    %569 = vector.broadcast %cst_181 : f32 to vector<16x128xf32>
    %570 = arith.addf %569, %568 : vector<16x128xf32>
    %571 = arith.divf %569, %570 : vector<16x128xf32>
    %572 = arith.mulf %563, %541 : vector<16x128xf32>
    %573 = arith.mulf %557, %565 : vector<16x128xf32>
    %574 = arith.addf %572, %573 : vector<16x128xf32>
    %575 = math.tanh %574 : vector<16x128xf32>
    %576 = arith.mulf %571, %575 : vector<16x128xf32>
    %577 = arith.truncf %576 : vector<16x128xf32> to vector<16x128xbf16>
    %c8_i32_182 = arith.constant 8 : i32
    %c0_183 = arith.constant 0 : index
    %c0_184 = arith.constant 0 : index
    %c0_185 = arith.constant 0 : index
    %578 = vector.load %arg1[%c0_183, %c0_184, %c0_185] : memref<7x16x16xbf16, #tpu.memory_space<vmem>>, vector<1x16x16xbf16>
    %579 = vector.shape_cast %578 : vector<1x16x16xbf16> to vector<16x16xbf16>
    %cst_186 = arith.constant dense<0.000000e+00> : vector<16x128xf32>
    %580 = tpu.matmul %579, %577, %cst_186 {dimension_numbers = #tpu.dot_dimension_numbers<[1], [0], [0], [1], [0, 0, 1, 1], [], []>} : vector<16x16xbf16>, vector<16x128xbf16>, vector<16x128xf32> -> vector<16x128xf32>
    %c1_187 = arith.constant 1 : index
    %c0_188 = arith.constant 0 : index
    %c0_189 = arith.constant 0 : index
    %581 = vector.load %arg1[%c1_187, %c0_188, %c0_189] : memref<7x16x16xbf16, #tpu.memory_space<vmem>>, vector<1x16x16xbf16>
    %582 = vector.shape_cast %581 : vector<1x16x16xbf16> to vector<16x16xbf16>
    %cst_190 = arith.constant dense<0.000000e+00> : vector<16x128xf32>
    %583 = tpu.matmul %582, %577, %cst_190 {dimension_numbers = #tpu.dot_dimension_numbers<[1], [0], [0], [1], [0, 0, 1, 1], [], []>} : vector<16x16xbf16>, vector<16x128xbf16>, vector<16x128xf32> -> vector<16x128xf32>
    %c2_191 = arith.constant 2 : index
    %c0_192 = arith.constant 0 : index
    %c0_193 = arith.constant 0 : index
    %584 = vector.load %arg1[%c2_191, %c0_192, %c0_193] : memref<7x16x16xbf16, #tpu.memory_space<vmem>>, vector<1x16x16xbf16>
    %585 = vector.shape_cast %584 : vector<1x16x16xbf16> to vector<16x16xbf16>
    %cst_194 = arith.constant dense<0.000000e+00> : vector<16x128xf32>
    %586 = tpu.matmul %585, %577, %cst_194 {dimension_numbers = #tpu.dot_dimension_numbers<[1], [0], [0], [1], [0, 0, 1, 1], [], []>} : vector<16x16xbf16>, vector<16x128xbf16>, vector<16x128xf32> -> vector<16x128xf32>
    %c3_195 = arith.constant 3 : index
    %c0_196 = arith.constant 0 : index
    %c0_197 = arith.constant 0 : index
    %587 = vector.load %arg1[%c3_195, %c0_196, %c0_197] : memref<7x16x16xbf16, #tpu.memory_space<vmem>>, vector<1x16x16xbf16>
    %588 = vector.shape_cast %587 : vector<1x16x16xbf16> to vector<16x16xbf16>
    %cst_198 = arith.constant dense<0.000000e+00> : vector<16x128xf32>
    %589 = tpu.matmul %588, %577, %cst_198 {dimension_numbers = #tpu.dot_dimension_numbers<[1], [0], [0], [1], [0, 0, 1, 1], [], []>} : vector<16x16xbf16>, vector<16x128xbf16>, vector<16x128xf32> -> vector<16x128xf32>
    %c4_199 = arith.constant 4 : index
    %c0_200 = arith.constant 0 : index
    %c0_201 = arith.constant 0 : index
    %590 = vector.load %arg1[%c4_199, %c0_200, %c0_201] : memref<7x16x16xbf16, #tpu.memory_space<vmem>>, vector<1x16x16xbf16>
    %591 = vector.shape_cast %590 : vector<1x16x16xbf16> to vector<16x16xbf16>
    %cst_202 = arith.constant dense<0.000000e+00> : vector<16x128xf32>
    %592 = tpu.matmul %591, %577, %cst_202 {dimension_numbers = #tpu.dot_dimension_numbers<[1], [0], [0], [1], [0, 0, 1, 1], [], []>} : vector<16x16xbf16>, vector<16x128xbf16>, vector<16x128xf32> -> vector<16x128xf32>
    %c5_203 = arith.constant 5 : index
    %c0_204 = arith.constant 0 : index
    %c0_205 = arith.constant 0 : index
    %593 = vector.load %arg1[%c5_203, %c0_204, %c0_205] : memref<7x16x16xbf16, #tpu.memory_space<vmem>>, vector<1x16x16xbf16>
    %594 = vector.shape_cast %593 : vector<1x16x16xbf16> to vector<16x16xbf16>
    %cst_206 = arith.constant dense<0.000000e+00> : vector<16x128xf32>
    %595 = tpu.matmul %594, %577, %cst_206 {dimension_numbers = #tpu.dot_dimension_numbers<[1], [0], [0], [1], [0, 0, 1, 1], [], []>} : vector<16x16xbf16>, vector<16x128xbf16>, vector<16x128xf32> -> vector<16x128xf32>
    %c6_207 = arith.constant 6 : index
    %c0_208 = arith.constant 0 : index
    %c0_209 = arith.constant 0 : index
    %596 = vector.load %arg1[%c6_207, %c0_208, %c0_209] : memref<7x16x16xbf16, #tpu.memory_space<vmem>>, vector<1x16x16xbf16>
    %597 = vector.shape_cast %596 : vector<1x16x16xbf16> to vector<16x16xbf16>
    %cst_210 = arith.constant dense<0.000000e+00> : vector<16x128xf32>
    %598 = tpu.matmul %597, %577, %cst_210 {dimension_numbers = #tpu.dot_dimension_numbers<[1], [0], [0], [1], [0, 0, 1, 1], [], []>} : vector<16x16xbf16>, vector<16x128xbf16>, vector<16x128xf32> -> vector<16x128xf32>
    %599 = tpu.concatenate %580, %583, %586, %589, %592, %595, %598 in 1 : vector<16x128xf32>, vector<16x128xf32>, vector<16x128xf32>, vector<16x128xf32>, vector<16x128xf32>, vector<16x128xf32>, vector<16x128xf32> -> vector<16x896xf32>
    %600 = arith.truncf %599 : vector<16x896xf32> to vector<16x896xbf16>
    %c0_211 = arith.constant 0 : index
    %c0_212 = arith.constant 0 : index
    %601 = vector.load %arg10[%c0_211, %c0_212] : memref<896x128xbf16, #tpu.memory_space<vmem>>, vector<896x128xbf16>
    %cst_213 = arith.constant dense<0.000000e+00> : vector<16x128xf32>
    %602 = tpu.matmul %600, %601, %cst_213 {dimension_numbers = #tpu.dot_dimension_numbers<[1], [0], [0], [1], [0, 0, 1, 1], [], []>} : vector<16x896xbf16>, vector<896x128xbf16>, vector<16x128xf32> -> vector<16x128xf32>
    %c0_214 = arith.constant 0 : index
    %c0_215 = arith.constant 0 : index
    %603 = vector.load %arg11[%c0_214, %c0_215] : memref<1x128xf32, #tpu.memory_space<vmem>>, vector<1x128xf32>
    %604 = vector.broadcast %603 : vector<1x128xf32> to vector<16x128xf32>
    %605 = arith.addf %602, %604 : vector<16x128xf32>
    %cst_216 = arith.constant 0.000000e+00 : f32
    %606 = vector.broadcast %cst_216 : f32 to vector<16x128xf32>
    %607 = arith.maximumf %605, %606 : vector<16x128xf32>
    %c0_217 = arith.constant 0 : index
    %c0_218 = arith.constant 0 : index
    %608 = vector.load %arg12[%c0_217, %c0_218] : memref<16x128xf32, #tpu.memory_space<vmem>>, vector<16x128xf32>
    tpu.vector_store %arg12[%c0_217, %c0_218], %607 {strides = array<i32>} : memref<16x128xf32, #tpu.memory_space<vmem>>, vector<16x128xf32>,
    return
  }
}

</mosaic_0001>

<bundles_post_ra>
// kernel: relation_predictor_forward.1
= control target key start
LH: loop header
LB: loop body
LE: loop exit
PB: predicated region body
PF: predicated region fallthrough
CT: control target
= control target key end

     0   :  { %17 = vsyncpa [#allocation4], 0  ;;  %s9519_s0 = inlined_call_operand.vmem [shape: bf16[128,16], index: 0, kind: input, shape index: {}]   ;;  %s9520_s1 = inlined_call_operand.vmem [shape: bf16[7,16,16], index: 1, kind: input, shape index: {}]   ;;  %s9521_s2 = inlined_call_operand.vmem [shape: bf16[16,512], index: 2, kind: input, shape index: {}]   ;;  %s9522_s3 = inlined_call_operand.hbm [shape: bf16[128,512], index: 3, kind: input, shape index: {}]   ;;  %s9523_s4 = inlined_call_operand.vmem [shape: f32[1,512], index: 4, kind: input, shape index: {}]   ;;  %s9524_s5 = inlined_call_operand.hbm [shape: bf16[896,128], index: 5, kind: input, shape index: {}]   ;;  %s9525_s6 = inlined_call_operand.vmem [shape: f32[1,128], index: 6, kind: input, shape index: {}]   ;;  %s9526_s7 = inlined_call_operand.hbm [shape: bf16[128,512], index: 7, kind: input, shape index: {}]   ;;  %s9527_s8 = inlined_call_operand.hbm [shape: bf16[128,512], index: 8, kind: input, shape index: {}]   ;;  %s9528_s9 = inlined_call_operand.hbm [shape: f32[1,512], index: 9, kind: input, shape index: {}]   ;;  %s9529_s10 = inlined_call_operand.hbm [shape: bf16[896,128], index: 10, kind: input, shape index: {}]   ;;  %s9530_s11 = inlined_call_operand.hbm [shape: f32[1,128], index: 11, kind: input, shape index: {}]   ;;  %s9531_s12 = inlined_call_operand.vmem [shape: f32[16,128], index: 12, kind: output, shape index: {}]  }
   0x1   :  { %18 = vsyncpa [#allocation6], 0 }
   0x2   :  { %19 = vsyncpa [#allocation9], 0 }
   0x3   :  { %20 = vsyncpa [#allocation12], 0  ;;  %s7726_s21 = smov [#allocation5]  }
   0x4   :  { %s46_s22 = sshll.u32 %s7726_s21, 4  ;;  %s47_s22 = int_to_ptr.vmem [resolvable:$true] %s46_s22 }
   0x5   :  { %s7586_s23 = scalar_lea.vmem %s47_s22, 7168  ;;  %p7591_p1 = scmp.lt.s32.totalorder %s47_s22, %s47_s22 }
   0x6   :  { %p7587_p0 = scmp.ne.s32.totalorder %s47_s22, %s7586_s23  ;;  %p7592_p2 = scmp.lt.s32.totalorder %s7586_s23, %s7586_s23 }
   0x8   :  { %p7593_p3 = por %p7592_p2, %p7591_p1 }
   0xa   :  { %p7594_p4 = pnand %p7593_p3, %p7587_p0 }
   0xc   :  { %7597 = shalt.err (!%p7594_p4)
}
   0xd   :  { %s7727_s24 = smov 64   ;;  %s7728_s25 = smov 4  }
   0xe   :  { %52 = dma.hbm_to_vmem [thread:$0]  %s9524_s5, 7168, %s47_s22, [#allocation6], %s7727_s24, %s7727_s24, %s7728_s25  }
   0xf   :  { %s7729_s28 = smov [#allocation8]   ;;  %s7730_s30 = smov [#allocation11]  }
  0x10   :  { %s72_s29 = sshll.u32 %s7729_s28, 4  ;;  %s94_s13 = sshll.u32 %s7730_s30, 4  ;;  %s73_s29 = int_to_ptr.vmem [resolvable:$true] %s72_s29  ;;  %s95_s13 = int_to_ptr.vmem [resolvable:$true] %s94_s13 }
  0x11   :  { %s7606_s14 = scalar_lea.vmem %s73_s29, 4096  ;;  %p7611_p6 = scmp.lt.s32.totalorder %s73_s29, %s73_s29 }
  0x12   :  { %p7607_p5 = scmp.ne.s32.totalorder %s73_s29, %s7606_s14  ;;  %p7612_p7 = scmp.lt.s32.totalorder %s7606_s14, %s7606_s14 }
  0x14   :  { %p7613_p8 = por %p7612_p7, %p7611_p6 }
  0x16   :  { %p7614_p9 = pnand %p7613_p8, %p7607_p5 }
  0x18   :  { %7617 = shalt.err (!%p7614_p9)
}
  0x19   :  { %s7731_s15 = smov 256   ;;  %s7732_s16 = smov 16  }
  0x1a   :  { %78 = dma.hbm_to_vmem [thread:$0]  %s9527_s8, 4096, %s73_s29, [#allocation9], %s7731_s15, %s7731_s15, %s7732_s16  }
  0x1b   :  { %s7626_s5 = scalar_lea.vmem %s95_s13, 7168  ;;  %p7631_p11 = scmp.lt.s32.totalorder %s95_s13, %s95_s13 }
  0x1c   :  { %p7627_p10 = scmp.ne.s32.totalorder %s95_s13, %s7626_s5  ;;  %p7632_p12 = scmp.lt.s32.totalorder %s7626_s5, %s7626_s5 }
  0x1e   :  { %p7633_p13 = por %p7632_p12, %p7631_p11 }
  0x20   :  { %p7634_p0 = pnand %p7633_p13, %p7627_p10 }
  0x22   :  { %7637 = shalt.err (!%p7634_p0)
}
  0x23   :  { %100 = dma.hbm_to_vmem [thread:$0]  %s9529_s10, 7168, %s95_s13, [#allocation12], %s7727_s24, %s7727_s24, %s7728_s25  }
  0x24   :  { %s7733_s21 = smov [#allocation3]   ;;  %s7734_s23 = smov [#allocation7]  }
  0x25   :  { %s32_s22 = sshll.u32 %s7733_s21, 4  ;;  %s60_s26 = sshll.u32 %s7734_s23, 4  ;;  %s33_s22 = int_to_ptr.vmem [resolvable:$true] %s32_s22  ;;  %s61_s26 = int_to_ptr.vmem [resolvable:$true] %s60_s26 }
  0x26   :  { %s7646_s27 = scalar_lea.vmem %s33_s22, 4096  ;;  %p7651_p2 = scmp.lt.s32.totalorder %s33_s22, %s33_s22 }
  0x27   :  { %p7647_p1 = scmp.ne.s32.totalorder %s33_s22, %s7646_s27  ;;  %p7652_p3 = scmp.lt.s32.totalorder %s7646_s27, %s7646_s27 }
  0x29   :  { %p7653_p4 = por %p7652_p3, %p7651_p2 }
  0x2b   :  { %p7654_p5 = pnand %p7653_p4, %p7647_p1 }
  0x2d   :  { %7657 = shalt.err (!%p7654_p5)
}
  0x2e   :  { %38 = dma.hbm_to_vmem [thread:$0]  %s9522_s3, 4096, %s33_s22, [#allocation4], %s7731_s15, %s7731_s15, %s7732_s16  }
  0x2f   :  { %s7666_s10 = scalar_lea.vmem %s61_s26, 4096  ;;  %p7671_p7 = scmp.lt.s32.totalorder %s61_s26, %s61_s26 }
  0x30   :  { %p7667_p6 = scmp.ne.s32.totalorder %s61_s26, %s7666_s10  ;;  %p7672_p8 = scmp.lt.s32.totalorder %s7666_s10, %s7666_s10 }
  0x32   :  { %p7673_p9 = por %p7672_p8, %p7671_p7 }
  0x34   :  { %p7674_p10 = pnand %p7673_p9, %p7667_p6 }
  0x36   :  { %7677 = shalt.err (!%p7674_p10)
}
  0x37   :  { %66 = dma.hbm_to_vmem [thread:$0]  %s9526_s7, 4096, %s61_s26, [#allocation6], %s7731_s15, %s7731_s15, %s7732_s16  }
  0x38   :  { %s7735_s29 = smov [#allocation10]   ;;  %s7736_s13 = smov [#allocation13]  }
  0x39   :  { %s85_s30 = sshll.u32 %s7735_s29, 4  ;;  %s107_s3 = sshll.u32 %s7736_s13, 4  ;;  %s86_s30 = int_to_ptr.vmem [resolvable:$true] %s85_s30  ;;  %s108_s3 = int_to_ptr.vmem [resolvable:$true] %s107_s3 }
  0x3a   :  { %s7686_s14 = scalar_lea.vmem %s86_s30, 64  ;;  %p7691_p12 = scmp.lt.s32.totalorder %s86_s30, %s86_s30 }
  0x3b   :  { %p7687_p11 = scmp.ne.s32.totalorder %s86_s30, %s7686_s14  ;;  %p7692_p13 = scmp.lt.s32.totalorder %s7686_s14, %s7686_s14 }
  0x3d   :  { %p7693_p0 = por %p7692_p13, %p7691_p12 }
  0x3f   :  { %p7694_p1 = pnand %p7693_p0, %p7687_p11 }
  0x41   :  { %7697 = shalt.err (!%p7694_p1)
}
  0x42   :  { %88 = dma.hbm_to_vmem [thread:$0]  %s9528_s9, 64, %s86_s30, [#allocation9]  }
  0x43   :  { %s7706_s5 = scalar_lea.vmem %s108_s3, 16  ;;  %s7710_s7 = scalar_lea.vmem %s108_s3, 32 }
  0x44   :  { %p7707_p2 = scmp.ne.s32.totalorder %s108_s3, %s7706_s5  ;;  %p7711_p3 = scmp.lt.s32.totalorder %s108_s3, %s108_s3 }
  0x45   :  { %p7712_p4 = scmp.lt.s32.totalorder %s7710_s7, %s7706_s5 }
  0x47   :  { %p7713_p5 = por %p7712_p4, %p7711_p3 }
  0x49   :  { %p7714_p6 = pnand %p7713_p5, %p7707_p2 }
  0x4b   :  { %7717 = shalt.err (!%p7714_p6)
}
  0x4c   :  { %110 = dma.hbm_to_vmem [thread:$0]  %s9530_s11, 16, %s108_s3, [#allocation12]  }
  0x4d   :  { %7718 = dma.done.wait [#allocation4], 4096  }
  0x4e   :  { %7719 = vsyncadd [#allocation4], 4294963200 }
  0x4f   :  { %7720 = dma.done.wait [#allocation6], 11264  }
  0x50   :  { %7721 = vsyncadd [#allocation6], 4294956032 }
  0x51   :  { %7722 = dma.done.wait [#allocation9], 4160  }
  0x52   :  { %7723 = vsyncadd [#allocation9], 4294963136 }
  0x53   :  { %7724 = dma.done.wait [#allocation12], 7184  }
  0x54   :  { %7725 = vsyncadd [#allocation12], 4294960112  ;;  %v9536_v0 = vmov 0   ;;  %v6680_v1 = vld [vmem:[%s9521_s2 + $0x4] ss:$16 sps:$4 sm:$0xff]   ;;  %vm235_vm0 = vcmask 130048   ;;  %v155_v45 = vlaneseq }
  0x55   :  { %292 = vmatprep.mubr.bf16.mxu0 %v9536_v0  ;;  %405 = vmatprep.mubr.bf16.mxu1 %v9536_v0  ;;  %v6682_v2 = vld [vmem:[%s9521_s2 + $0xc] ss:$16 sps:$4 sm:$0xff]   ;;  %v6684_v3 = vld [vmem:[%s9521_s2] ss:$16 sps:$4 sm:$0xff]   ;;  %v6685_v4 = vld [vmem:[%s9521_s2 + $0x8] ss:$16 sps:$4 sm:$0xff]  }
  0x56   :  { %274 = vmatprep.subr.bf16.mxu0 %v6680_v1  ;;  %387 = vmatprep.subr.bf16.mxu1 %v6682_v2  ;;  %v6686_v5 = vld [vmem:[%s9519_s0] sm:$0xff]   ;;  %v7869_v11 = vld [vmem:[#allocation3 + $0xec] ss:$16 sps:$4 sm:$0xff]   ;;  %v7871_v12 = vld [vmem:[#allocation3 + $0xe8] ss:$16 sps:$4 sm:$0xff]   ;;  %v8031_v46 = vshrl.u32 %v155_v45, 7 }
  0x57   :  { %275 = vmatpush1.bf16.msra.mxu0 %v6684_v3  ;;  %388 = vmatpush1.bf16.msra.mxu1 %v6685_v4  ;;  %v7852_v6 = vld [vmem:[#allocation3 + $0xe4] ss:$16 sps:$4 sm:$0xff]   ;;  %v7854_v7 = vld [vmem:[#allocation3 + $0xe0] ss:$16 sps:$4 sm:$0xff]   ;;  %v6690_v13 = vld [vmem:[%s9519_s0 + $0x8] sm:$0xff]   ;;  %vm7739_vm1 = vmmov 0  }
  0x58   :  { %753 = vmatprep.subr.bf16.mxu0 %v7852_v6  ;;  %v7857_v8 = vld [vmem:[#allocation3 + $0xc4] ss:$16 sps:$4 sm:$0xff]   ;;  %v7863_v9 = vld [vmem:[#allocation3 + $0xc0] ss:$16 sps:$4 sm:$0xff]   ;;  %796 = vmatprep.subr.bf16.mxu1 %v7869_v11  ;;  %v7884_v16 = vld [vmem:[#allocation3 + $0xcc] ss:$16 sps:$4 sm:$0xff]  }
  0x59   :  { %v7867_v10 = vld [vmem:[#allocation3 + $0xa4] ss:$16 sps:$4 sm:$0xff]   ;;  %v7877_v14 = vld [vmem:[#allocation3 + $0xa0] ss:$16 sps:$4 sm:$0xff]   ;;  %v7886_v17 = vld [vmem:[#allocation3 + $0xc8] ss:$16 sps:$4 sm:$0xff]  }
  0x5a   :  { %5974 = vmatmul.mubr.msk.bf16.vlgmr.msra.gmra.mxu0 %vm235_vm0, %v6686_v5  ;;  %5982 = vmatmul.mubr.msk.bf16.vlgmr.msra.gmra.mxu1 %vm235_vm0, %v6686_v5  ;;  %v7882_v15 = vld [vmem:[#allocation3 + $0x84] ss:$16 sps:$4 sm:$0xff]   ;;  %v7892_v18 = vld [vmem:[#allocation3 + $0x80] ss:$16 sps:$4 sm:$0xff]   ;;  %v7898_v20 = vld [vmem:[#allocation3 + $0xac] ss:$16 sps:$4 sm:$0xff]  }
  0x5b   :  { %754 = vmatpush1.bf16.msra.mxu0 %v7854_v7  ;;  %302 = vmatprep.mubr.bf16.mxu0 %v9536_v0  ;;  %v7894_v19 = vld [vmem:[#allocation3 + $0x64] ss:$16 sps:$4 sm:$0xff]   ;;  %v7902_v21 = vld [vmem:[#allocation3 + $0xa8] ss:$16 sps:$4 sm:$0xff]   ;;  %v7909_v23 = vld [vmem:[#allocation3 + $0x60] ss:$16 sps:$4 sm:$0xff]  }
  0x5c   :  { %415 = vmatprep.mubr.bf16.mxu1 %v9536_v0  ;;  %755 = vmatprep.subr.bf16.mxu0 %v7857_v8  ;;  %v6694_v22 = vld [vmem:[%s9519_s0 + $0x10] sm:$0xff]   ;;  %v7913_v25 = vld [vmem:[#allocation3 + $0x8c] ss:$16 sps:$4 sm:$0xff]   ;;  %v7917_v26 = vld [vmem:[#allocation3 + $0x88] ss:$16 sps:$4 sm:$0xff]   ;;  %9542 = vst [vmem:[#allocation18_spill] sm:$0xff] %v8031_v46 }
  0x5d   :  { %797 = vmatpush1.bf16.msra.mxu1 %v7871_v12  ;;  %v7911_v24 = vld [vmem:[#allocation3 + $0x44] ss:$16 sps:$4 sm:$0xff]   ;;  %v7921_v27 = vld [vmem:[#allocation3 + $0x6c] ss:$16 sps:$4 sm:$0xff]   ;;  %v7927_v28 = vld [vmem:[#allocation3 + $0x40] ss:$16 sps:$4 sm:$0xff]  }
  0x5e   :  { %798 = vmatprep.subr.bf16.mxu1 %v7884_v16  ;;  %v6701_v29 = vld [vmem:[%s9519_s0 + $0x18] sm:$0xff]   ;;  %v7936_v31 = vld [vmem:[#allocation3 + $0x24] ss:$16 sps:$4 sm:$0xff]   ;;  %v7941_v33 = vld [vmem:[#allocation3 + $0x20] ss:$16 sps:$4 sm:$0xff]   ;;  %v9535_v51 = vsub.s32 0, %v8031_v46 }
  0x5f   :  { %756 = vmatpush1.bf16.msra.mxu0 %v7863_v9  ;;  %v7934_v30 = vld [vmem:[#allocation3 + $0x68] ss:$16 sps:$4 sm:$0xff]   ;;  %v7939_v32 = vld [vmem:[#allocation3 + $0x4c] ss:$16 sps:$4 sm:$0xff]   ;;  %v7948_v35 = vld [vmem:[#allocation3 + $0x4] ss:$16 sps:$4 sm:$0xff]  }
  0x60   :  { %757 = vmatprep.subr.bf16.mxu0 %v7867_v10  ;;  %v7944_v34 = vld [vmem:[#allocation3 + $0x48] ss:$16 sps:$4 sm:$0xff]   ;;  %v7952_v36 = vld [vmem:[#allocation3 + $0x2c] ss:$16 sps:$4 sm:$0xff]   ;;  %v7958_v38 = vld [vmem:[#allocation3] ss:$16 sps:$4 sm:$0xff]  }
  0x61   :  { %799 = vmatpush1.bf16.msra.mxu1 %v7886_v17  ;;  %v7956_v37 = vld [vmem:[#allocation3 + $0x28] ss:$16 sps:$4 sm:$0xff]   ;;  %v6708_v39 = vld [vmem:[%s9519_s0 + $0x20] sm:$0xff]   ;;  %v6738_v40 = vld [vmem:[#allocation3 + $0xc] ss:$16 sps:$4 sm:$0xff]   ;;  %v9534_v52 = vsub.s32 2, %v8031_v46 }
  0x62   :  { %5975 = vmatmul.mubr.msk.bf16.gmra.mxu0 %vm235_vm0, %v6690_v13  ;;  %5983 = vmatmul.mubr.msk.bf16.gmra.mxu1 %vm235_vm0, %v6690_v13  ;;  %v6741_v41 = vld [vmem:[#allocation3 + $0x8] ss:$16 sps:$4 sm:$0xff]   ;;  %v6722_v43 = vld [vmem:[%s9519_s0 + $0x30] sm:$0xff]   ;;  %v153_v53 = vld [vmem:[%s9523_s4] sm:$0xf]  ;;  %v9533_v56 = vsub.s32 1, %v8031_v46 }
  0x63   :  { %312 = vmatprep.mubr.bf16.mxu0 %v9536_v0  ;;  %425 = vmatprep.mubr.bf16.mxu1 %v9536_v0  ;;  %v6715_v42 = vld [vmem:[%s9519_s0 + $0x28] sm:$0xff]   ;;  %v6732_v44 = vld [vmem:[%s9519_s0 + $0x38] sm:$0xff]   ;;  %v9532_v57 = vsub.s32 3, %v8031_v46  ;;  %v8058_v60 = vrot.slane %v153_v53, %v9535_v51  ;;  %v8062_v61 = vrot.slane %v153_v53, %v9534_v52 }
  0x64   :  { %758 = vmatpush1.bf16.msra.mxu0 %v7877_v14  ;;  %800 = vmatprep.subr.bf16.mxu1 %v7898_v20  ;;  %v8066_v1 = vrot.slane %v153_v53, %v9533_v56 }
  0x65   :  { %759 = vmatprep.subr.bf16.mxu0 %v7882_v15  ;;  %801 = vmatpush1.bf16.msra.mxu1 %v7902_v21  ;;  %v8070_v2 = vrot.slane %v153_v53, %v9532_v57 }
  0x66   :  { %802 = vmatprep.subr.bf16.mxu1 %v7913_v25 }
  0x68   :  { %760 = vmatpush1.bf16.msra.mxu0 %v7892_v18 }
  0x69   :  { %761 = vmatprep.subr.bf16.mxu0 %v7894_v19  ;;  %803 = vmatpush1.bf16.msra.mxu1 %v7917_v26 }
  0x6a   :  { %5976 = vmatmul.mubr.msk.bf16.gmra.mxu0 %vm235_vm0, %v6694_v22  ;;  %5984 = vmatmul.mubr.msk.bf16.gmra.mxu1 %vm235_vm0, %v6694_v22 }
  0x6b   :  { %322 = vmatprep.mubr.bf16.mxu0 %v9536_v0  ;;  %435 = vmatprep.mubr.bf16.mxu1 %v9536_v0 }
  0x6c   :  { %762 = vmatpush1.bf16.msra.mxu0 %v7909_v23  ;;  %804 = vmatprep.subr.bf16.mxu1 %v7921_v27 }
  0x6d   :  { %763 = vmatprep.subr.bf16.mxu0 %v7911_v24  ;;  %805 = vmatpush1.bf16.msra.mxu1 %v7934_v30 }
  0x6e   :  { %806 = vmatprep.subr.bf16.mxu1 %v7939_v32 }
  0x70   :  { %764 = vmatpush1.bf16.msra.mxu0 %v7927_v28 }
  0x71   :  { %765 = vmatprep.subr.bf16.mxu0 %v7936_v31  ;;  %807 = vmatpush1.bf16.msra.mxu1 %v7944_v34 }
  0x72   :  { %5977 = vmatmul.mubr.msk.bf16.gmra.mxu0 %vm235_vm0, %v6701_v29  ;;  %5985 = vmatmul.mubr.msk.bf16.gmra.mxu1 %vm235_vm0, %v6701_v29 }
  0x73   :  { %332 = vmatprep.mubr.bf16.mxu0 %v9536_v0  ;;  %445 = vmatprep.mubr.bf16.mxu1 %v9536_v0 }
  0x74   :  { %766 = vmatpush1.bf16.msra.mxu0 %v7941_v33  ;;  %808 = vmatprep.subr.bf16.mxu1 %v7952_v36 }
  0x75   :  { %767 = vmatprep.subr.bf16.mxu0 %v7948_v35  ;;  %809 = vmatpush1.bf16.msra.mxu1 %v7956_v37 }
  0x76   :  { %810 = vmatprep.subr.bf16.mxu1 %v6738_v40 }
  0x78   :  { %768 = vmatpush1.bf16.msra.mxu0 %v7958_v38 }
  0x79   :  { %907 = vmatprep.subr.bf16.mxu0 %v7852_v6  ;;  %811 = vmatpush1.bf16.msra.mxu1 %v6741_v41 }
  0x7a   :  { %5978 = vmatmul.mubr.msk.bf16.gmra.mxu0 %vm235_vm0, %v6708_v39  ;;  %5986 = vmatmul.mubr.msk.bf16.gmra.mxu1 %vm235_vm0, %v6708_v39 }
  0x7b   :  { %342 = vmatprep.mubr.bf16.mxu0 %v9536_v0  ;;  %455 = vmatprep.mubr.bf16.mxu1 %v9536_v0 }
  0x7c   :  { %950 = vmatprep.subr.bf16.mxu1 %v7869_v11 }
  0x82   :  { %5979 = vmatmul.mubr.msk.bf16.gmra.mxu0 %vm235_vm0, %v6715_v42  ;;  %5987 = vmatmul.mubr.msk.bf16.gmra.mxu1 %vm235_vm0, %v6715_v42 }
  0x83   :  { %352 = vmatprep.mubr.bf16.mxu0 %v9536_v0  ;;  %465 = vmatprep.mubr.bf16.mxu1 %v9536_v0 }
  0x8a   :  { %5980 = vmatmul.mubr.msk.bf16.gmra.mxu0 %vm235_vm0, %v6722_v43  ;;  %5988 = vmatmul.mubr.msk.bf16.gmra.mxu1 %vm235_vm0, %v6722_v43 }
  0x8b   :  { %362 = vmatprep.mubr.bf16.mxu0 %v9536_v0  ;;  %475 = vmatprep.mubr.bf16.mxu1 %v9536_v0 }
  0x92   :  { %5981 = vmatmul.mubr.msk.bf16.gmra.mxu0 %vm235_vm0, %v6732_v44  ;;  %5989 = vmatmul.mubr.msk.bf16.gmra.mxu1 %vm235_vm0, %v6732_v44 }
  0x93   :  { %785 = vmatprep.mubr.bf16.mxu0 %v9536_v0  ;;  %828 = vmatprep.mubr.bf16.mxu1 %v9536_v0 }
  0x9a   :  { %786 = vmatmul.mubr.bf16.vlgmr.msra.gmra.mxu0 %v9536_v0  ;;  %829 = vmatmul.mubr.bf16.vlgmr.msra.gmra.mxu1 %v9536_v0 }
  0x9b   :  { %908 = vmatpush1.bf16.msra.mxu0 %v7854_v7  ;;  %951 = vmatpush1.bf16.msra.mxu1 %v7871_v12 }
  0x9c   :  { %909 = vmatprep.subr.bf16.mxu0 %v7857_v8  ;;  %952 = vmatprep.subr.bf16.mxu1 %v7884_v16 }
  0x9d   :  { %939 = vmatprep.mubr.bf16.mxu0 %v9536_v0  ;;  %982 = vmatprep.mubr.bf16.mxu1 %v9536_v0 }
  0x9f   :  { %910 = vmatpush1.bf16.msra.mxu0 %v7863_v9  ;;  %953 = vmatpush1.bf16.msra.mxu1 %v7886_v17 }
  0xa0   :  { %911 = vmatprep.subr.bf16.mxu0 %v7867_v10  ;;  %954 = vmatprep.subr.bf16.mxu1 %v7898_v20 }
  0xa3   :  { %912 = vmatpush1.bf16.msra.mxu0 %v7877_v14  ;;  %955 = vmatpush1.bf16.msra.mxu1 %v7902_v21 }
  0xa4   :  { %913 = vmatprep.subr.bf16.mxu0 %v7882_v15  ;;  %956 = vmatprep.subr.bf16.mxu1 %v7913_v25 }
  0xa7   :  { %914 = vmatpush1.bf16.msra.mxu0 %v7892_v18  ;;  %957 = vmatpush1.bf16.msra.mxu1 %v7917_v26 }
  0xa8   :  { %915 = vmatprep.subr.bf16.mxu0 %v7894_v19  ;;  %958 = vmatprep.subr.bf16.mxu1 %v7921_v27 }
  0xab   :  { %916 = vmatpush1.bf16.msra.mxu0 %v7909_v23  ;;  %959 = vmatpush1.bf16.msra.mxu1 %v7934_v30 }
  0xac   :  { %917 = vmatprep.subr.bf16.mxu0 %v7911_v24  ;;  %960 = vmatprep.subr.bf16.mxu1 %v7939_v32 }
  0xaf   :  { %918 = vmatpush1.bf16.msra.mxu0 %v7927_v28  ;;  %961 = vmatpush1.bf16.msra.mxu1 %v7944_v34 }
  0xb0   :  { %919 = vmatprep.subr.bf16.mxu0 %v7936_v31  ;;  %962 = vmatprep.subr.bf16.mxu1 %v7952_v36 }
  0xb3   :  { %920 = vmatpush1.bf16.msra.mxu0 %v7941_v33  ;;  %963 = vmatpush1.bf16.msra.mxu1 %v7956_v37 }
  0xb4   :  { %921 = vmatprep.subr.bf16.mxu0 %v7948_v35  ;;  %964 = vmatprep.subr.bf16.mxu1 %v6738_v40 }
  0xb7   :  { %922 = vmatpush1.bf16.msra.mxu0 %v7958_v38  ;;  %965 = vmatpush1.bf16.msra.mxu1 %v6741_v41 }
  0xb8   :  { %1061 = vmatprep.subr.bf16.mxu0 %v7852_v6  ;;  %1104 = vmatprep.subr.bf16.mxu1 %v7869_v11 }
 0x11a   :  { %v8033_v47 = vpop.f32.mrf.mxu0  ;;  %v8035_v48 = vpop.f32.mrf.mxu1 }
 0x11c   :  { %v8037_v49 = vpop.f32.mrf.mxu0  ;;  %v8039_v50 = vpop.f32.mrf.mxu1 }
 0x11e   :  { %v8046_v54 = vpop.f32.mrf.mxu0  ;;  %v8048_v55 = vpop.f32.mrf.mxu1 }
 0x120   :  { %v8052_v58 = vpop.f32.mrf.mxu0  ;;  %v8054_v59 = vpop.f32.mrf.mxu1 }
 0x122   :  { %v304_v62 = vpop.f32.mrf.mxu0  ;;  %v417_v63 = vpop.f32.mrf.mxu1 }
 0x123   :  { %v8073_v3 = vadd.f32 %v304_v62, %v8058_v60  ;;  %v8076_v4 = vadd.f32 %v417_v63, %v8062_v61 }
 0x124   :  { %v306_v5 = vpop.f32.mrf.mxu0  ;;  %v419_v6 = vpop.f32.mrf.mxu1 }
 0x125   :  { %v8079_v7 = vadd.f32 %v306_v5, %v8066_v1  ;;  %v8082_v8 = vadd.f32 %v419_v6, %v8070_v2 }
 0x126   :  { %v308_v9 = vpop.f32.mrf.mxu0  ;;  %v421_v10 = vpop.f32.mrf.mxu1 }
 0x127   :  { %v8085_v11 = vadd.f32 %v308_v9, %v8058_v60  ;;  %v8088_v12 = vadd.f32 %v421_v10, %v8062_v61 }
 0x128   :  { %v8090_v13 = vpop.f32.mrf.mxu0  ;;  %v8092_v14 = vpop.f32.mrf.mxu1 }
 0x12a   :  { %v314_v15 = vpop.f32.mrf.mxu0  ;;  %v427_v16 = vpop.f32.mrf.mxu1 }
 0x12b   :  { %v8095_v17 = vadd.f32 %v314_v15, %v8058_v60  ;;  %v8098_v18 = vadd.f32 %v427_v16, %v8062_v61 }
 0x12c   :  { %v316_v19 = vpop.f32.mrf.mxu0  ;;  %v429_v20 = vpop.f32.mrf.mxu1 }
 0x12d   :  { %9543 = vst [vmem:[#allocation19_spill] sm:$0xff] %v8098_v18  ;;  %v8101_v21 = vadd.f32 %v316_v19, %v8066_v1  ;;  %v8104_v22 = vadd.f32 %v429_v20, %v8070_v2 }
 0x12e   :  { %v318_v23 = vpop.f32.mrf.mxu0  ;;  %v431_v24 = vpop.f32.mrf.mxu1 }
 0x12f   :  { %9544 = vst [vmem:[#allocation20_spill] sm:$0xff] %v8104_v22  ;;  %v8107_v25 = vadd.f32 %v318_v23, %v8058_v60  ;;  %v8110_v26 = vadd.f32 %v431_v24, %v8062_v61 }
 0x130   :  { %v8112_v27 = vpop.f32.mrf.mxu0  ;;  %v8114_v28 = vpop.f32.mrf.mxu1 }
 0x131   :  { %9545 = vst [vmem:[#allocation21_spill] sm:$0xff] %v8110_v26  ;;  %9546 = vst [vmem:[#allocation22_spill] sm:$0xff] %v8114_v28 }
 0x132   :  { %v324_v29 = vpop.f32.mrf.mxu0  ;;  %v437_v30 = vpop.f32.mrf.mxu1 }
 0x133   :  { %v8117_v31 = vadd.f32 %v324_v29, %v8058_v60  ;;  %v8120_v32 = vadd.f32 %v437_v30, %v8062_v61 }
 0x134   :  { %v326_v33 = vpop.f32.mrf.mxu0  ;;  %v439_v34 = vpop.f32.mrf.mxu1 }
 0x135   :  { %9547 = vst [vmem:[#allocation23_spill] sm:$0xff] %v8117_v31  ;;  %9548 = vst [vmem:[#allocation24_spill] sm:$0xff] %v8120_v32  ;;  %v8123_v35 = vadd.f32 %v326_v33, %v8066_v1  ;;  %v8126_v36 = vadd.f32 %v439_v34, %v8070_v2 }
 0x136   :  { %v328_v37 = vpop.f32.mrf.mxu0  ;;  %v441_v38 = vpop.f32.mrf.mxu1 }
 0x137   :  { %9549 = vst [vmem:[#allocation25_spill] sm:$0xff] %v8123_v35  ;;  %9550 = vst [vmem:[#allocation26_spill] sm:$0xff] %v8126_v36  ;;  %v8129_v39 = vadd.f32 %v328_v37, %v8058_v60  ;;  %v8132_v40 = vadd.f32 %v441_v38, %v8062_v61 }
 0x138   :  { %v8134_v41 = vpop.f32.mrf.mxu0  ;;  %v8136_v42 = vpop.f32.mrf.mxu1 }
 0x139   :  { %9551 = vst [vmem:[#allocation27_spill] sm:$0xff] %v8129_v39  ;;  %9552 = vst [vmem:[#allocation28_spill] sm:$0xff] %v8132_v40  ;;  %v311_v39 = vadd.f32 %v8090_v13, %v8066_v1 }
 0x13a   :  { %9553 = vst [vmem:[#allocation29_spill] sm:$0xff] %v8134_v41  ;;  %9554 = vst [vmem:[#allocation30_spill] sm:$0xff] %v8136_v42  ;;  %v334_v43 = vpop.f32.mrf.mxu0  ;;  %v447_v44 = vpop.f32.mrf.mxu1 }
 0x13b   :  { %v8139_v45 = vadd.f32 %v334_v43, %v8058_v60  ;;  %v8142_v53 = vadd.f32 %v447_v44, %v8062_v61 }
 0x13c   :  { %v336_v62 = vpop.f32.mrf.mxu0  ;;  %v449_v63 = vpop.f32.mrf.mxu1 }
 0x13d   :  { %9555 = vst [vmem:[#allocation31_spill] sm:$0xff] %v8139_v45  ;;  %9556 = vst [vmem:[#allocation32_spill] sm:$0xff] %v8142_v53  ;;  %v8145_v5 = vadd.f32 %v336_v62, %v8066_v1  ;;  %v8148_v6 = vadd.f32 %v449_v63, %v8070_v2  ;;  %v8334_v53 = vld [vmem:[#allocation3] ss:$16 sps:$4 sm:$0xff]  }
 0x13e   :  { %v338_v9 = vpop.f32.mrf.mxu0  ;;  %v451_v10 = vpop.f32.mrf.mxu1 }
 0x13f   :  { %9557 = vst [vmem:[#allocation33_spill] sm:$0xff] %v8145_v5  ;;  %9558 = vst [vmem:[#allocation34_spill] sm:$0xff] %v8148_v6  ;;  %v8151_v15 = vadd.f32 %v338_v9, %v8058_v60  ;;  %v8154_v16 = vadd.f32 %v451_v10, %v8062_v61  ;;  %v8340_v6 = vld [vmem:[#allocation3 + $0xe4] ss:$16 sps:$4 sm:$0xff]  }
 0x140   :  { %v8156_v19 = vpop.f32.mrf.mxu0  ;;  %v8158_v20 = vpop.f32.mrf.mxu1 }
 0x141   :  { %9559 = vst [vmem:[#allocation35_spill] sm:$0xff] %v8151_v15  ;;  %9560 = vst [vmem:[#allocation36_spill] sm:$0xff] %v8154_v16  ;;  %v8331_v16 = vld [vmem:[#allocation3 + $0xc] ss:$16 sps:$4 sm:$0xff]  }
 0x142   :  { %9561 = vst [vmem:[#allocation37_spill] sm:$0xff] %v8156_v19  ;;  %9562 = vst [vmem:[#allocation38_spill] sm:$0xff] %v8158_v20  ;;  %v344_v23 = vpop.f32.mrf.mxu0  ;;  %v457_v24 = vpop.f32.mrf.mxu1  ;;  %v8337_v20 = vld [vmem:[#allocation3 + $0x8] ss:$16 sps:$4 sm:$0xff]   ;;  %v8343_v15 = vld [vmem:[#allocation3 + $0xec] ss:$16 sps:$4 sm:$0xff]  }
 0x143   :  { %v8161_v29 = vadd.f32 %v344_v23, %v8058_v60  ;;  %v8164_v30 = vadd.f32 %v457_v24, %v8062_v61 }
 0x144   :  { %v346_v33 = vpop.f32.mrf.mxu0  ;;  %v459_v34 = vpop.f32.mrf.mxu1 }
 0x145   :  { %9563 = vst [vmem:[#allocation39_spill] sm:$0xff] %v8161_v29  ;;  %9564 = vst [vmem:[#allocation40_spill] sm:$0xff] %v8164_v30  ;;  %v8167_v37 = vadd.f32 %v346_v33, %v8066_v1  ;;  %v8170_v38 = vadd.f32 %v459_v34, %v8070_v2  ;;  %v8328_v29 = vld [vmem:[#allocation3 + $0x4] ss:$16 sps:$4 sm:$0xff]  }
 0x146   :  { %v348_v43 = vpop.f32.mrf.mxu0  ;;  %v461_v44 = vpop.f32.mrf.mxu1 }
 0x147   :  { %9565 = vst [vmem:[#allocation41_spill] sm:$0xff] %v8167_v37  ;;  %9566 = vst [vmem:[#allocation42_spill] sm:$0xff] %v8170_v38  ;;  %v8173_v62 = vadd.f32 %v348_v43, %v8058_v60  ;;  %v8176_v63 = vadd.f32 %v461_v44, %v8062_v61  ;;  %v8316_v38 = vld [vmem:[#allocation3 + $0x24] ss:$16 sps:$4 sm:$0xff]   ;;  %v8325_v37 = vld [vmem:[#allocation3 + $0x28] ss:$16 sps:$4 sm:$0xff]  }
 0x148   :  { %v8178_v9 = vpop.f32.mrf.mxu0  ;;  %v8180_v10 = vpop.f32.mrf.mxu1 }
 0x149   :  { %9567 = vst [vmem:[#allocation43_spill] sm:$0xff] %v8173_v62  ;;  %9568 = vst [vmem:[#allocation44_spill] sm:$0xff] %v8176_v63  ;;  %v8319_v62 = vld [vmem:[#allocation3 + $0x2c] ss:$16 sps:$4 sm:$0xff]  }
 0x14a   :  { %9569 = vst [vmem:[#allocation45_spill] sm:$0xff] %v8178_v9  ;;  %9570 = vst [vmem:[#allocation46_spill] sm:$0xff] %v8180_v10  ;;  %v354_v23 = vpop.f32.mrf.mxu0  ;;  %v467_v24 = vpop.f32.mrf.mxu1  ;;  %v8322_v9 = vld [vmem:[#allocation3 + $0x20] ss:$16 sps:$4 sm:$0xff]  }
 0x14b   :  { %v8183_v33 = vadd.f32 %v354_v23, %v8058_v60  ;;  %v8186_v34 = vadd.f32 %v467_v24, %v8062_v61 }
 0x14c   :  { %v356_v57 = vpop.f32.mrf.mxu0  ;;  %v469_v56 = vpop.f32.mrf.mxu1 }
 0x14d   :  { %9571 = vst [vmem:[#allocation47_spill] sm:$0xff] %v8183_v33  ;;  %9572 = vst [vmem:[#allocation48_spill] sm:$0xff] %v8186_v34  ;;  %v8189_v43 = vadd.f32 %v356_v57, %v8066_v1  ;;  %v8192_v44 = vadd.f32 %v469_v56, %v8070_v2 }
 0x14e   :  { %v358_v52 = vpop.f32.mrf.mxu0  ;;  %v471_v51 = vpop.f32.mrf.mxu1 }
 0x14f   :  { %9573 = vst [vmem:[#allocation49_spill] sm:$0xff] %v8189_v43  ;;  %9574 = vst [vmem:[#allocation50_spill] sm:$0xff] %v8192_v44  ;;  %v8195_v0 = vadd.f32 %v358_v52, %v8058_v60  ;;  %v8198_v46 = vadd.f32 %v471_v51, %v8062_v61 }
 0x150   :  { %v8200_v23 = vpop.f32.mrf.mxu0  ;;  %v8202_v24 = vpop.f32.mrf.mxu1 }
 0x151   :  { %9575 = vst [vmem:[#allocation51_spill] sm:$0xff] %v8195_v0  ;;  %9576 = vst [vmem:[#allocation52_spill] sm:$0xff] %v8198_v46 }
 0x152   :  { %9577 = vst [vmem:[#allocation53_spill] sm:$0xff] %v8200_v23  ;;  %9578 = vst [vmem:[#allocation54_spill] sm:$0xff] %v8202_v24  ;;  %v364_v34 = vpop.f32.mrf.mxu0  ;;  %v477_v33 = vpop.f32.mrf.mxu1 }
 0x153   :  { %v8205_v57 = vadd.f32 %v364_v34, %v8058_v60  ;;  %v8208_v56 = vadd.f32 %v477_v33, %v8062_v61 }
 0x154   :  { %v366_v44 = vpop.f32.mrf.mxu0  ;;  %v479_v43 = vpop.f32.mrf.mxu1 }
 0x155   :  { %9579 = vst [vmem:[#allocation55_spill] sm:$0xff] %v8205_v57  ;;  %9580 = vst [vmem:[#allocation56_spill] sm:$0xff] %v8208_v56  ;;  %v8211_v52 = vadd.f32 %v366_v44, %v8066_v1  ;;  %v8214_v51 = vadd.f32 %v479_v43, %v8070_v2  ;;  %v295_v56 = vadd.f32 %v8033_v47, %v8058_v60 }
 0x156   :  { %v368_v46 = vpop.f32.mrf.mxu0  ;;  %v481_v0 = vpop.f32.mrf.mxu1  ;;  %v297_v43 = vadd.f32 %v8037_v49, %v8066_v1 }
 0x157   :  { %9581 = vst [vmem:[#allocation57_spill] sm:$0xff] %v8211_v52  ;;  %9582 = vst [vmem:[#allocation58_spill] sm:$0xff] %v8214_v51  ;;  %v8217_v24 = vadd.f32 %v368_v46, %v8058_v60  ;;  %v8220_v23 = vadd.f32 %v481_v0, %v8062_v61  ;;  %v299_v46 = vadd.f32 %v8046_v54, %v8058_v60 }
 0x158   :  { %v8222_v34 = vpop.f32.mrf.mxu0  ;;  %v8224_v33 = vpop.f32.mrf.mxu1  ;;  %v410_v54 = vadd.f32 %v8039_v50, %v8070_v2 }
 0x159   :  { %9583 = vst [vmem:[#allocation59_spill] sm:$0xff] %v8217_v24  ;;  %9584 = vst [vmem:[#allocation60_spill] sm:$0xff] %v8220_v23 }
 0x15a   :  { %9585 = vst [vmem:[#allocation61_spill] sm:$0xff] %v8222_v34  ;;  %9586 = vst [vmem:[#allocation62_spill] sm:$0xff] %v8224_v33  ;;  %v787_v44 = vpop.f32.mrf.mxu0  ;;  %v830_v52 = vpop.f32.mrf.mxu1  ;;  %v301_v34 = vadd.f32 %v8052_v58, %v8066_v1 }
 0x15b   :  { %v839_v51 = vadd.f32 %v787_v44, %v295_v56 }
 0x15c   :  { %v789_v57 = vpop.f32.mrf.mxu0  ;;  %v832_v63 = vpop.f32.mrf.mxu1 }
 0x15d   :  { %v6022_v24 = vmul.f32 -1.442695, %v839_v51  ;;  %v840_v0 = vadd.f32 %v789_v57, %v297_v43  ;;  %v842_v60 = vadd.f32 %v832_v63, %v410_v54  ;;  %v408_v57 = vadd.f32 %v8035_v48, %v8062_v61 }
 0x15e   :  { %v791_v23 = vpop.f32.mrf.mxu0  ;;  %v834_v56 = vpop.f32.mrf.mxu1  ;;  %v412_v51 = vadd.f32 %v8048_v55, %v8062_v61 }
 0x15f   :  { %6964 = vpow2.f32 %v6022_v24  ;;  %v6024_v33 = vmul.f32 -1.442695, %v840_v0  ;;  %v843_v47 = vadd.f32 %v791_v23, %v299_v46  ;;  %v414_v24 = vadd.f32 %v8054_v59, %v8070_v2 }
 0x160   :  { %v793_v30 = vpop.f32.mrf.mxu0  ;;  %v836_v58 = vpop.f32.mrf.mxu1  ;;  %v841_v23 = vadd.f32 %v830_v52, %v408_v57 }
 0x161   :  { %6966 = vpow2.f32 %v6024_v33  ;;  %v6023_v10 = vmul.f32 -1.442695, %v843_v47  ;;  %v844_v49 = vadd.f32 %v793_v30, %v301_v34  ;;  %v6026_v30 = vmul.f32 -1.442695, %v842_v60 }
 0x162   :  { %v845_v33 = vadd.f32 %v834_v56, %v412_v51 }
 0x163   :  { %6968 = vpow2.f32 %v6023_v10  ;;  %v6025_v44 = vmul.f32 -1.442695, %v844_v49  ;;  %v846_v10 = vadd.f32 %v836_v58, %v414_v24 }
 0x165   :  { %6970 = vpow2.f32 %v6025_v44  ;;  %v6027_v63 = vmul.f32 -1.442695, %v846_v10 }
 0x166   :  { %6972 = vtanh.f32 %v841_v23 }
 0x167   :  { %6974 = vpow2.f32 %v6026_v30 }
 0x16c   :  { %v6965_v34 = vpop.eup %6964 }
 0x16d   :  { %v853_v43 = vadd.f32 1.0, %v6965_v34 }
 0x16e   :  { %v6967_v50 = vpop.eup %6966 }
 0x16f   :  { %6976 = vrcp.f32 %v853_v43  ;;  %v865_v46 = vadd.f32 1.0, %v6967_v50 }
 0x170   :  { %v6969_v48 = vpop.eup %6968  ;;  %6978 = vtanh.f32 %v845_v33 }
 0x171   :  { %6980 = vrcp.f32 %v865_v46  ;;  %v854_v0 = vadd.f32 1.0, %v6969_v48 }
 0x172   :  { %v6971_v59 = vpop.eup %6970  ;;  %6982 = vpow2.f32 %v6027_v63 }
 0x173   :  { %6984 = vrcp.f32 %v854_v0  ;;  %v866_v52 = vadd.f32 1.0, %v6971_v59  ;;  %v6973_v55 = vpop.eup %6972  ;;  %v8248_v59 = vld [vmem:[#allocation3 + $0xe0] ss:$16 sps:$4 sm:$0xff]  }
 0x174   :  { %v6975_v61 = vpop.eup %6974 }
 0x175   :  { %6986 = vrcp.f32 %v866_v52  ;;  %v879_v58 = vadd.f32 1.0, %v6975_v61  ;;  %v8251_v52 = vld [vmem:[#allocation3 + $0xe8] ss:$16 sps:$4 sm:$0xff]   ;;  %v8257_v61 = vld [vmem:[#allocation3 + $0xcc] ss:$16 sps:$4 sm:$0xff]  }
 0x177   :  { %6988 = vrcp.f32 %v879_v58  ;;  %v8280_v58 = vld [vmem:[#allocation3 + $0x84] ss:$16 sps:$4 sm:$0xff]  }
 0x17c   :  { %v6977_v47 = vpop.eup %6976 }
 0x17d   :  { %v6979_v49 = vpop.eup %6978  ;;  %v887_v56 = vmul.f32 %v6977_v47, %v6973_v55  ;;  %v8254_v55 = vld [vmem:[#allocation3 + $0xc4] ss:$16 sps:$4 sm:$0xff]   ;;  %v9587_v47 = vmov 0  }
 0x17e   :  { %v6981_v44 = vpop.eup %6980 }
 0x17f   :  { %v6983_v54 = vpop.eup %6982  ;;  %v885_v60 = vmul.f32 0.0, %v6981_v44  ;;  %v8268_v44 = vld [vmem:[#allocation3 + $0xa4] ss:$16 sps:$4 sm:$0xff]  }
 0x180   :  { %v6985_v57 = vpop.eup %6984  ;;  %v880_v30 = vadd.f32 1.0, %v6983_v54  ;;  %v8271_v54 = vld [vmem:[#allocation3 + $0xac] ss:$16 sps:$4 sm:$0xff]  }
 0x181   :  { %v8242_v24 = vadd.f32 %v887_v56, %v885_v60  ;;  %v888_v23 = vmul.f32 %v6985_v57, %v6979_v49  ;;  %v8262_v49 = vld [vmem:[#allocation3 + $0xc0] ss:$16 sps:$4 sm:$0xff]   ;;  %v8265_v56 = vld [vmem:[#allocation3 + $0xc8] ss:$16 sps:$4 sm:$0xff]  }
 0x182   :  { %v6987_v51 = vpop.eup %6986  ;;  %v8274_v60 = vld [vmem:[#allocation3 + $0xa0] ss:$16 sps:$4 sm:$0xff]   ;;  %v8277_v57 = vld [vmem:[#allocation3 + $0xa8] ss:$16 sps:$4 sm:$0xff]  }
 0x183   :  { %v886_v10 = vmul.f32 0.0, %v6987_v51  ;;  %6990 = vtanh.f32 %v8242_v24  ;;  %v8286_v51 = vld [vmem:[#allocation3 + $0x80] ss:$16 sps:$4 sm:$0xff]  }
 0x184   :  { %6992 = vrcp.f32 %v880_v30  ;;  %v6989_v33 = vpop.eup %6988  ;;  %v8289_v30 = vld [vmem:[#allocation3 + $0x88] ss:$16 sps:$4 sm:$0xff]  }
 0x185   :  { %v8245_v34 = vadd.f32 %v888_v23, %v886_v10  ;;  %v8283_v23 = vld [vmem:[#allocation3 + $0x8c] ss:$16 sps:$4 sm:$0xff]   ;;  %v8292_v10 = vld [vmem:[#allocation3 + $0x64] ss:$16 sps:$4 sm:$0xff]  }
 0x187   :  { %6994 = vtanh.f32 %v8245_v34 }
 0x190   :  { %v6991_v43 = vpop.eup %6990 }
 0x191   :  { %v6993_v50 = vpop.eup %6992  ;;  %v893_v46 = vmul.f32 %v6991_v43, %v6989_v33  ;;  %v8295_v33 = vld [vmem:[#allocation3 + $0x6c] ss:$16 sps:$4 sm:$0xff]   ;;  %v8298_v43 = vld [vmem:[#allocation3 + $0x60] ss:$16 sps:$4 sm:$0xff]  }
 0x194   :  { %v6995_v63 = vpop.eup %6994 }
 0x195   :  { %v894_v48 = vmul.f32 %v6995_v63, %v6993_v50  ;;  %v8301_v50 = vld [vmem:[#allocation3 + $0x68] ss:$16 sps:$4 sm:$0xff]   ;;  %v8304_v63 = vld [vmem:[#allocation3 + $0x44] ss:$16 sps:$4 sm:$0xff]  }
 0x197   :  { %v895_v0 = vpack.c.bf16 %v894_v48, %v893_v46  ;;  %v8307_v46 = vld [vmem:[#allocation3 + $0x4c] ss:$16 sps:$4 sm:$0xff]   ;;  %v8310_v48 = vld [vmem:[#allocation3 + $0x40] ss:$16 sps:$4 sm:$0xff]  }
 0x199   :  { %940 = vmatmul.mubr.bf16.vlgmr.msra.gmra.mxu0 %v895_v0  ;;  %983 = vmatmul.mubr.bf16.vlgmr.msra.gmra.mxu1 %v895_v0  ;;  %v8313_v0 = vld [vmem:[#allocation3 + $0x48] ss:$16 sps:$4 sm:$0xff]  }
 0x19a   :  { %1062 = vmatpush1.bf16.msra.mxu0 %v8248_v59  ;;  %1105 = vmatpush1.bf16.msra.mxu1 %v8251_v52 }
 0x19b   :  { %1063 = vmatprep.subr.bf16.mxu0 %v8254_v55  ;;  %1106 = vmatprep.subr.bf16.mxu1 %v8257_v61 }
 0x19c   :  { %1093 = vmatprep.mubr.bf16.mxu0 %v9587_v47  ;;  %1136 = vmatprep.mubr.bf16.mxu1 %v9587_v47 }
 0x19e   :  { %1064 = vmatpush1.bf16.msra.mxu0 %v8262_v49  ;;  %1107 = vmatpush1.bf16.msra.mxu1 %v8265_v56 }
 0x19f   :  { %1065 = vmatprep.subr.bf16.mxu0 %v8268_v44  ;;  %1108 = vmatprep.subr.bf16.mxu1 %v8271_v54 }
 0x1a2   :  { %1066 = vmatpush1.bf16.msra.mxu0 %v8274_v60  ;;  %1109 = vmatpush1.bf16.msra.mxu1 %v8277_v57 }
 0x1a3   :  { %1067 = vmatprep.subr.bf16.mxu0 %v8280_v58  ;;  %1110 = vmatprep.subr.bf16.mxu1 %v8283_v23 }
 0x1a6   :  { %1068 = vmatpush1.bf16.msra.mxu0 %v8286_v51  ;;  %1111 = vmatpush1.bf16.msra.mxu1 %v8289_v30 }
 0x1a7   :  { %1069 = vmatprep.subr.bf16.mxu0 %v8292_v10  ;;  %1112 = vmatprep.subr.bf16.mxu1 %v8295_v33 }
 0x1aa   :  { %1070 = vmatpush1.bf16.msra.mxu0 %v8298_v43  ;;  %1113 = vmatpush1.bf16.msra.mxu1 %v8301_v50 }
 0x1ab   :  { %1071 = vmatprep.subr.bf16.mxu0 %v8304_v63  ;;  %1114 = vmatprep.subr.bf16.mxu1 %v8307_v46 }
 0x1ae   :  { %1072 = vmatpush1.bf16.msra.mxu0 %v8310_v48  ;;  %1115 = vmatpush1.bf16.msra.mxu1 %v8313_v0 }
 0x1af   :  { %1073 = vmatprep.subr.bf16.mxu0 %v8316_v38  ;;  %1116 = vmatprep.subr.bf16.mxu1 %v8319_v62 }
 0x1b2   :  { %1074 = vmatpush1.bf16.msra.mxu0 %v8322_v9  ;;  %1117 = vmatpush1.bf16.msra.mxu1 %v8325_v37 }
 0x1b3   :  { %1075 = vmatprep.subr.bf16.mxu0 %v8328_v29  ;;  %1118 = vmatprep.subr.bf16.mxu1 %v8331_v16 }
 0x1b6   :  { %1076 = vmatpush1.bf16.msra.mxu0 %v8334_v53  ;;  %1119 = vmatpush1.bf16.msra.mxu1 %v8337_v20 }
 0x1b7   :  { %1215 = vmatprep.subr.bf16.mxu0 %v8340_v6  ;;  %1258 = vmatprep.subr.bf16.mxu1 %v8343_v15 }
 0x259   :  { %v941_v19 = vpop.f32.mrf.mxu0  ;;  %v984_v45 = vpop.f32.mrf.mxu1 }
 0x25a   :  { %v993_v5 = vadd.f32 %v941_v19, %v8073_v3  ;;  %v995_v13 = vadd.f32 %v984_v45, %v8076_v4 }
 0x25b   :  { %v943_v40 = vpop.f32.mrf.mxu0  ;;  %v986_v35 = vpop.f32.mrf.mxu1 }
 0x25c   :  { %v6028_v32 = vmul.f32 -1.442695, %v993_v5  ;;  %v994_v42 = vadd.f32 %v943_v40, %v8079_v7  ;;  %v996_v5 = vadd.f32 %v986_v35, %v8082_v8  ;;  %v424_v40 = vadd.f32 %v8092_v14, %v8070_v2 }
 0x25d   :  { %v945_v36 = vpop.f32.mrf.mxu0  ;;  %v988_v3 = vpop.f32.mrf.mxu1 }
 0x25e   :  { %6996 = vpow2.f32 %v6028_v32  ;;  %v6030_v41 = vmul.f32 -1.442695, %v994_v42  ;;  %v997_v31 = vadd.f32 %v945_v36, %v8085_v11  ;;  %v6032_v32 = vmul.f32 -1.442695, %v996_v5 }
 0x25f   :  { %v947_v26 = vpop.f32.mrf.mxu0  ;;  %v990_v7 = vpop.f32.mrf.mxu1  ;;  %v999_v11 = vadd.f32 %v988_v3, %v8088_v12 }
 0x260   :  { %6998 = vpow2.f32 %v6030_v41  ;;  %v6029_v18 = vmul.f32 -1.442695, %v997_v31  ;;  %v998_v28 = vadd.f32 %v947_v26, %v311_v39  ;;  %v1000_v42 = vadd.f32 %v990_v7, %v424_v40 }
 0x262   :  { %7000 = vpow2.f32 %v6029_v18  ;;  %v6031_v19 = vmul.f32 -1.442695, %v998_v28  ;;  %v6033_v18 = vmul.f32 -1.442695, %v1000_v42 }
 0x264   :  { %7002 = vpow2.f32 %v6031_v19 }
 0x265   :  { %7004 = vtanh.f32 %v995_v13 }
 0x266   :  { %7006 = vpow2.f32 %v6032_v32 }
 0x26b   :  { %v6997_v22 = vpop.eup %6996 }
 0x26c   :  { %v1007_v36 = vadd.f32 1.0, %v6997_v22 }
 0x26d   :  { %v6999_v26 = vpop.eup %6998 }
 0x26e   :  { %7008 = vrcp.f32 %v1007_v36  ;;  %v1019_v28 = vadd.f32 1.0, %v6999_v26 }
 0x26f   :  { %v7001_v31 = vpop.eup %7000  ;;  %7010 = vtanh.f32 %v999_v11 }
 0x270   :  { %7012 = vrcp.f32 %v1019_v28  ;;  %v1008_v8 = vadd.f32 1.0, %v7001_v31 }
 0x271   :  { %v7003_v35 = vpop.eup %7002  ;;  %7014 = vpow2.f32 %v6033_v18 }
 0x272   :  { %7016 = vrcp.f32 %v1008_v8  ;;  %v1020_v4 = vadd.f32 1.0, %v7003_v35  ;;  %v7005_v14 = vpop.eup %7004 }
 0x273   :  { %v7007_v39 = vpop.eup %7006 }
 0x274   :  { %7018 = vrcp.f32 %v1020_v4  ;;  %v1033_v7 = vadd.f32 1.0, %v7007_v39 }
 0x276   :  { %7020 = vrcp.f32 %v1033_v7 }
 0x27b   :  { %v7009_v41 = vpop.eup %7008 }
 0x27c   :  { %v7011_v12 = vpop.eup %7010  ;;  %v1041_v22 = vmul.f32 %v7009_v41, %v7005_v14 }
 0x27d   :  { %v7013_v45 = vpop.eup %7012 }
 0x27e   :  { %v7015_v3 = vpop.eup %7014  ;;  %v1039_v19 = vmul.f32 %v7013_v45, %v8242_v24  ;;  %v321_v45 = vadd.f32 %v8112_v27, %v8066_v1  ;;  %v9590_v27 = vld [vmem:[#allocation19_spill] sm:$0xff] }
 0x27f   :  { %v7017_v5 = vpop.eup %7016  ;;  %v1034_v42 = vadd.f32 1.0, %v7015_v3 }
 0x280   :  { %v8357_v40 = vadd.f32 %v1041_v22, %v1039_v19  ;;  %v1042_v13 = vmul.f32 %v7017_v5, %v7011_v12 }
 0x281   :  { %v7019_v32 = vpop.eup %7018 }
 0x282   :  { %v1040_v11 = vmul.f32 %v7019_v32, %v8245_v34  ;;  %7022 = vtanh.f32 %v8357_v40 }
 0x283   :  { %7024 = vrcp.f32 %v1034_v42  ;;  %v7021_v26 = vpop.eup %7020 }
 0x284   :  { %v8360_v36 = vadd.f32 %v1042_v13, %v1040_v11  ;;  %v9588_v11 = vld [vmem:[#allocation20_spill] sm:$0xff] }
 0x286   :  { %7026 = vtanh.f32 %v8360_v36 }
 0x28f   :  { %v7023_v18 = vpop.eup %7022 }
 0x290   :  { %v7025_v24 = vpop.eup %7024  ;;  %v1047_v31 = vmul.f32 %v7023_v18, %v7021_v26  ;;  %v9589_v18 = vld [vmem:[#allocation22_spill] sm:$0xff] }
 0x293   :  { %v7027_v28 = vpop.eup %7026 }
 0x294   :  { %v1048_v8 = vmul.f32 %v7027_v28, %v7025_v24  ;;  %v434_v24 = vadd.f32 %v9589_v18, %v8070_v2 }
 0x296   :  { %v1049_v35 = vpack.c.bf16 %v1048_v8, %v1047_v31 }
 0x298   :  { %1094 = vmatmul.mubr.bf16.vlgmr.msra.gmra.mxu0 %v1049_v35  ;;  %1137 = vmatmul.mubr.bf16.vlgmr.msra.gmra.mxu1 %v1049_v35 }
 0x299   :  { %1216 = vmatpush1.bf16.msra.mxu0 %v8248_v59  ;;  %1259 = vmatpush1.bf16.msra.mxu1 %v8251_v52 }
 0x29a   :  { %1217 = vmatprep.subr.bf16.mxu0 %v8254_v55  ;;  %1260 = vmatprep.subr.bf16.mxu1 %v8257_v61 }
 0x29b   :  { %1247 = vmatprep.mubr.bf16.mxu0 %v9587_v47  ;;  %1290 = vmatprep.mubr.bf16.mxu1 %v9587_v47 }
 0x29d   :  { %1218 = vmatpush1.bf16.msra.mxu0 %v8262_v49  ;;  %1261 = vmatpush1.bf16.msra.mxu1 %v8265_v56 }
 0x29e   :  { %1219 = vmatprep.subr.bf16.mxu0 %v8268_v44  ;;  %1262 = vmatprep.subr.bf16.mxu1 %v8271_v54 }
 0x2a1   :  { %1220 = vmatpush1.bf16.msra.mxu0 %v8274_v60  ;;  %1263 = vmatpush1.bf16.msra.mxu1 %v8277_v57 }
 0x2a2   :  { %1221 = vmatprep.subr.bf16.mxu0 %v8280_v58  ;;  %1264 = vmatprep.subr.bf16.mxu1 %v8283_v23 }
 0x2a5   :  { %1222 = vmatpush1.bf16.msra.mxu0 %v8286_v51  ;;  %1265 = vmatpush1.bf16.msra.mxu1 %v8289_v30 }
 0x2a6   :  { %1223 = vmatprep.subr.bf16.mxu0 %v8292_v10  ;;  %1266 = vmatprep.subr.bf16.mxu1 %v8295_v33 }
 0x2a9   :  { %1224 = vmatpush1.bf16.msra.mxu0 %v8298_v43  ;;  %1267 = vmatpush1.bf16.msra.mxu1 %v8301_v50 }
 0x2aa   :  { %1225 = vmatprep.subr.bf16.mxu0 %v8304_v63  ;;  %1268 = vmatprep.subr.bf16.mxu1 %v8307_v46 }
 0x2ad   :  { %1226 = vmatpush1.bf16.msra.mxu0 %v8310_v48  ;;  %1269 = vmatpush1.bf16.msra.mxu1 %v8313_v0 }
 0x2ae   :  { %1227 = vmatprep.subr.bf16.mxu0 %v8316_v38  ;;  %1270 = vmatprep.subr.bf16.mxu1 %v8319_v62 }
 0x2b1   :  { %1228 = vmatpush1.bf16.msra.mxu0 %v8322_v9  ;;  %1271 = vmatpush1.bf16.msra.mxu1 %v8325_v37 }
 0x2b2   :  { %1229 = vmatprep.subr.bf16.mxu0 %v8328_v29  ;;  %1272 = vmatprep.subr.bf16.mxu1 %v8331_v16 }
 0x2b5   :  { %1230 = vmatpush1.bf16.msra.mxu0 %v8334_v53  ;;  %1273 = vmatpush1.bf16.msra.mxu1 %v8337_v20 }
 0x2b6   :  { %1369 = vmatprep.subr.bf16.mxu0 %v8340_v6  ;;  %1412 = vmatprep.subr.bf16.mxu1 %v8343_v15 }
 0x358   :  { %v1095_v34 = vpop.f32.mrf.mxu0  ;;  %v1138_v14 = vpop.f32.mrf.mxu1 }
 0x359   :  { %v1147_v4 = vadd.f32 %v1095_v34, %v8095_v17  ;;  %v1149_v28 = vadd.f32 %v1138_v14, %v9590_v27 }
 0x35a   :  { %v1097_v39 = vpop.f32.mrf.mxu0  ;;  %v1140_v19 = vpop.f32.mrf.mxu1 }
 0x35b   :  { %v6034_v41 = vmul.f32 -1.442695, %v1147_v4  ;;  %v1148_v12 = vadd.f32 %v1097_v39, %v8101_v21  ;;  %v1150_v26 = vadd.f32 %v1140_v19, %v9588_v11 }
 0x35c   :  { %v1099_v22 = vpop.f32.mrf.mxu0  ;;  %v1142_v17 = vpop.f32.mrf.mxu1 }
 0x35d   :  { %7028 = vpow2.f32 %v6034_v41  ;;  %v6036_v3 = vmul.f32 -1.442695, %v1148_v12  ;;  %v1151_v5 = vadd.f32 %v1099_v22, %v8107_v25  ;;  %v6038_v31 = vmul.f32 -1.442695, %v1150_v26  ;;  %v9591_v25 = vld [vmem:[#allocation21_spill] sm:$0xff] }
 0x35e   :  { %v1101_v7 = vpop.f32.mrf.mxu0  ;;  %v1144_v21 = vpop.f32.mrf.mxu1  ;;  %v1153_v34 = vadd.f32 %v1142_v17, %v9591_v25 }
 0x35f   :  { %7030 = vpow2.f32 %v6036_v3  ;;  %v6035_v13 = vmul.f32 -1.442695, %v1151_v5  ;;  %v1152_v32 = vadd.f32 %v1101_v7, %v321_v45  ;;  %v1154_v8 = vadd.f32 %v1144_v21, %v434_v24 }
 0x361   :  { %7032 = vpow2.f32 %v6035_v13  ;;  %v6037_v42 = vmul.f32 -1.442695, %v1152_v32  ;;  %v6039_v41 = vmul.f32 -1.442695, %v1154_v8 }
 0x363   :  { %7034 = vpow2.f32 %v6037_v42 }
 0x364   :  { %7036 = vtanh.f32 %v1149_v28 }
 0x365   :  { %7038 = vpow2.f32 %v6038_v31 }
 0x36a   :  { %v7029_v35 = vpop.eup %7028 }
 0x36b   :  { %v1161_v4 = vadd.f32 1.0, %v7029_v35 }
 0x36c   :  { %v7031_v39 = vpop.eup %7030 }
 0x36d   :  { %7040 = vrcp.f32 %v1161_v4  ;;  %v1173_v12 = vadd.f32 1.0, %v7031_v39 }
 0x36e   :  { %v7033_v22 = vpop.eup %7032  ;;  %7042 = vtanh.f32 %v1153_v34 }
 0x36f   :  { %7044 = vrcp.f32 %v1173_v12  ;;  %v1162_v45 = vadd.f32 1.0, %v7033_v22  ;;  %v9592_v12 = vld [vmem:[#allocation23_spill] sm:$0xff] }
 0x370   :  { %v7035_v3 = vpop.eup %7034  ;;  %7046 = vpow2.f32 %v6039_v41 }
 0x371   :  { %7048 = vrcp.f32 %v1162_v45  ;;  %v1174_v14 = vadd.f32 1.0, %v7035_v3  ;;  %v7037_v19 = vpop.eup %7036 }
 0x372   :  { %v7039_v5 = vpop.eup %7038 }
 0x373   :  { %7050 = vrcp.f32 %v1174_v14  ;;  %v1187_v21 = vadd.f32 1.0, %v7039_v5 }
 0x375   :  { %7052 = vrcp.f32 %v1187_v21 }
 0x37a   :  { %v7041_v7 = vpop.eup %7040 }
 0x37b   :  { %v7043_v13 = vpop.eup %7042  ;;  %v1195_v32 = vmul.f32 %v7041_v7, %v7037_v19  ;;  %v9593_v19 = vld [vmem:[#allocation25_spill] sm:$0xff] }
 0x37c   :  { %v7045_v17 = vpop.eup %7044 }
 0x37d   :  { %v7047_v42 = vpop.eup %7046  ;;  %v1193_v11 = vmul.f32 %v7045_v17, %v8357_v40 }
 0x37e   :  { %v7049_v26 = vpop.eup %7048  ;;  %v1188_v28 = vadd.f32 1.0, %v7047_v42 }
 0x37f   :  { %v8409_v18 = vadd.f32 %v1195_v32, %v1193_v11  ;;  %v1196_v24 = vmul.f32 %v7049_v26, %v7043_v13  ;;  %v9594_v13 = vld [vmem:[#allocation29_spill] sm:$0xff]  ;;  %v9595_v11 = vld [vmem:[#allocation27_spill] sm:$0xff] }
 0x380   :  { %v7051_v27 = vpop.eup %7050  ;;  %v331_v32 = vadd.f32 %v9594_v13, %v8066_v1 }
 0x381   :  { %v1194_v31 = vmul.f32 %v7051_v27, %v8360_v36  ;;  %7054 = vtanh.f32 %v8409_v18 }
 0x382   :  { %7056 = vrcp.f32 %v1188_v28  ;;  %v7053_v35 = vpop.eup %7052 }
 0x383   :  { %v8412_v8 = vadd.f32 %v1196_v24, %v1194_v31 }
 0x385   :  { %7058 = vtanh.f32 %v8412_v8 }
 0x38e   :  { %v7055_v25 = vpop.eup %7054 }
 0x38f   :  { %v7057_v40 = vpop.eup %7056  ;;  %v1201_v4 = vmul.f32 %v7055_v25, %v7053_v35  ;;  %v9596_v35 = vld [vmem:[#allocation26_spill] sm:$0xff] }
 0x392   :  { %v7059_v34 = vpop.eup %7058 }
 0x393   :  { %v1202_v39 = vmul.f32 %v7059_v34, %v7057_v40  ;;  %v9597_v34 = vld [vmem:[#allocation30_spill] sm:$0xff] }
 0x395   :  { %v1203_v41 = vpack.c.bf16 %v1202_v39, %v1201_v4  ;;  %v444_v4 = vadd.f32 %v9597_v34, %v8070_v2  ;;  %v9598_v39 = vld [vmem:[#allocation24_spill] sm:$0xff] }
 0x397   :  { %1248 = vmatmul.mubr.bf16.vlgmr.msra.gmra.mxu0 %v1203_v41  ;;  %1291 = vmatmul.mubr.bf16.vlgmr.msra.gmra.mxu1 %v1203_v41 }
 0x398   :  { %1370 = vmatpush1.bf16.msra.mxu0 %v8248_v59  ;;  %1413 = vmatpush1.bf16.msra.mxu1 %v8251_v52 }
 0x399   :  { %1371 = vmatprep.subr.bf16.mxu0 %v8254_v55  ;;  %1414 = vmatprep.subr.bf16.mxu1 %v8257_v61 }
 0x39a   :  { %1401 = vmatprep.mubr.bf16.mxu0 %v9587_v47  ;;  %1444 = vmatprep.mubr.bf16.mxu1 %v9587_v47 }
 0x39c   :  { %1372 = vmatpush1.bf16.msra.mxu0 %v8262_v49  ;;  %1415 = vmatpush1.bf16.msra.mxu1 %v8265_v56 }
 0x39d   :  { %1373 = vmatprep.subr.bf16.mxu0 %v8268_v44  ;;  %1416 = vmatprep.subr.bf16.mxu1 %v8271_v54 }
 0x3a0   :  { %1374 = vmatpush1.bf16.msra.mxu0 %v8274_v60  ;;  %1417 = vmatpush1.bf16.msra.mxu1 %v8277_v57 }
 0x3a1   :  { %1375 = vmatprep.subr.bf16.mxu0 %v8280_v58  ;;  %1418 = vmatprep.subr.bf16.mxu1 %v8283_v23 }
 0x3a4   :  { %1376 = vmatpush1.bf16.msra.mxu0 %v8286_v51  ;;  %1419 = vmatpush1.bf16.msra.mxu1 %v8289_v30 }
 0x3a5   :  { %1377 = vmatprep.subr.bf16.mxu0 %v8292_v10  ;;  %1420 = vmatprep.subr.bf16.mxu1 %v8295_v33 }
 0x3a8   :  { %1378 = vmatpush1.bf16.msra.mxu0 %v8298_v43  ;;  %1421 = vmatpush1.bf16.msra.mxu1 %v8301_v50 }
 0x3a9   :  { %1379 = vmatprep.subr.bf16.mxu0 %v8304_v63  ;;  %1422 = vmatprep.subr.bf16.mxu1 %v8307_v46 }
 0x3ac   :  { %1380 = vmatpush1.bf16.msra.mxu0 %v8310_v48  ;;  %1423 = vmatpush1.bf16.msra.mxu1 %v8313_v0 }
 0x3ad   :  { %1381 = vmatprep.subr.bf16.mxu0 %v8316_v38  ;;  %1424 = vmatprep.subr.bf16.mxu1 %v8319_v62 }
 0x3b0   :  { %1382 = vmatpush1.bf16.msra.mxu0 %v8322_v9  ;;  %1425 = vmatpush1.bf16.msra.mxu1 %v8325_v37 }
 0x3b1   :  { %1383 = vmatprep.subr.bf16.mxu0 %v8328_v29  ;;  %1426 = vmatprep.subr.bf16.mxu1 %v8331_v16 }
 0x3b4   :  { %1384 = vmatpush1.bf16.msra.mxu0 %v8334_v53  ;;  %1427 = vmatpush1.bf16.msra.mxu1 %v8337_v20 }
 0x3b5   :  { %1523 = vmatprep.subr.bf16.mxu0 %v8340_v6  ;;  %1566 = vmatprep.subr.bf16.mxu1 %v8343_v15 }
 0x457   :  { %v1249_v36 = vpop.f32.mrf.mxu0  ;;  %v1292_v45 = vpop.f32.mrf.mxu1 }
 0x458   :  { %v1301_v22 = vadd.f32 %v1249_v36, %v9592_v12  ;;  %v1303_v41 = vadd.f32 %v1292_v45, %v9598_v39 }
 0x459   :  { %v1251_v3 = vpop.f32.mrf.mxu0  ;;  %v1294_v42 = vpop.f32.mrf.mxu1 }
 0x45a   :  { %v6040_v14 = vmul.f32 -1.442695, %v1301_v22  ;;  %v1302_v5 = vadd.f32 %v1251_v3, %v9593_v19  ;;  %v1304_v25 = vadd.f32 %v1294_v42, %v9596_v35  ;;  %v9599_v3 = vld [vmem:[#allocation28_spill] sm:$0xff] }
 0x45b   :  { %v1253_v7 = vpop.f32.mrf.mxu0  ;;  %v1296_v28 = vpop.f32.mrf.mxu1 }
 0x45c   :  { %7060 = vpow2.f32 %v6040_v14  ;;  %v6042_v17 = vmul.f32 -1.442695, %v1302_v5  ;;  %v1305_v26 = vadd.f32 %v1253_v7, %v9595_v11  ;;  %v6044_v36 = vmul.f32 -1.442695, %v1304_v25 }
 0x45d   :  { %v1255_v21 = vpop.f32.mrf.mxu0  ;;  %v1298_v40 = vpop.f32.mrf.mxu1  ;;  %v1307_v14 = vadd.f32 %v1296_v28, %v9599_v3 }
 0x45e   :  { %7062 = vpow2.f32 %v6042_v17  ;;  %v6041_v24 = vmul.f32 -1.442695, %v1305_v26  ;;  %v1306_v27 = vadd.f32 %v1255_v21, %v331_v32  ;;  %v1308_v12 = vadd.f32 %v1298_v40, %v444_v4 }
 0x460   :  { %7064 = vpow2.f32 %v6041_v24  ;;  %v6043_v31 = vmul.f32 -1.442695, %v1306_v27  ;;  %v6045_v7 = vmul.f32 -1.442695, %v1308_v12 }
 0x462   :  { %7066 = vpow2.f32 %v6043_v31 }
 0x463   :  { %7068 = vtanh.f32 %v1303_v41 }
 0x464   :  { %7070 = vpow2.f32 %v6044_v36 }
 0x469   :  { %v7061_v22 = vpop.eup %7060 }
 0x46a   :  { %v1315_v19 = vadd.f32 1.0, %v7061_v22 }
 0x46b   :  { %v7063_v5 = vpop.eup %7062 }
 0x46c   :  { %7072 = vrcp.f32 %v1315_v19  ;;  %v1327_v13 = vadd.f32 1.0, %v7063_v5 }
 0x46d   :  { %v7065_v32 = vpop.eup %7064  ;;  %7074 = vtanh.f32 %v1307_v14 }
 0x46e   :  { %7076 = vrcp.f32 %v1327_v13  ;;  %v1316_v17 = vadd.f32 1.0, %v7065_v32  ;;  %v9600_v13 = vld [vmem:[#allocation31_spill] sm:$0xff] }
 0x46f   :  { %v7067_v42 = vpop.eup %7066  ;;  %7078 = vpow2.f32 %v6045_v7 }
 0x470   :  { %7080 = vrcp.f32 %v1316_v17  ;;  %v1328_v45 = vadd.f32 1.0, %v7067_v42  ;;  %v7069_v11 = vpop.eup %7068 }
 0x471   :  { %v7071_v26 = vpop.eup %7070 }
 0x472   :  { %7082 = vrcp.f32 %v1328_v45  ;;  %v1341_v40 = vadd.f32 1.0, %v7071_v26 }
 0x474   :  { %7084 = vrcp.f32 %v1341_v40 }
 0x479   :  { %v7073_v21 = vpop.eup %7072 }
 0x47a   :  { %v7075_v24 = vpop.eup %7074  ;;  %v1349_v27 = vmul.f32 %v7073_v21, %v7069_v11  ;;  %v9601_v11 = vld [vmem:[#allocation33_spill] sm:$0xff] }
 0x47b   :  { %v7077_v28 = vpop.eup %7076 }
 0x47c   :  { %v7079_v31 = vpop.eup %7078  ;;  %v1347_v35 = vmul.f32 %v7077_v28, %v8409_v18 }
 0x47d   :  { %v7081_v25 = vpop.eup %7080  ;;  %v1342_v41 = vadd.f32 1.0, %v7079_v31 }
 0x47e   :  { %v8461_v34 = vadd.f32 %v1349_v27, %v1347_v35  ;;  %v1350_v4 = vmul.f32 %v7081_v25, %v7075_v24  ;;  %v9602_v24 = vld [vmem:[#allocation37_spill] sm:$0xff]  ;;  %v9603_v35 = vld [vmem:[#allocation35_spill] sm:$0xff] }
 0x47f   :  { %v7083_v39 = vpop.eup %7082  ;;  %v341_v27 = vadd.f32 %v9602_v24, %v8066_v1 }
 0x480   :  { %v1348_v36 = vmul.f32 %v7083_v39, %v8412_v8  ;;  %7086 = vtanh.f32 %v8461_v34 }
 0x481   :  { %7088 = vrcp.f32 %v1342_v41  ;;  %v7085_v22 = vpop.eup %7084 }
 0x482   :  { %v8464_v12 = vadd.f32 %v1350_v4, %v1348_v36 }
 0x484   :  { %7090 = vtanh.f32 %v8464_v12 }
 0x48d   :  { %v7087_v3 = vpop.eup %7086 }
 0x48e   :  { %v7089_v18 = vpop.eup %7088  ;;  %v1355_v19 = vmul.f32 %v7087_v3, %v7085_v22  ;;  %v9604_v22 = vld [vmem:[#allocation34_spill] sm:$0xff] }
 0x491   :  { %v7091_v14 = vpop.eup %7090 }
 0x492   :  { %v1356_v5 = vmul.f32 %v7091_v14, %v7089_v18  ;;  %v9605_v14 = vld [vmem:[#allocation38_spill] sm:$0xff] }
 0x494   :  { %v1357_v7 = vpack.c.bf16 %v1356_v5, %v1355_v19  ;;  %v454_v19 = vadd.f32 %v9605_v14, %v8070_v2  ;;  %v9606_v5 = vld [vmem:[#allocation32_spill] sm:$0xff] }
 0x496   :  { %1402 = vmatmul.mubr.bf16.vlgmr.msra.gmra.mxu0 %v1357_v7  ;;  %1445 = vmatmul.mubr.bf16.vlgmr.msra.gmra.mxu1 %v1357_v7 }
 0x497   :  { %1524 = vmatpush1.bf16.msra.mxu0 %v8248_v59  ;;  %1567 = vmatpush1.bf16.msra.mxu1 %v8251_v52 }
 0x498   :  { %1525 = vmatprep.subr.bf16.mxu0 %v8254_v55  ;;  %1568 = vmatprep.subr.bf16.mxu1 %v8257_v61 }
 0x499   :  { %1555 = vmatprep.mubr.bf16.mxu0 %v9587_v47  ;;  %1598 = vmatprep.mubr.bf16.mxu1 %v9587_v47 }
 0x49b   :  { %1526 = vmatpush1.bf16.msra.mxu0 %v8262_v49  ;;  %1569 = vmatpush1.bf16.msra.mxu1 %v8265_v56 }
 0x49c   :  { %1527 = vmatprep.subr.bf16.mxu0 %v8268_v44  ;;  %1570 = vmatprep.subr.bf16.mxu1 %v8271_v54 }
 0x49f   :  { %1528 = vmatpush1.bf16.msra.mxu0 %v8274_v60  ;;  %1571 = vmatpush1.bf16.msra.mxu1 %v8277_v57 }
 0x4a0   :  { %1529 = vmatprep.subr.bf16.mxu0 %v8280_v58  ;;  %1572 = vmatprep.subr.bf16.mxu1 %v8283_v23 }
 0x4a3   :  { %1530 = vmatpush1.bf16.msra.mxu0 %v8286_v51  ;;  %1573 = vmatpush1.bf16.msra.mxu1 %v8289_v30 }
 0x4a4   :  { %1531 = vmatprep.subr.bf16.mxu0 %v8292_v10  ;;  %1574 = vmatprep.subr.bf16.mxu1 %v8295_v33 }
 0x4a7   :  { %1532 = vmatpush1.bf16.msra.mxu0 %v8298_v43  ;;  %1575 = vmatpush1.bf16.msra.mxu1 %v8301_v50 }
 0x4a8   :  { %1533 = vmatprep.subr.bf16.mxu0 %v8304_v63  ;;  %1576 = vmatprep.subr.bf16.mxu1 %v8307_v46 }
 0x4ab   :  { %1534 = vmatpush1.bf16.msra.mxu0 %v8310_v48  ;;  %1577 = vmatpush1.bf16.msra.mxu1 %v8313_v0 }
 0x4ac   :  { %1535 = vmatprep.subr.bf16.mxu0 %v8316_v38  ;;  %1578 = vmatprep.subr.bf16.mxu1 %v8319_v62 }
 0x4af   :  { %1536 = vmatpush1.bf16.msra.mxu0 %v8322_v9  ;;  %1579 = vmatpush1.bf16.msra.mxu1 %v8325_v37 }
 0x4b0   :  { %1537 = vmatprep.subr.bf16.mxu0 %v8328_v29  ;;  %1580 = vmatprep.subr.bf16.mxu1 %v8331_v16 }
 0x4b3   :  { %1538 = vmatpush1.bf16.msra.mxu0 %v8334_v53  ;;  %1581 = vmatpush1.bf16.msra.mxu1 %v8337_v20 }
 0x4b4   :  { %1677 = vmatprep.subr.bf16.mxu0 %v8340_v6  ;;  %1720 = vmatprep.subr.bf16.mxu1 %v8343_v15 }
 0x556   :  { %v1403_v8 = vpop.f32.mrf.mxu0  ;;  %v1446_v17 = vpop.f32.mrf.mxu1 }
 0x557   :  { %v1455_v32 = vadd.f32 %v1403_v8, %v9600_v13  ;;  %v1457_v7 = vadd.f32 %v1446_v17, %v9606_v5 }
 0x558   :  { %v1405_v42 = vpop.f32.mrf.mxu0  ;;  %v1448_v31 = vpop.f32.mrf.mxu1 }
 0x559   :  { %v6046_v45 = vmul.f32 -1.442695, %v1455_v32  ;;  %v1456_v26 = vadd.f32 %v1405_v42, %v9601_v11  ;;  %v1458_v3 = vadd.f32 %v1448_v31, %v9604_v22  ;;  %v9607_v42 = vld [vmem:[#allocation36_spill] sm:$0xff] }
 0x55a   :  { %v1407_v21 = vpop.f32.mrf.mxu0  ;;  %v1450_v41 = vpop.f32.mrf.mxu1 }
 0x55b   :  { %7092 = vpow2.f32 %v6046_v45  ;;  %v6048_v28 = vmul.f32 -1.442695, %v1456_v26  ;;  %v1459_v25 = vadd.f32 %v1407_v21, %v9603_v35  ;;  %v6050_v8 = vmul.f32 -1.442695, %v1458_v3 }
 0x55c   :  { %v1409_v40 = vpop.f32.mrf.mxu0  ;;  %v1452_v18 = vpop.f32.mrf.mxu1  ;;  %v1461_v45 = vadd.f32 %v1450_v41, %v9607_v42 }
 0x55d   :  { %7094 = vpow2.f32 %v6048_v28  ;;  %v6047_v4 = vmul.f32 -1.442695, %v1459_v25  ;;  %v1460_v39 = vadd.f32 %v1409_v40, %v341_v27  ;;  %v1462_v13 = vadd.f32 %v1452_v18, %v454_v19 }
 0x55f   :  { %7096 = vpow2.f32 %v6047_v4  ;;  %v6049_v36 = vmul.f32 -1.442695, %v1460_v39  ;;  %v6051_v21 = vmul.f32 -1.442695, %v1462_v13 }
 0x561   :  { %7098 = vpow2.f32 %v6049_v36 }
 0x562   :  { %7100 = vtanh.f32 %v1457_v7 }
 0x563   :  { %7102 = vpow2.f32 %v6050_v8 }
 0x568   :  { %v7093_v32 = vpop.eup %7092 }
 0x569   :  { %v1469_v11 = vadd.f32 1.0, %v7093_v32 }
 0x56a   :  { %v7095_v26 = vpop.eup %7094 }
 0x56b   :  { %7104 = vrcp.f32 %v1469_v11  ;;  %v1481_v24 = vadd.f32 1.0, %v7095_v26 }
 0x56c   :  { %v7097_v27 = vpop.eup %7096  ;;  %7106 = vtanh.f32 %v1461_v45 }
 0x56d   :  { %7108 = vrcp.f32 %v1481_v24  ;;  %v1470_v28 = vadd.f32 1.0, %v7097_v27 }
 0x56e   :  { %v7099_v31 = vpop.eup %7098  ;;  %7110 = vpow2.f32 %v6051_v21 }
 0x56f   :  { %7112 = vrcp.f32 %v1470_v28  ;;  %v1482_v17 = vadd.f32 1.0, %v7099_v31  ;;  %v7101_v35 = vpop.eup %7100 }
 0x570   :  { %v7103_v25 = vpop.eup %7102 }
 0x571   :  { %7114 = vrcp.f32 %v1482_v17  ;;  %v1495_v18 = vadd.f32 1.0, %v7103_v25 }
 0x573   :  { %7116 = vrcp.f32 %v1495_v18 }
 0x578   :  { %v7105_v40 = vpop.eup %7104 }
 0x579   :  { %v7107_v4 = vpop.eup %7106  ;;  %v1503_v39 = vmul.f32 %v7105_v40, %v7101_v35 }
 0x57a   :  { %v7109_v41 = vpop.eup %7108 }
 0x57b   :  { %v7111_v36 = vpop.eup %7110  ;;  %v1501_v22 = vmul.f32 %v7109_v41, %v8461_v34 }
 0x57c   :  { %v7113_v3 = vpop.eup %7112  ;;  %v1496_v7 = vadd.f32 1.0, %v7111_v36 }
 0x57d   :  { %v8513_v14 = vadd.f32 %v1503_v39, %v1501_v22  ;;  %v1504_v19 = vmul.f32 %v7113_v3, %v7107_v4 }
 0x57e   :  { %v7115_v5 = vpop.eup %7114 }
 0x57f   :  { %v1502_v8 = vmul.f32 %v7115_v5, %v8464_v12  ;;  %7118 = vtanh.f32 %v8513_v14 }
 0x580   :  { %7120 = vrcp.f32 %v1496_v7  ;;  %v7117_v32 = vpop.eup %7116 }
 0x581   :  { %v8516_v13 = vadd.f32 %v1504_v19, %v1502_v8 }
 0x583   :  { %7122 = vtanh.f32 %v8516_v13 }
 0x58c   :  { %v7119_v42 = vpop.eup %7118 }
 0x58d   :  { %v7121_v34 = vpop.eup %7120  ;;  %v1509_v11 = vmul.f32 %v7119_v42, %v7117_v32 }
 0x590   :  { %v7123_v45 = vpop.eup %7122 }
 0x591   :  { %v1510_v26 = vmul.f32 %v7123_v45, %v7121_v34 }
 0x593   :  { %v1511_v21 = vpack.c.bf16 %v1510_v26, %v1509_v11 }
 0x595   :  { %1556 = vmatmul.mubr.bf16.vlgmr.msra.gmra.mxu0 %v1511_v21  ;;  %1599 = vmatmul.mubr.bf16.vlgmr.msra.gmra.mxu1 %v1511_v21 }
 0x596   :  { %1678 = vmatpush1.bf16.msra.mxu0 %v8248_v59  ;;  %1721 = vmatpush1.bf16.msra.mxu1 %v8251_v52 }
 0x597   :  { %1679 = vmatprep.subr.bf16.mxu0 %v8254_v55  ;;  %1722 = vmatprep.subr.bf16.mxu1 %v8257_v61  ;;  %v9609_v61 = vld [vmem:[#allocation41_spill] sm:$0xff] }
 0x598   :  { %1709 = vmatprep.mubr.bf16.mxu0 %v9587_v47  ;;  %1752 = vmatprep.mubr.bf16.mxu1 %v9587_v47 }
 0x59a   :  { %1680 = vmatpush1.bf16.msra.mxu0 %v8262_v49  ;;  %1723 = vmatpush1.bf16.msra.mxu1 %v8265_v56 }
 0x59b   :  { %1681 = vmatprep.subr.bf16.mxu0 %v8268_v44  ;;  %1724 = vmatprep.subr.bf16.mxu1 %v8271_v54 }
 0x59e   :  { %1682 = vmatpush1.bf16.msra.mxu0 %v8274_v60  ;;  %1725 = vmatpush1.bf16.msra.mxu1 %v8277_v57 }
 0x59f   :  { %1683 = vmatprep.subr.bf16.mxu0 %v8280_v58  ;;  %1726 = vmatprep.subr.bf16.mxu1 %v8283_v23  ;;  %v9612_v58 = vld [vmem:[#allocation42_spill] sm:$0xff] }
 0x5a2   :  { %1684 = vmatpush1.bf16.msra.mxu0 %v8286_v51  ;;  %1727 = vmatpush1.bf16.msra.mxu1 %v8289_v30  ;;  %v9613_v30 = vld [vmem:[#allocation46_spill] sm:$0xff] }
 0x5a3   :  { %1685 = vmatprep.subr.bf16.mxu0 %v8292_v10  ;;  %1728 = vmatprep.subr.bf16.mxu1 %v8295_v33  ;;  %v464_v10 = vadd.f32 %v9613_v30, %v8070_v2  ;;  %v9614_v33 = vld [vmem:[#allocation40_spill] sm:$0xff] }
 0x5a4   :  { %v7529_v30 = vld [vmem:[#allocation3 + $0x48] ss:$16 sps:$4 sm:$0xff]  }
 0x5a6   :  { %1686 = vmatpush1.bf16.msra.mxu0 %v8298_v43  ;;  %1729 = vmatpush1.bf16.msra.mxu1 %v8301_v50 }
 0x5a7   :  { %1687 = vmatprep.subr.bf16.mxu0 %v8304_v63  ;;  %1730 = vmatprep.subr.bf16.mxu1 %v8307_v46 }
 0x5aa   :  { %1688 = vmatpush1.bf16.msra.mxu0 %v8310_v48  ;;  %1731 = vmatpush1.bf16.msra.mxu1 %v8313_v0  ;;  %v9615_v48 = vld [vmem:[#allocation44_spill] sm:$0xff] }
 0x5ab   :  { %1689 = vmatprep.subr.bf16.mxu0 %v8316_v38  ;;  %1732 = vmatprep.subr.bf16.mxu1 %v8319_v62  ;;  %v9608_v38 = vld [vmem:[#allocation39_spill] sm:$0xff] }
 0x5ae   :  { %1690 = vmatpush1.bf16.msra.mxu0 %v8322_v9  ;;  %1733 = vmatpush1.bf16.msra.mxu1 %v8325_v37 }
 0x5af   :  { %1691 = vmatprep.subr.bf16.mxu0 %v8328_v29  ;;  %1734 = vmatprep.subr.bf16.mxu1 %v8331_v16  ;;  %v9610_v29 = vld [vmem:[#allocation45_spill] sm:$0xff] }
 0x5b0   :  { %v351_v16 = vadd.f32 %v9610_v29, %v8066_v1  ;;  %v7515_v29 = vld [vmem:[#allocation3 + $0xac] ss:$16 sps:$4 sm:$0xff]  }
 0x5b2   :  { %1692 = vmatpush1.bf16.msra.mxu0 %v8334_v53  ;;  %1735 = vmatpush1.bf16.msra.mxu1 %v8337_v20  ;;  %v9611_v20 = vld [vmem:[#allocation43_spill] sm:$0xff] }
 0x5b3   :  { %1831 = vmatprep.subr.bf16.mxu0 %v8340_v6  ;;  %1874 = vmatprep.subr.bf16.mxu1 %v8343_v15 }
 0x655   :  { %v1557_v59 = vpop.f32.mrf.mxu0  ;;  %v1600_v62 = vpop.f32.mrf.mxu1 }
 0x656   :  { %v1609_v52 = vadd.f32 %v1557_v59, %v9608_v38  ;;  %v1611_v43 = vadd.f32 %v1600_v62, %v9614_v33  ;;  %v7508_v62 = vld [vmem:[#allocation3 + $0xe0] ss:$16 sps:$4 sm:$0xff]   ;;  %v7531_v33 = vld [vmem:[#allocation3 + $0x2c] ss:$16 sps:$4 sm:$0xff]  }
 0x657   :  { %v1559_v55 = vpop.f32.mrf.mxu0  ;;  %v1602_v56 = vpop.f32.mrf.mxu1 }
 0x658   :  { %v6052_v9 = vmul.f32 -1.442695, %v1609_v52  ;;  %v1610_v37 = vadd.f32 %v1559_v55, %v9609_v61  ;;  %v1612_v23 = vadd.f32 %v1602_v56, %v9612_v58  ;;  %v7510_v55 = vld [vmem:[#allocation3 + $0xc4] ss:$16 sps:$4 sm:$0xff]   ;;  %v7512_v61 = vld [vmem:[#allocation3 + $0xc0] ss:$16 sps:$4 sm:$0xff]  }
 0x659   :  { %v1561_v49 = vpop.f32.mrf.mxu0  ;;  %v1604_v60 = vpop.f32.mrf.mxu1  ;;  %v7518_v56 = vld [vmem:[#allocation3 + $0x84] ss:$16 sps:$4 sm:$0xff]  }
 0x65a   :  { %7124 = vpow2.f32 %v6052_v9  ;;  %v6054_v53 = vmul.f32 -1.442695, %v1610_v37  ;;  %v1613_v44 = vadd.f32 %v1561_v49, %v9611_v20  ;;  %v6056_v50 = vmul.f32 -1.442695, %v1612_v23  ;;  %v7511_v9 = vld [vmem:[#allocation3 + $0xcc] ss:$16 sps:$4 sm:$0xff]  }
 0x65b   :  { %v1563_v6 = vpop.f32.mrf.mxu0  ;;  %v1606_v51 = vpop.f32.mrf.mxu1  ;;  %v1615_v0 = vadd.f32 %v1604_v60, %v9615_v48  ;;  %v7513_v37 = vld [vmem:[#allocation3 + $0xc8] ss:$16 sps:$4 sm:$0xff]   ;;  %v7514_v49 = vld [vmem:[#allocation3 + $0xa4] ss:$16 sps:$4 sm:$0xff]   ;;  %v7519_v20 = vld [vmem:[#allocation3 + $0x8c] ss:$16 sps:$4 sm:$0xff]  }
 0x65c   :  { %7126 = vpow2.f32 %v6054_v53  ;;  %v6053_v15 = vmul.f32 -1.442695, %v1613_v44  ;;  %v1614_v54 = vadd.f32 %v1563_v6, %v351_v16  ;;  %v1616_v63 = vadd.f32 %v1606_v51, %v464_v10  ;;  %v7516_v16 = vld [vmem:[#allocation3 + $0xa0] ss:$16 sps:$4 sm:$0xff]   ;;  %v7517_v53 = vld [vmem:[#allocation3 + $0xa8] ss:$16 sps:$4 sm:$0xff]  }
 0x65d   :  { %v7520_v44 = vld [vmem:[#allocation3 + $0x80] ss:$16 sps:$4 sm:$0xff]   ;;  %v7521_v6 = vld [vmem:[#allocation3 + $0x88] ss:$16 sps:$4 sm:$0xff]   ;;  %v7526_v58 = vld [vmem:[#allocation3 + $0x44] ss:$16 sps:$4 sm:$0xff]  }
 0x65e   :  { %7128 = vpow2.f32 %v6053_v15  ;;  %v6055_v57 = vmul.f32 -1.442695, %v1614_v54  ;;  %v6057_v27 = vmul.f32 -1.442695, %v1616_v63  ;;  %v7522_v15 = vld [vmem:[#allocation3 + $0x64] ss:$16 sps:$4 sm:$0xff]  }
 0x65f   :  { %v7523_v54 = vld [vmem:[#allocation3 + $0x6c] ss:$16 sps:$4 sm:$0xff]   ;;  %v7524_v60 = vld [vmem:[#allocation3 + $0x60] ss:$16 sps:$4 sm:$0xff]   ;;  %v7530_v10 = vld [vmem:[#allocation3 + $0x24] ss:$16 sps:$4 sm:$0xff]  }
 0x660   :  { %7130 = vpow2.f32 %v6055_v57  ;;  %v7525_v57 = vld [vmem:[#allocation3 + $0x68] ss:$16 sps:$4 sm:$0xff]   ;;  %v7527_v23 = vld [vmem:[#allocation3 + $0x4c] ss:$16 sps:$4 sm:$0xff]   ;;  %v7528_v51 = vld [vmem:[#allocation3 + $0x40] ss:$16 sps:$4 sm:$0xff]  }
 0x661   :  { %7132 = vtanh.f32 %v1611_v43  ;;  %v7532_v43 = vld [vmem:[#allocation3 + $0x20] ss:$16 sps:$4 sm:$0xff]   ;;  %v7534_v63 = vld [vmem:[#allocation3 + $0x4] ss:$16 sps:$4 sm:$0xff]  }
 0x662   :  { %7134 = vpow2.f32 %v6056_v50  ;;  %v7533_v50 = vld [vmem:[#allocation3 + $0x28] ss:$16 sps:$4 sm:$0xff]   ;;  %v7536_v48 = vld [vmem:[#allocation3] ss:$16 sps:$4 sm:$0xff]  }
 0x667   :  { %v7125_v46 = vpop.eup %7124 }
 0x668   :  { %v1623_v12 = vadd.f32 1.0, %v7125_v46  ;;  %v7535_v46 = vld [vmem:[#allocation3 + $0xc] ss:$16 sps:$4 sm:$0xff]  }
 0x669   :  { %v7127_v24 = vpop.eup %7126 }
 0x66a   :  { %7136 = vrcp.f32 %v1623_v12  ;;  %v1635_v28 = vadd.f32 1.0, %v7127_v24  ;;  %v9616_v24 = vld [vmem:[#allocation47_spill] sm:$0xff] }
 0x66b   :  { %v7129_v31 = vpop.eup %7128  ;;  %7138 = vtanh.f32 %v1615_v0  ;;  %v7537_v0 = vld [vmem:[#allocation3 + $0x8] ss:$16 sps:$4 sm:$0xff]  }
 0x66c   :  { %7140 = vrcp.f32 %v1635_v28  ;;  %v1624_v17 = vadd.f32 1.0, %v7129_v31 }
 0x66d   :  { %v7131_v35 = vpop.eup %7130  ;;  %7142 = vpow2.f32 %v6057_v27 }
 0x66e   :  { %7144 = vrcp.f32 %v1624_v17  ;;  %v1636_v25 = vadd.f32 1.0, %v7131_v35  ;;  %v7133_v40 = vpop.eup %7132  ;;  %v9617_v35 = vld [vmem:[#allocation49_spill] sm:$0xff] }
 0x66f   :  { %v7135_v4 = vpop.eup %7134 }
 0x670   :  { %7146 = vrcp.f32 %v1636_v25  ;;  %v1649_v5 = vadd.f32 1.0, %v7135_v4  ;;  %v9618_v4 = vld [vmem:[#allocation53_spill] sm:$0xff] }
 0x672   :  { %7148 = vrcp.f32 %v1649_v5 }
 0x677   :  { %v7137_v39 = vpop.eup %7136 }
 0x678   :  { %v7139_v41 = vpop.eup %7138  ;;  %v1657_v36 = vmul.f32 %v7137_v39, %v7133_v40  ;;  %v361_v39 = vadd.f32 %v9618_v4, %v8066_v1  ;;  %v9625_v4 = vld [vmem:[#allocation57_spill] sm:$0xff] }
 0x679   :  { %v7141_v22 = vpop.eup %7140 }
 0x67a   :  { %v7143_v3 = vpop.eup %7142  ;;  %v1655_v18 = vmul.f32 %v7141_v22, %v8513_v14  ;;  %v9619_v22 = vld [vmem:[#allocation51_spill] sm:$0xff] }
 0x67b   :  { %v7145_v19 = vpop.eup %7144  ;;  %v1650_v42 = vadd.f32 1.0, %v7143_v3 }
 0x67c   :  { %v8565_v7 = vadd.f32 %v1657_v36, %v1655_v18  ;;  %v1658_v8 = vmul.f32 %v7145_v19, %v7139_v41 }
 0x67d   :  { %v7147_v32 = vpop.eup %7146 }
 0x67e   :  { %v1656_v34 = vmul.f32 %v7147_v32, %v8516_v13  ;;  %7150 = vtanh.f32 %v8565_v7  ;;  %v7509_v13 = vld [vmem:[#allocation3 + $0xe8] ss:$16 sps:$4 sm:$0xff]  }
 0x67f   :  { %7152 = vrcp.f32 %v1650_v42  ;;  %v7149_v11 = vpop.eup %7148  ;;  %v9620_v42 = vld [vmem:[#allocation50_spill] sm:$0xff] }
 0x680   :  { %v8568_v45 = vadd.f32 %v1658_v8, %v1656_v34 }
 0x682   :  { %7154 = vtanh.f32 %v8568_v45 }
 0x68b   :  { %v7151_v26 = vpop.eup %7150 }
 0x68c   :  { %v7153_v14 = vpop.eup %7152  ;;  %v1663_v59 = vmul.f32 %v7151_v26, %v7149_v11  ;;  %v9621_v26 = vld [vmem:[#allocation54_spill] sm:$0xff] }
 0x68f   :  { %v7155_v21 = vpop.eup %7154 }
 0x690   :  { %v1664_v38 = vmul.f32 %v7155_v21, %v7153_v14  ;;  %v474_v14 = vadd.f32 %v9621_v26, %v8070_v2  ;;  %v9622_v21 = vld [vmem:[#allocation48_spill] sm:$0xff]  ;;  %v9628_v26 = vld [vmem:[#allocation58_spill] sm:$0xff] }
 0x692   :  { %v1665_v52 = vpack.c.bf16 %v1664_v38, %v1663_v59 }
 0x694   :  { %1710 = vmatmul.mubr.bf16.vlgmr.msra.gmra.mxu0 %v1665_v52  ;;  %1753 = vmatmul.mubr.bf16.vlgmr.msra.gmra.mxu1 %v1665_v52 }
 0x695   :  { %1832 = vmatpush1.bf16.msra.mxu0 %v7508_v62  ;;  %1875 = vmatpush1.bf16.msra.mxu1 %v7509_v13  ;;  %v9623_v13 = vld [vmem:[#allocation52_spill] sm:$0xff] }
 0x696   :  { %1833 = vmatprep.subr.bf16.mxu0 %v7510_v55  ;;  %1876 = vmatprep.subr.bf16.mxu1 %v7511_v9 }
 0x697   :  { %1863 = vmatprep.mubr.bf16.mxu0 %v9587_v47  ;;  %1906 = vmatprep.mubr.bf16.mxu1 %v9587_v47 }
 0x699   :  { %1834 = vmatpush1.bf16.msra.mxu0 %v7512_v61  ;;  %1877 = vmatpush1.bf16.msra.mxu1 %v7513_v37 }
 0x69a   :  { %1835 = vmatprep.subr.bf16.mxu0 %v7514_v49  ;;  %1878 = vmatprep.subr.bf16.mxu1 %v7515_v29 }
 0x69d   :  { %1836 = vmatpush1.bf16.msra.mxu0 %v7516_v16  ;;  %1879 = vmatpush1.bf16.msra.mxu1 %v7517_v53 }
 0x69e   :  { %1837 = vmatprep.subr.bf16.mxu0 %v7518_v56  ;;  %1880 = vmatprep.subr.bf16.mxu1 %v7519_v20 }
 0x6a1   :  { %1838 = vmatpush1.bf16.msra.mxu0 %v7520_v44  ;;  %1881 = vmatpush1.bf16.msra.mxu1 %v7521_v6 }
 0x6a2   :  { %1839 = vmatprep.subr.bf16.mxu0 %v7522_v15  ;;  %1882 = vmatprep.subr.bf16.mxu1 %v7523_v54 }
 0x6a5   :  { %1840 = vmatpush1.bf16.msra.mxu0 %v7524_v60  ;;  %1883 = vmatpush1.bf16.msra.mxu1 %v7525_v57 }
 0x6a6   :  { %1841 = vmatprep.subr.bf16.mxu0 %v7526_v58  ;;  %1884 = vmatprep.subr.bf16.mxu1 %v7527_v23 }
 0x6a9   :  { %1842 = vmatpush1.bf16.msra.mxu0 %v7528_v51  ;;  %1885 = vmatpush1.bf16.msra.mxu1 %v7529_v30 }
 0x6aa   :  { %1843 = vmatprep.subr.bf16.mxu0 %v7530_v10  ;;  %1886 = vmatprep.subr.bf16.mxu1 %v7531_v33 }
 0x6ad   :  { %1844 = vmatpush1.bf16.msra.mxu0 %v7532_v43  ;;  %1887 = vmatpush1.bf16.msra.mxu1 %v7533_v50 }
 0x6ae   :  { %1845 = vmatprep.subr.bf16.mxu0 %v7534_v63  ;;  %1888 = vmatprep.subr.bf16.mxu1 %v7535_v46 }
 0x6b1   :  { %1846 = vmatpush1.bf16.msra.mxu0 %v7536_v48  ;;  %1889 = vmatpush1.bf16.msra.mxu1 %v7537_v0 }
 0x754   :  { %v1711_v12 = vpop.f32.mrf.mxu0  ;;  %v1754_v28 = vpop.f32.mrf.mxu1 }
 0x755   :  { %v1763_v27 = vadd.f32 %v1711_v12, %v9616_v24  ;;  %v1765_v59 = vadd.f32 %v1754_v28, %v9622_v21  ;;  %v9540_v28 = vmov 0.0  }
 0x756   :  { %v1713_v31 = vpop.f32.mrf.mxu0  ;;  %v1756_v36 = vpop.f32.mrf.mxu1  ;;  %6542 = vmatprep.subr.bf16.mxu0 %v9540_v28  ;;  %6548 = vmatprep.subr.bf16.mxu1 %v9540_v28 }
 0x757   :  { %v6058_v17 = vmul.f32 -1.442695, %v1763_v27  ;;  %v1764_v25 = vadd.f32 %v1713_v31, %v9617_v35  ;;  %v1766_v34 = vadd.f32 %v1756_v36, %v9620_v42  ;;  %v9624_v31 = vld [vmem:[#allocation55_spill] sm:$0xff]  ;;  %v9626_v36 = vld [vmem:[#allocation61_spill] sm:$0xff] }
 0x758   :  { %v1715_v40 = vpop.f32.mrf.mxu0  ;;  %v1758_v8 = vpop.f32.mrf.mxu1 }
 0x759   :  { %7156 = vpow2.f32 %v6058_v17  ;;  %v6060_v41 = vmul.f32 -1.442695, %v1764_v25  ;;  %v1767_v3 = vadd.f32 %v1715_v40, %v9619_v22  ;;  %v6062_v38 = vmul.f32 -1.442695, %v1766_v34 }
 0x75a   :  { %v1717_v18 = vpop.f32.mrf.mxu0  ;;  %v1760_v11 = vpop.f32.mrf.mxu1  ;;  %v1769_v55 = vadd.f32 %v1758_v8, %v9623_v13  ;;  %v371_v22 = vadd.f32 %v9626_v36, %v8066_v1  ;;  %v9630_v1 = vld [vmem:[#allocation56_spill] sm:$0xff] }
 0x75b   :  { %7158 = vpow2.f32 %v6060_v41  ;;  %v6059_v19 = vmul.f32 -1.442695, %v1767_v3  ;;  %v1768_v5 = vadd.f32 %v1717_v18, %v361_v39  ;;  %v1770_v52 = vadd.f32 %v1760_v11, %v474_v14  ;;  %v6754_v36 = vld [vmem:[#allocation5 + $0xf8] sm:$0xff]  }
 0x75d   :  { %7160 = vpow2.f32 %v6059_v19  ;;  %v6061_v32 = vmul.f32 -1.442695, %v1768_v5  ;;  %v6063_v37 = vmul.f32 -1.442695, %v1770_v52  ;;  %v9627_v19 = vld [vmem:[#allocation59_spill] sm:$0xff] }
 0x75f   :  { %7162 = vpow2.f32 %v6061_v32 }
 0x760   :  { %7164 = vtanh.f32 %v1765_v59  ;;  %v9629_v59 = vld [vmem:[#allocation62_spill] sm:$0xff] }
 0x761   :  { %7166 = vpow2.f32 %v6062_v38  ;;  %v484_v38 = vadd.f32 %v9629_v59, %v8070_v2  ;;  %v6763_v59 = vld [vmem:[#allocation5 + $0x18] sm:$0xff]  }
 0x766   :  { %v7157_v62 = vpop.eup %7156 }
 0x767   :  { %v1777_v9 = vadd.f32 1.0, %v7157_v62 }
 0x768   :  { %v7159_v61 = vpop.eup %7158 }
 0x769   :  { %7168 = vrcp.f32 %v1777_v9  ;;  %v1789_v49 = vadd.f32 1.0, %v7159_v61  ;;  %v9631_v9 = vld [vmem:[#allocation60_spill] sm:$0xff] }
 0x76a   :  { %v7161_v29 = vpop.eup %7160  ;;  %7170 = vtanh.f32 %v1769_v55 }
 0x76b   :  { %7172 = vrcp.f32 %v1789_v49  ;;  %v1778_v16 = vadd.f32 1.0, %v7161_v29 }
 0x76c   :  { %v7163_v53 = vpop.eup %7162  ;;  %7174 = vpow2.f32 %v6063_v37 }
 0x76d   :  { %7176 = vrcp.f32 %v1778_v16  ;;  %v1790_v56 = vadd.f32 1.0, %v7163_v53  ;;  %v7165_v20 = vpop.eup %7164 }
 0x76e   :  { %v7167_v44 = vpop.eup %7166 }
 0x76f   :  { %7178 = vrcp.f32 %v1790_v56  ;;  %v1803_v51 = vadd.f32 1.0, %v7167_v44 }
 0x771   :  { %7180 = vrcp.f32 %v1803_v51 }
 0x776   :  { %v7169_v6 = vpop.eup %7168 }
 0x777   :  { %v7171_v15 = vpop.eup %7170  ;;  %v1811_v54 = vmul.f32 %v7169_v6, %v7165_v20 }
 0x778   :  { %v7173_v60 = vpop.eup %7172 }
 0x779   :  { %v7175_v57 = vpop.eup %7174  ;;  %v1809_v58 = vmul.f32 %v7173_v60, %v8565_v7 }
 0x77a   :  { %v7177_v23 = vpop.eup %7176  ;;  %v1804_v43 = vadd.f32 1.0, %v7175_v57 }
 0x77b   :  { %v8585_v30 = vadd.f32 %v1811_v54, %v1809_v58  ;;  %v1812_v10 = vmul.f32 %v7177_v23, %v7171_v15 }
 0x77c   :  { %v7179_v33 = vpop.eup %7178 }
 0x77d   :  { %v1810_v50 = vmul.f32 %v7179_v33, %v8568_v45  ;;  %7182 = vtanh.f32 %v8585_v30 }
 0x77e   :  { %7184 = vrcp.f32 %v1804_v43  ;;  %v7181_v46 = vpop.eup %7180 }
 0x77f   :  { %v8588_v63 = vadd.f32 %v1812_v10, %v1810_v50 }
 0x781   :  { %7186 = vtanh.f32 %v8588_v63 }
 0x78a   :  { %v7183_v48 = vpop.eup %7182 }
 0x78b   :  { %v7185_v7 = vpop.eup %7184  ;;  %v1817_v12 = vmul.f32 %v7183_v48, %v7181_v46 }
 0x78e   :  { %v7187_v0 = vpop.eup %7186 }
 0x78f   :  { %v1818_v24 = vmul.f32 %v7187_v0, %v7185_v7 }
 0x791   :  { %v1819_v27 = vpack.c.bf16 %v1818_v24, %v1817_v12 }
 0x793   :  { %1864 = vmatmul.mubr.bf16.vlgmr.msra.gmra.mxu0 %v1819_v27  ;;  %1907 = vmatmul.mubr.bf16.vlgmr.msra.gmra.mxu1 %v1819_v27 }
 0x794   :  { %6544 = vmatprep.mubr.msk.bf16.mxu0 %vm7739_vm1, %v9540_v28  ;;  %6550 = vmatprep.mubr.msk.bf16.mxu1 %vm7739_vm1, %v9540_v28 }
 0x853   :  { %v1865_v45 = vpop.f32.mrf.mxu0  ;;  %v1908_v35 = vpop.f32.mrf.mxu1 }
 0x854   :  { %v1917_v17 = vadd.f32 %v1865_v45, %v9624_v31  ;;  %v1919_v52 = vadd.f32 %v1908_v35, %v9630_v1  ;;  %v6743_v35 = vld [vmem:[%s9520_s1 + $0x8] sm:$0xff]   ;;  %v6765_v1 = vld [vmem:[#allocation5 + $0x50] sm:$0xff]  }
 0x855   :  { %v1867_v25 = vpop.f32.mrf.mxu0  ;;  %v1910_v18 = vpop.f32.mrf.mxu1 }
 0x856   :  { %v6064_v40 = vmul.f32 -1.442695, %v1917_v17  ;;  %v1918_v39 = vadd.f32 %v1867_v25, %v9625_v4  ;;  %v1920_v14 = vadd.f32 %v1910_v18, %v9628_v26  ;;  %v6745_v25 = vld [vmem:[%s9520_s1 + $0x18] sm:$0xff]   ;;  %v6746_v4 = vld [vmem:[%s9520_s1 + $0x20] sm:$0xff]   ;;  %v6753_v18 = vld [vmem:[#allocation5 + $0x68] sm:$0xff]  }
 0x857   :  { %v1869_v41 = vpop.f32.mrf.mxu0  ;;  %v1912_v34 = vpop.f32.mrf.mxu1  ;;  %v6762_v26 = vld [vmem:[#allocation5 + $0xe8] sm:$0xff]  }
 0x858   :  { %7188 = vpow2.f32 %v6064_v40  ;;  %v6066_v3 = vmul.f32 -1.442695, %v1918_v39  ;;  %v1921_v5 = vadd.f32 %v1869_v41, %v9627_v19  ;;  %v6068_v62 = vmul.f32 -1.442695, %v1920_v14  ;;  %v6749_v40 = vld [vmem:[#allocation5 + $0x78] sm:$0xff]   ;;  %v6747_v39 = vld [vmem:[%s9520_s1 + $0x28] sm:$0xff]  }
 0x859   :  { %v1871_v8 = vpop.f32.mrf.mxu0  ;;  %v1914_v21 = vpop.f32.mrf.mxu1  ;;  %v1923_v61 = vadd.f32 %v1912_v34, %v9631_v9  ;;  %v6750_v41 = vld [vmem:[#allocation5 + $0x38] sm:$0xff]   ;;  %v6748_v19 = vld [vmem:[%s9520_s1 + $0x30] sm:$0xff]   ;;  %v6771_v9 = vld [vmem:[#allocation5 + $0x8] sm:$0xff]  }
 0x85a   :  { %7190 = vpow2.f32 %v6066_v3  ;;  %v6065_v32 = vmul.f32 -1.442695, %v1921_v5  ;;  %v1922_v42 = vadd.f32 %v1871_v8, %v371_v22  ;;  %v1924_v13 = vadd.f32 %v1914_v21, %v484_v38  ;;  %v6751_v22 = vld [vmem:[#allocation5 + $0x70] sm:$0xff]   ;;  %v6756_v5 = vld [vmem:[#allocation5 + $0xb8] sm:$0xff]   ;;  %v6755_v8 = vld [vmem:[#allocation5 + $0x28] sm:$0xff]  }
 0x85b   :  { %v6752_v3 = vld [vmem:[#allocation5 + $0x30] sm:$0xff]   ;;  %v6761_v14 = vld [vmem:[#allocation5 + $0x58] sm:$0xff]   ;;  %v6764_v21 = vld [vmem:[#allocation5 + $0xa8] sm:$0xff]  }
 0x85c   :  { %7192 = vpow2.f32 %v6065_v32  ;;  %v6067_v11 = vmul.f32 -1.442695, %v1922_v42  ;;  %v6069_v29 = vmul.f32 -1.442695, %v1924_v13  ;;  %v6758_v32 = vld [vmem:[#allocation5 + $0xf0] sm:$0xff]   ;;  %v6757_v42 = vld [vmem:[#allocation5 + $0x60] sm:$0xff]  }
 0x85d   :  { %v6760_v34 = vld [vmem:[#allocation5 + $0xb0] sm:$0xff]   ;;  %v6766_v38 = vld [vmem:[#allocation5 + $0xe0] sm:$0xff]   ;;  %v6770_v13 = vld [vmem:[#allocation5 + $0xd8] sm:$0xff]  }
 0x85e   :  { %7194 = vpow2.f32 %v6067_v11  ;;  %v6759_v11 = vld [vmem:[#allocation5 + $0x20] sm:$0xff]  }
 0x85f   :  { %7196 = vtanh.f32 %v1919_v52  ;;  %v6768_v52 = vld [vmem:[#allocation5 + $0xa0] sm:$0xff]  }
 0x860   :  { %7198 = vpow2.f32 %v6068_v62  ;;  %v6767_v62 = vld [vmem:[#allocation5 + $0x10] sm:$0xff]  }
 0x865   :  { %v7189_v55 = vpop.eup %7188 }
 0x866   :  { %v1931_v37 = vadd.f32 1.0, %v7189_v55  ;;  %v6769_v55 = vld [vmem:[#allocation5 + $0x48] sm:$0xff]  }
 0x867   :  { %v7191_v49 = vpop.eup %7190 }
 0x868   :  { %7200 = vrcp.f32 %v1931_v37  ;;  %v1943_v16 = vadd.f32 1.0, %v7191_v49  ;;  %v6773_v37 = vld [vmem:[#allocation5 + $0x40] sm:$0xff]   ;;  %v6774_v49 = vld [vmem:[#allocation5 + $0xd0] sm:$0xff]  }
 0x869   :  { %v7193_v53 = vpop.eup %7192  ;;  %7202 = vtanh.f32 %v1923_v61  ;;  %v6772_v61 = vld [vmem:[#allocation5 + $0x98] sm:$0xff]  }
 0x86a   :  { %7204 = vrcp.f32 %v1943_v16  ;;  %v1932_v56 = vadd.f32 1.0, %v7193_v53  ;;  %v6776_v16 = vld [vmem:[#allocation5 + $0x90] sm:$0xff]   ;;  %v6777_v53 = vld [vmem:[#allocation5 + $0xc8] sm:$0xff]  }
 0x86b   :  { %v7195_v20 = vpop.eup %7194  ;;  %7206 = vpow2.f32 %v6069_v29  ;;  %v6775_v29 = vld [vmem:[#allocation5] sm:$0xff]  }
 0x86c   :  { %7208 = vrcp.f32 %v1932_v56  ;;  %v1944_v2 = vadd.f32 1.0, %v7195_v20  ;;  %v7197_v44 = vpop.eup %7196  ;;  %v6778_v56 = vld [vmem:[#allocation5 + $0x178] sm:$0xff]   ;;  %v6779_v20 = vld [vmem:[#allocation5 + $0x88] sm:$0xff]  }
 0x86d   :  { %v7199_v6 = vpop.eup %7198 }
 0x86e   :  { %7210 = vrcp.f32 %v1944_v2  ;;  %v1957_v58 = vadd.f32 1.0, %v7199_v6  ;;  %v6781_v2 = vld [vmem:[#allocation5 + $0xc0] sm:$0xff]  }
 0x870   :  { %7212 = vrcp.f32 %v1957_v58 }
 0x875   :  { %v7201_v15 = vpop.eup %7200 }
 0x876   :  { %v7203_v54 = vpop.eup %7202  ;;  %v1965_v60 = vmul.f32 %v7201_v15, %v7197_v44  ;;  %v6783_v44 = vld [vmem:[#allocation5 + $0x80] sm:$0xff]  }
 0x877   :  { %v7205_v57 = vpop.eup %7204 }
 0x878   :  { %v7207_v23 = vpop.eup %7206  ;;  %v1963_v51 = vmul.f32 %v7205_v57, %v8585_v30  ;;  %v6742_v30 = vld [vmem:[%s9520_s1] sm:$0xff]  }
 0x879   :  { %v7209_v10 = vpop.eup %7208  ;;  %v1958_v46 = vadd.f32 1.0, %v7207_v23 }
 0x87a   :  { %v1967_v33 = vadd.f32 %v1965_v60, %v1963_v51  ;;  %v1966_v43 = vmul.f32 %v7209_v10, %v7203_v54  ;;  %v6780_v10 = vld [vmem:[#allocation5 + $0x138] sm:$0xff]  }
 0x87b   :  { %v7211_v50 = vpop.eup %7210 }
 0x87c   :  { %7214 = vtanh.f32 %v1967_v33  ;;  %v1964_v48 = vmul.f32 %v7211_v50, %v8588_v63  ;;  %v6744_v63 = vld [vmem:[%s9520_s1 + $0x10] sm:$0xff]  }
 0x87d   :  { %7216 = vrcp.f32 %v1958_v46  ;;  %v7213_v0 = vpop.eup %7212  ;;  %v6782_v50 = vld [vmem:[#allocation5 + $0x170] sm:$0xff]  }
 0x87e   :  { %v1968_v7 = vadd.f32 %v1966_v43, %v1964_v48 }
 0x880   :  { %7218 = vtanh.f32 %v1968_v7  ;;  %v6784_v7 = vld [vmem:[#allocation5 + $0x130] sm:$0xff]  }
 0x889   :  { %v7215_v12 = vpop.eup %7214 }
 0x88a   :  { %v1971_v24 = vmul.f32 %v7215_v12, %v7213_v0  ;;  %v7217_v27 = vpop.eup %7216 }
 0x88d   :  { %v7219_v45 = vpop.eup %7218 }
 0x88e   :  { %v1972_v31 = vmul.f32 %v7219_v45, %v7217_v27 }
 0x890   :  { %v1973_v17 = vpack.c.bf16 %v1972_v31, %v1971_v24  ;;  %v6785_v24 = vld [vmem:[#allocation5 + $0x168] sm:$0xff]  }
 0x892   :  { %6543 = vmatpush3.bf16.msra.mxu0 %v1973_v17  ;;  %6549 = vmatpush3.bf16.msra.mxu1 %v1973_v17 }
 0x893   :  { %6554 = vmatprep.subr.bf16.mxu0 %v9540_v28  ;;  %6560 = vmatprep.subr.bf16.mxu1 %v9540_v28 }
 0x895   :  { %6545 = vmatmul.mubr.msk.bf16.vlgmr.msra.gmra.mxu0 %vm235_vm0, %v6742_v30  ;;  %6551 = vmatmul.mubr.msk.bf16.vlgmr.msra.gmra.mxu1 %vm235_vm0, %v6743_v35  ;;  %v6786_v30 = vld [vmem:[#allocation5 + $0x128] sm:$0xff]   ;;  %v6787_v35 = vld [vmem:[#allocation5 + $0x1b8] sm:$0xff]  }
 0x896   :  { %6555 = vmatpush3.bf16.msra.mxu0 %v1973_v17  ;;  %6561 = vmatpush3.bf16.msra.mxu1 %v1973_v17 }
 0x897   :  { %6556 = vmatprep.mubr.msk.bf16.mxu0 %vm7739_vm1, %v9540_v28  ;;  %6562 = vmatprep.mubr.msk.bf16.mxu1 %vm7739_vm1, %v9540_v28 }
 0x898   :  { %6566 = vmatprep.subr.bf16.mxu0 %v9540_v28  ;;  %6572 = vmatprep.subr.bf16.mxu1 %v9540_v28 }
 0x89d   :  { %6557 = vmatmul.mubr.msk.bf16.vlgmr.msra.gmra.mxu0 %vm235_vm0, %v6744_v63  ;;  %6563 = vmatmul.mubr.msk.bf16.vlgmr.msra.gmra.mxu1 %vm235_vm0, %v6745_v25 }
 0x89e   :  { %6567 = vmatpush3.bf16.msra.mxu0 %v1973_v17  ;;  %6573 = vmatpush3.bf16.msra.mxu1 %v1973_v17 }
 0x89f   :  { %6568 = vmatprep.mubr.msk.bf16.mxu0 %vm7739_vm1, %v9540_v28  ;;  %6578 = vmatprep.subr.bf16.mxu0 %v9540_v28 }
 0x8a0   :  { %6574 = vmatprep.mubr.msk.bf16.mxu1 %vm7739_vm1, %v9540_v28  ;;  %6378 = vmatprep.subr.bf16.mxu1 %v6749_v40  ;;  %v6788_v40 = vld [vmem:[#allocation5 + $0x160] sm:$0xff]  }
 0x8a5   :  { %6569 = vmatmul.mubr.msk.bf16.vlgmr.msra.gmra.mxu0 %vm235_vm0, %v6746_v4  ;;  %6575 = vmatmul.mubr.msk.bf16.vlgmr.msra.gmra.mxu1 %vm235_vm0, %v6747_v39 }
 0x8a6   :  { %6579 = vmatpush3.bf16.msra.mxu0 %v1973_v17  ;;  %6580 = vmatprep.mubr.msk.bf16.mxu0 %vm7739_vm1, %v9540_v28 }
 0x8a7   :  { %6379 = vmatpush3.bf16.msra.mxu1 %v6750_v41  ;;  %6400 = vmatprep.subr.bf16.mxu0 %v6754_v36  ;;  %v6789_v41 = vld [vmem:[#allocation5 + $0x120] sm:$0xff]   ;;  %v6790_v36 = vld [vmem:[#allocation5 + $0x1b0] sm:$0xff]  }
 0x8a8   :  { %6380 = vmatprep.subr.bf16.mxu1 %v6751_v22  ;;  %v6791_v22 = vld [vmem:[#allocation5 + $0x158] sm:$0xff]  }
 0x8ab   :  { %6381 = vmatpush3.bf16.msra.mxu1 %v6752_v3 }
 0x8ac   :  { %6382 = vmatprep.subr.bf16.mxu1 %v6753_v18 }
 0x8ad   :  { %6581 = vmatmul.mubr.msk.bf16.vlgmr.msra.gmra.mxu0 %vm235_vm0, %v6748_v19 }
 0x8ae   :  { %6401 = vmatpush3.bf16.msra.mxu0 %v6756_v5 }
 0x8af   :  { %6383 = vmatpush3.bf16.msra.mxu1 %v6755_v8  ;;  %6402 = vmatprep.subr.bf16.mxu0 %v6758_v32  ;;  %v6792_v8 = vld [vmem:[#allocation5 + $0x118] sm:$0xff]   ;;  %v6793_v32 = vld [vmem:[#allocation5 + $0x1a8] sm:$0xff]  }
 0x8b0   :  { %6384 = vmatprep.subr.bf16.mxu1 %v6757_v42 }
 0x8b2   :  { %6403 = vmatpush3.bf16.msra.mxu0 %v6760_v34  ;;  %v6794_v34 = vld [vmem:[#allocation5 + $0x150] sm:$0xff]  }
 0x8b3   :  { %6385 = vmatpush3.bf16.msra.mxu1 %v6759_v11  ;;  %6404 = vmatprep.subr.bf16.mxu0 %v6762_v26 }
 0x8b4   :  { %6386 = vmatprep.subr.bf16.mxu1 %v6761_v14 }
 0x8b6   :  { %6405 = vmatpush3.bf16.msra.mxu0 %v6764_v21  ;;  %v6795_v21 = vld [vmem:[#allocation5 + $0x110] sm:$0xff]  }
 0x8b7   :  { %6387 = vmatpush3.bf16.msra.mxu1 %v6763_v59  ;;  %6406 = vmatprep.subr.bf16.mxu0 %v6766_v38  ;;  %v6796_v59 = vld [vmem:[#allocation5 + $0x1a0] sm:$0xff]   ;;  %v6797_v38 = vld [vmem:[#allocation5 + $0x148] sm:$0xff]  }
 0x8b8   :  { %6388 = vmatprep.subr.bf16.mxu1 %v6765_v1 }
 0x8ba   :  { %6407 = vmatpush3.bf16.msra.mxu0 %v6768_v52 }
 0x8bb   :  { %6389 = vmatpush3.bf16.msra.mxu1 %v6767_v62  ;;  %6408 = vmatprep.subr.bf16.mxu0 %v6770_v13  ;;  %v6798_v62 = vld [vmem:[#allocation5 + $0x108] sm:$0xff]   ;;  %v6799_v13 = vld [vmem:[#allocation5 + $0x198] sm:$0xff]  }
 0x8bc   :  { %6390 = vmatprep.subr.bf16.mxu1 %v6769_v55  ;;  %v6800_v55 = vld [vmem:[#allocation5 + $0x140] sm:$0xff]  }
 0x8be   :  { %6409 = vmatpush3.bf16.msra.mxu0 %v6772_v61  ;;  %v6801_v61 = vld [vmem:[#allocation5 + $0x100] sm:$0xff]  }
 0x8bf   :  { %6391 = vmatpush3.bf16.msra.mxu1 %v6771_v9  ;;  %6410 = vmatprep.subr.bf16.mxu0 %v6774_v49  ;;  %v6803_v49 = vld [vmem:[#allocation5 + $0x188] sm:$0xff]  }
 0x8c0   :  { %6392 = vmatprep.subr.bf16.mxu1 %v6773_v37  ;;  %v6802_v37 = vld [vmem:[#allocation5 + $0x190] sm:$0xff]  }
 0x8c2   :  { %6411 = vmatpush3.bf16.msra.mxu0 %v6776_v16  ;;  %v6804_v16 = vld [vmem:[#allocation5 + $0x180] sm:$0xff]  }
 0x8c3   :  { %6393 = vmatpush3.bf16.msra.mxu1 %v6775_v29  ;;  %6412 = vmatprep.subr.bf16.mxu0 %v6777_v53 }
 0x8c4   :  { %6422 = vmatprep.subr.bf16.mxu1 %v6778_v56  ;;  %v6805_v56 = vld [vmem:[#allocation7 + $0xe0] ss:$16 sps:$4 sm:$0xff]  }
 0x8c6   :  { %6413 = vmatpush3.bf16.msra.mxu0 %v6779_v20  ;;  %v6807_v20 = vld [vmem:[#allocation7 + $0xe4] ss:$16 sps:$4 sm:$0xff]  }
 0x8c7   :  { %6414 = vmatprep.subr.bf16.mxu0 %v6781_v2  ;;  %v6808_v2 = vld [vmem:[#allocation7 + $0xe8] ss:$16 sps:$4 sm:$0xff]  }
 0x8ca   :  { %6415 = vmatpush3.bf16.msra.mxu0 %v6783_v44  ;;  %v6810_v44 = vld [vmem:[#allocation7 + $0xec] ss:$16 sps:$4 sm:$0xff]  }
 0x8cb   :  { %6584 = vmatprep.subr.bf16.mxu0 %v9540_v28 }
 0x955   :  { %v2018_v6 = vpop.f32.mrf.mxu0  ;;  %v2070_v15 = vpop.f32.mrf.mxu1 }
 0x957   :  { %v6546_v54 = vpop.f32.mrf.mxu0  ;;  %v6552_v60 = vpop.f32.mrf.mxu1 }
 0x958   :  { %v6811_v54 = vld [vmem:[#allocation7 + $0xc0] ss:$16 sps:$4 sm:$0xff]   ;;  %v6814_v60 = vld [vmem:[#allocation7 + $0xc8] ss:$16 sps:$4 sm:$0xff]  }
 0x959   :  { %v2021_v57 = vpop.f32.mrf.mxu0  ;;  %v2073_v58 = vpop.f32.mrf.mxu1 }
 0x95a   :  { %v2337_v23 = vpack.c.bf16 %v2021_v57, %v2018_v6  ;;  %v2338_v51 = vpack.c.bf16 %v2073_v58, %v2070_v15  ;;  %v6813_v6 = vld [vmem:[#allocation7 + $0xc4] ss:$16 sps:$4 sm:$0xff]   ;;  %v6816_v15 = vld [vmem:[#allocation7 + $0xcc] ss:$16 sps:$4 sm:$0xff]  }
 0x95b   :  { %v6547_v33 = vpop.f32.mrf.mxu0  ;;  %v6553_v43 = vpop.f32.mrf.mxu1  ;;  %v6819_v57 = vld [vmem:[#allocation7 + $0xa4] ss:$16 sps:$4 sm:$0xff]   ;;  %v6822_v58 = vld [vmem:[#allocation7 + $0xac] ss:$16 sps:$4 sm:$0xff]  }
 0x95c   :  { %2831 = vmatprep.mubr.bf16.mxu1 %v2338_v51  ;;  %v6820_v51 = vld [vmem:[#allocation7 + $0xa8] ss:$16 sps:$4 sm:$0xff]   ;;  %v6828_v33 = vld [vmem:[#allocation7 + $0x8c] ss:$16 sps:$4 sm:$0xff]   ;;  %v6823_v43 = vld [vmem:[#allocation7 + $0x80] ss:$16 sps:$4 sm:$0xff]  }
 0x95d   :  { %v2122_v46 = vpop.f32.mrf.mxu0  ;;  %v2174_v48 = vpop.f32.mrf.mxu1  ;;  %2832 = vmatmul.mubr.bf16.vlgmr.msra.gmra.mxu1 %v2337_v23  ;;  %v6817_v23 = vld [vmem:[#allocation7 + $0xa0] ss:$16 sps:$4 sm:$0xff]  }
 0x95e   :  { %6423 = vmatpush3.bf16.msra.mxu1 %v6780_v10  ;;  %v6825_v10 = vld [vmem:[#allocation7 + $0x84] ss:$16 sps:$4 sm:$0xff]  }
 0x95f   :  { %v6558_v0 = vpop.f32.mrf.mxu0  ;;  %v6564_v12 = vpop.f32.mrf.mxu1  ;;  %6424 = vmatprep.subr.bf16.mxu1 %v6782_v50  ;;  %v6826_v50 = vld [vmem:[#allocation7 + $0x88] ss:$16 sps:$4 sm:$0xff]  }
 0x960   :  { %v6834_v0 = vld [vmem:[#allocation7 + $0x6c] ss:$16 sps:$4 sm:$0xff]   ;;  %v6835_v12 = vld [vmem:[#allocation7 + $0x40] ss:$16 sps:$4 sm:$0xff]  }
 0x961   :  { %v2125_v27 = vpop.f32.mrf.mxu0  ;;  %v2177_v45 = vpop.f32.mrf.mxu1 }
 0x962   :  { %v2339_v31 = vpack.c.bf16 %v2125_v27, %v2122_v46  ;;  %v2340_v17 = vpack.c.bf16 %v2177_v45, %v2174_v48  ;;  %6425 = vmatpush3.bf16.msra.mxu1 %v6784_v7  ;;  %v6829_v46 = vld [vmem:[#allocation7 + $0x60] ss:$16 sps:$4 sm:$0xff]   ;;  %v6831_v48 = vld [vmem:[#allocation7 + $0x64] ss:$16 sps:$4 sm:$0xff]   ;;  %v6832_v7 = vld [vmem:[#allocation7 + $0x68] ss:$16 sps:$4 sm:$0xff]  }
 0x963   :  { %v6559_v63 = vpop.f32.mrf.mxu0  ;;  %v6565_v25 = vpop.f32.mrf.mxu1  ;;  %6426 = vmatprep.subr.bf16.mxu1 %v6785_v24  ;;  %v6837_v24 = vld [vmem:[#allocation7 + $0x44] ss:$16 sps:$4 sm:$0xff]   ;;  %v6838_v27 = vld [vmem:[#allocation7 + $0x48] ss:$16 sps:$4 sm:$0xff]   ;;  %v6840_v45 = vld [vmem:[#allocation7 + $0x4c] ss:$16 sps:$4 sm:$0xff]  }
 0x964   :  { %2872 = vmatprep.mubr.bf16.mxu0 %v2340_v17  ;;  %v6843_v17 = vld [vmem:[#allocation7 + $0x24] ss:$16 sps:$4 sm:$0xff]   ;;  %v6852_v25 = vld [vmem:[#allocation7 + $0xc] ss:$16 sps:$4 sm:$0xff]  }
 0x965   :  { %2873 = vmatmul.mubr.bf16.vlgmr.msra.gmra.mxu0 %v2339_v31  ;;  %v2226_v4 = vpop.f32.mrf.mxu0  ;;  %v2278_v39 = vpop.f32.mrf.mxu1  ;;  %v6841_v31 = vld [vmem:[#allocation7 + $0x20] ss:$16 sps:$4 sm:$0xff]   ;;  %v6849_v63 = vld [vmem:[#allocation7 + $0x4] ss:$16 sps:$4 sm:$0xff]  }
 0x966   :  { %6427 = vmatpush3.bf16.msra.mxu1 %v6786_v30  ;;  %6585 = vmatpush3.bf16.msra.mxu0 %v6787_v35  ;;  %v6844_v30 = vld [vmem:[#allocation7 + $0x28] ss:$16 sps:$4 sm:$0xff]   ;;  %v6846_v35 = vld [vmem:[#allocation7 + $0x2c] ss:$16 sps:$4 sm:$0xff]  }
 0x967   :  { %6428 = vmatprep.subr.bf16.mxu1 %v6788_v40  ;;  %6586 = vmatprep.subr.bf16.mxu0 %v9540_v28  ;;  %v6570_v3 = vpop.f32.mrf.mxu0  ;;  %v6576_v18 = vpop.f32.mrf.mxu1  ;;  %v6847_v40 = vld [vmem:[#allocation7] ss:$16 sps:$4 sm:$0xff]  }
 0x968   :  { %6600 = vmatprep.mubr.msk.bf16.mxu0 %vm7739_vm1, %v9540_v28 }
 0x969   :  { %v2229_v19 = vpop.f32.mrf.mxu0  ;;  %v2281_v5 = vpop.f32.mrf.mxu1 }
 0x96a   :  { %6429 = vmatpush3.bf16.msra.mxu1 %v6789_v41  ;;  %6587 = vmatpush3.bf16.msra.mxu0 %v6790_v36  ;;  %v2342_v42 = vpack.c.bf16 %v2281_v5, %v2278_v39  ;;  %v2341_v29 = vpack.c.bf16 %v2229_v19, %v2226_v4  ;;  %v6850_v4 = vld [vmem:[#allocation7 + $0x8] ss:$16 sps:$4 sm:$0xff]  }
 0x96b   :  { %6430 = vmatprep.subr.bf16.mxu1 %v6791_v22  ;;  %6588 = vmatprep.subr.bf16.mxu0 %v9540_v28  ;;  %v6571_v11 = vpop.f32.mrf.mxu0  ;;  %v6577_v26 = vpop.f32.mrf.mxu1 }
 0x96c   :  { %2913 = vmatprep.mubr.bf16.mxu1 %v2342_v42 }
 0x96d   :  { %v2330_v14 = vpop.f32.mrf.mxu0 }
 0x96e   :  { %6431 = vmatpush3.bf16.msra.mxu1 %v6792_v8  ;;  %6589 = vmatpush3.bf16.msra.mxu0 %v6793_v32  ;;  %v6096_v32 = vld [vmem:[%s9525_s6] ss:$0 sm:$0xff] }
 0x96f   :  { %6432 = vmatprep.subr.bf16.mxu1 %v6794_v34  ;;  %6590 = vmatprep.subr.bf16.mxu0 %v9540_v28  ;;  %v6582_v1 = vpop.f32.mrf.mxu0 }
 0x971   :  { %v2333_v52 = vpop.f32.mrf.mxu0 }
 0x972   :  { %6433 = vmatpush3.bf16.msra.mxu1 %v6795_v21  ;;  %6591 = vmatpush3.bf16.msra.mxu0 %v6796_v59  ;;  %v2343_v53 = vpack.c.bf16 %v2333_v52, %v2330_v14 }
 0x973   :  { %6434 = vmatprep.subr.bf16.mxu1 %v6797_v38  ;;  %6592 = vmatprep.subr.bf16.mxu0 %v9540_v28  ;;  %v6583_v9 = vpop.f32.mrf.mxu0 }
 0x976   :  { %6435 = vmatpush3.bf16.msra.mxu1 %v6798_v62  ;;  %6593 = vmatpush3.bf16.msra.mxu0 %v6799_v13 }
 0x977   :  { %6436 = vmatprep.subr.bf16.mxu1 %v6800_v55  ;;  %6594 = vmatprep.subr.bf16.mxu0 %v9540_v28 }
 0x97a   :  { %6437 = vmatpush3.bf16.msra.mxu1 %v6801_v61  ;;  %6595 = vmatpush3.bf16.msra.mxu0 %v6802_v37 }
 0x97b   :  { %6596 = vmatprep.subr.bf16.mxu0 %v9540_v28  ;;  %3158 = vmatprep.subr.bf16.mxu1 %v6807_v20 }
 0x97d   :  { %2914 = vmatmul.mubr.bf16.vlgmr.msra.gmra.mxu1 %v2341_v29 }
 0x97e   :  { %6597 = vmatpush3.bf16.msra.mxu0 %v6803_v49  ;;  %3190 = vmatprep.mubr.bf16.mxu1 %v9587_v47 }
 0x97f   :  { %6598 = vmatprep.subr.bf16.mxu0 %v9540_v28  ;;  %3159 = vmatpush1.bf16.msra.mxu1 %v6805_v56 }
 0x980   :  { %3160 = vmatprep.subr.bf16.mxu1 %v6813_v6 }
 0x982   :  { %6599 = vmatpush3.bf16.msra.mxu0 %v6804_v16 }
 0x983   :  { %3201 = vmatprep.subr.bf16.mxu0 %v6810_v44  ;;  %3161 = vmatpush1.bf16.msra.mxu1 %v6811_v54 }
 0x984   :  { %3162 = vmatprep.subr.bf16.mxu1 %v6819_v57 }
 0x985   :  { %6601 = vmatmul.mubr.bf16.vlgmr.msra.gmra.mxu0 %v2343_v53 }
 0x986   :  { %3233 = vmatprep.mubr.bf16.mxu0 %v9587_v47  ;;  %3202 = vmatpush1.bf16.msra.mxu0 %v6808_v2 }
 0x987   :  { %3203 = vmatprep.subr.bf16.mxu0 %v6816_v15  ;;  %3163 = vmatpush1.bf16.msra.mxu1 %v6817_v23 }
 0x988   :  { %3164 = vmatprep.subr.bf16.mxu1 %v6825_v10 }
 0x98a   :  { %3204 = vmatpush1.bf16.msra.mxu0 %v6814_v60 }
 0x98b   :  { %3205 = vmatprep.subr.bf16.mxu0 %v6822_v58  ;;  %3165 = vmatpush1.bf16.msra.mxu1 %v6823_v43  ;;  %v8670_v43 = vld [vmem:[#allocation8 + $0xe4] ss:$16 sps:$4 sm:$0xff]  }
 0x98c   :  { %3166 = vmatprep.subr.bf16.mxu1 %v6831_v48 }
 0x98e   :  { %3206 = vmatpush1.bf16.msra.mxu0 %v6820_v51 }
 0x98f   :  { %3207 = vmatprep.subr.bf16.mxu0 %v6828_v33  ;;  %3167 = vmatpush1.bf16.msra.mxu1 %v6829_v46 }
 0x990   :  { %3168 = vmatprep.subr.bf16.mxu1 %v6837_v24  ;;  %v7538_v24 = vld [vmem:[%s9519_s0] sm:$0xff]  }
 0x992   :  { %3208 = vmatpush1.bf16.msra.mxu0 %v6826_v50  ;;  %v8672_v50 = vld [vmem:[#allocation8 + $0xec] ss:$16 sps:$4 sm:$0xff]  }
 0x993   :  { %3209 = vmatprep.subr.bf16.mxu0 %v6834_v0  ;;  %3169 = vmatpush1.bf16.msra.mxu1 %v6835_v12  ;;  %v8677_v0 = vld [vmem:[#allocation8 + $0xc4] ss:$16 sps:$4 sm:$0xff]   ;;  %v8680_v12 = vld [vmem:[#allocation8 + $0xe8] ss:$16 sps:$4 sm:$0xff]  }
 0x994   :  { %3170 = vmatprep.subr.bf16.mxu1 %v6843_v17  ;;  %v8698_v17 = vld [vmem:[#allocation8 + $0xc8] ss:$16 sps:$4 sm:$0xff]  }
 0x996   :  { %3210 = vmatpush1.bf16.msra.mxu0 %v6832_v7  ;;  %v8674_v7 = vld [vmem:[#allocation8 + $0xe0] ss:$16 sps:$4 sm:$0xff]  }
 0x997   :  { %3211 = vmatprep.subr.bf16.mxu0 %v6840_v45  ;;  %3171 = vmatpush1.bf16.msra.mxu1 %v6841_v31  ;;  %v8691_v45 = vld [vmem:[#allocation8 + $0xc0] ss:$16 sps:$4 sm:$0xff]   ;;  %v8695_v31 = vld [vmem:[#allocation8 + $0xa4] ss:$16 sps:$4 sm:$0xff]  }
 0x998   :  { %3172 = vmatprep.subr.bf16.mxu1 %v6849_v63  ;;  %v8707_v63 = vld [vmem:[#allocation8 + $0x84] ss:$16 sps:$4 sm:$0xff]  }
 0x99a   :  { %3212 = vmatpush1.bf16.msra.mxu0 %v6838_v27  ;;  %v8687_v27 = vld [vmem:[#allocation8 + $0xcc] ss:$16 sps:$4 sm:$0xff]  }
 0x99b   :  { %3213 = vmatprep.subr.bf16.mxu0 %v6846_v35  ;;  %3173 = vmatpush1.bf16.msra.mxu1 %v6847_v40  ;;  %v8705_v35 = vld [vmem:[#allocation8 + $0xac] ss:$16 sps:$4 sm:$0xff]  }
 0x99c   :  { %v7539_v40 = vld [vmem:[%s9519_s0 + $0x8] sm:$0xff]  }
 0x99e   :  { %3214 = vmatpush1.bf16.msra.mxu0 %v6844_v30  ;;  %v8703_v30 = vld [vmem:[#allocation8 + $0xa0] ss:$16 sps:$4 sm:$0xff]  }
 0x99f   :  { %3215 = vmatprep.subr.bf16.mxu0 %v6852_v25  ;;  %v8710_v25 = vld [vmem:[#allocation8 + $0xa8] ss:$16 sps:$4 sm:$0xff]  }
 0x9a2   :  { %3216 = vmatpush1.bf16.msra.mxu0 %v6850_v4  ;;  %v8717_v4 = vld [vmem:[#allocation8 + $0x8c] ss:$16 sps:$4 sm:$0xff]  }
 0xa1d   :  { %v6394_v39 = vpop.f32.mrf.mxu1 }
 0xa1f   :  { %v6395_v41 = vpop.f32.mrf.mxu1 }
 0xa20   :  { %v6396_v8 = vadd.f32 %v6395_v41, %v6394_v39  ;;  %v8722_v39 = vld [vmem:[#allocation8 + $0x80] ss:$16 sps:$4 sm:$0xff]   ;;  %v8726_v41 = vld [vmem:[#allocation8 + $0x64] ss:$16 sps:$4 sm:$0xff]  }
 0xa21   :  { %v6397_v22 = vpop.f32.mrf.mxu1 }
 0xa22   :  { %v2834_v21 = vadd.f32 %v6396_v8, %v6096_v32  ;;  %v8748_v8 = vld [vmem:[#allocation8 + $0x4c] ss:$16 sps:$4 sm:$0xff]  }
 0xa23   :  { %v6398_v18 = vpop.f32.mrf.mxu1 }
 0xa24   :  { %v6399_v11 = vadd.f32 %v6398_v18, %v6397_v22  ;;  %v8733_v22 = vld [vmem:[#allocation8 + $0x60] ss:$16 sps:$4 sm:$0xff]   ;;  %v8738_v18 = vld [vmem:[#allocation8 + $0x44] ss:$16 sps:$4 sm:$0xff]  }
 0xa25   :  { %v6416_v36 = vpop.f32.mrf.mxu0 }
 0xa26   :  { %v2837_v52 = vadd.f32 %v6399_v11, %v6096_v32  ;;  %v8753_v32 = vld [vmem:[#allocation8 + $0x40] ss:$16 sps:$4 sm:$0xff]  }
 0xa27   :  { %v6417_v3 = vpop.f32.mrf.mxu0  ;;  %v8764_v11 = vld [vmem:[#allocation8 + $0x20] ss:$16 sps:$4 sm:$0xff]  }
 0xa28   :  { %v6418_v26 = vadd.f32 %v6417_v3, %v6416_v36  ;;  %v8729_v36 = vld [vmem:[#allocation8 + $0x88] ss:$16 sps:$4 sm:$0xff]   ;;  %v8735_v3 = vld [vmem:[#allocation8 + $0x6c] ss:$16 sps:$4 sm:$0xff]  }
 0xa29   :  { %v6419_v19 = vpop.f32.mrf.mxu0 }
 0xa2a   :  { %v2875_v62 = vadd.f32 %v6418_v26, %v2834_v21  ;;  %v8766_v26 = vld [vmem:[#allocation8 + $0x2c] ss:$16 sps:$4 sm:$0xff]   ;;  %v8772_v21 = vld [vmem:[#allocation8 + $0x4] ss:$16 sps:$4 sm:$0xff]  }
 0xa2b   :  { %v6420_v42 = vpop.f32.mrf.mxu0 }
 0xa2c   :  { %v6421_v59 = vadd.f32 %v6420_v42, %v6419_v19  ;;  %v8741_v19 = vld [vmem:[#allocation8 + $0x68] ss:$16 sps:$4 sm:$0xff]   ;;  %v8758_v42 = vld [vmem:[#allocation8 + $0x24] ss:$16 sps:$4 sm:$0xff]  }
 0xa2e   :  { %v2878_v9 = vadd.f32 %v6421_v59, %v2837_v52  ;;  %v7541_v59 = vld [vmem:[%s9519_s0 + $0x18] sm:$0xff]  }
 0xa2f   :  { %v8789_v52 = vld [vmem:[#allocation8 + $0x8] ss:$16 sps:$4 sm:$0xff]  }
 0xa3d   :  { %v6438_v5 = vpop.f32.mrf.mxu1 }
 0xa3f   :  { %v6439_v34 = vpop.f32.mrf.mxu1 }
 0xa40   :  { %v6440_v38 = vadd.f32 %v6439_v34, %v6438_v5  ;;  %v7540_v5 = vld [vmem:[%s9519_s0 + $0x10] sm:$0xff]   ;;  %v8760_v34 = vld [vmem:[#allocation8 + $0x48] ss:$16 sps:$4 sm:$0xff]  }
 0xa41   :  { %v6441_v14 = vpop.f32.mrf.mxu1 }
 0xa42   :  { %v2916_v61 = vadd.f32 %v6440_v38, %v2875_v62  ;;  %v8779_v38 = vld [vmem:[#allocation8 + $0xc] ss:$16 sps:$4 sm:$0xff]   ;;  %v7542_v62 = vld [vmem:[%s9519_s0 + $0x20] sm:$0xff]  }
 0xa43   :  { %v6442_v1 = vpop.f32.mrf.mxu1 }
 0xa44   :  { %v6443_v13 = vadd.f32 %v6442_v1, %v6441_v14  ;;  %v8770_v14 = vld [vmem:[#allocation8 + $0x28] ss:$16 sps:$4 sm:$0xff]   ;;  %v8785_v1 = vld [vmem:[#allocation8] ss:$16 sps:$4 sm:$0xff]  }
 0xa45   :  { %v2956_v55 = vpop.f32.mrf.mxu0 }
 0xa46   :  { %v2957_v49 = vadd.f32 %v2956_v55, %v2916_v61  ;;  %v2919_v29 = vadd.f32 %v6443_v13, %v2878_v9  ;;  %v7543_v13 = vld [vmem:[%s9519_s0 + $0x28] sm:$0xff]   ;;  %v7544_v55 = vld [vmem:[%s9519_s0 + $0x30] sm:$0xff]   ;;  %v7545_v9 = vld [vmem:[%s9519_s0 + $0x38] sm:$0xff]  }
 0xa47   :  { %v6602_v37 = vpop.f32.mrf.mxu0 }
 0xa48   :  { %v2963_v20 = vmax.f32 %v2957_v49, 0.0 }
 0xa49   :  { %v2959_v16 = vpop.f32.mrf.mxu0 }
 0xa4a   :  { %v2960_v53 = vadd.f32 %v2959_v16, %v2919_v29  ;;  %v3248_v16 = vld [vmem:[#allocation10] sm:$0xf] }
 0xa4b   :  { %v6603_v56 = vpop.f32.mrf.mxu0 }
 0xa4c   :  { %v2964_v2 = vmax.f32 %v2960_v53, 0.0 }
 0xa4e   :  { %v2965_v44 = vpack.c.bf16 %v2964_v2, %v2963_v20 }
 0xa50   :  { %3191 = vmatmul.mubr.bf16.vlgmr.msra.gmra.mxu1 %v2965_v44  ;;  %3234 = vmatmul.mubr.bf16.vlgmr.msra.gmra.mxu0 %v2965_v44  ;;  %v9632_v44 = vld [vmem:[#allocation18_spill] sm:$0xff] }
 0xa51   :  { %3302 = vmatprep.mubr.bf16.mxu1 %v9587_v47  ;;  %3415 = vmatprep.mubr.bf16.mxu0 %v9587_v47 }
 0xb10   :  { %v3192_v6 = vpop.f32.mrf.mxu1  ;;  %v3235_v15 = vpop.f32.mrf.mxu0 }
 0xb12   :  { %v3194_v54 = vpop.f32.mrf.mxu1  ;;  %v3237_v60 = vpop.f32.mrf.mxu0 }
 0xb14   :  { %v3196_v57 = vpop.f32.mrf.mxu1  ;;  %v3239_v58 = vpop.f32.mrf.mxu0 }
 0xb15   :  { %v3244_v46 = vpack.c.bf16 %v3196_v57, %v3192_v6  ;;  %v3246_v48 = vpack.c.bf16 %v3239_v58, %v3235_v15  ;;  %v9633_v6 = vsub.s32 0, %v9632_v44 }
 0xb16   :  { %v3198_v23 = vpop.f32.mrf.mxu1  ;;  %v3241_v51 = vpop.f32.mrf.mxu0 }
 0xb17   :  { %v3245_v10 = vpack.c.bf16 %v3198_v23, %v3194_v54  ;;  %v3247_v33 = vpack.c.bf16 %v3241_v51, %v3237_v60  ;;  %v8878_v15 = vrot.slane %v3248_v16, %v9633_v6  ;;  %v9634_v54 = vsub.s32 2, %v9632_v44 }
 0xb18   :  { %v9635_v23 = vsub.s32 1, %v9632_v44 }
 0xb19   :  { %3284 = vmatprep.subr.bf16.mxu1 %v3245_v10  ;;  %3397 = vmatprep.subr.bf16.mxu0 %v3247_v33  ;;  %v8882_v60 = vrot.slane %v3248_v16, %v9634_v54  ;;  %v9636_v10 = vsub.s32 3, %v9632_v44 }
 0xb1a   :  { %3285 = vmatpush1.bf16.msra.mxu1 %v3244_v46  ;;  %3398 = vmatpush1.bf16.msra.mxu0 %v3246_v48  ;;  %v8886_v51 = vrot.slane %v3248_v16, %v9635_v23 }
 0xb1b   :  { %3760 = vmatprep.subr.bf16.mxu1 %v8670_v43  ;;  %3803 = vmatprep.subr.bf16.mxu0 %v8672_v50  ;;  %v8890_v33 = vrot.slane %v3248_v16, %v9636_v10 }
 0xb1d   :  { %6185 = vmatmul.mubr.msk.bf16.vlgmr.msra.gmra.mxu1 %vm235_vm0, %v7538_v24  ;;  %6193 = vmatmul.mubr.msk.bf16.vlgmr.msra.gmra.mxu0 %vm235_vm0, %v7538_v24 }
 0xb1e   :  { %3761 = vmatpush1.bf16.msra.mxu1 %v8674_v7  ;;  %3312 = vmatprep.mubr.bf16.mxu1 %v9587_v47 }
 0xb1f   :  { %3425 = vmatprep.mubr.bf16.mxu0 %v9587_v47  ;;  %3762 = vmatprep.subr.bf16.mxu1 %v8677_v0 }
 0xb20   :  { %3804 = vmatpush1.bf16.msra.mxu0 %v8680_v12 }
 0xb21   :  { %3805 = vmatprep.subr.bf16.mxu0 %v8687_v27 }
 0xb22   :  { %3763 = vmatpush1.bf16.msra.mxu1 %v8691_v45 }
 0xb23   :  { %3764 = vmatprep.subr.bf16.mxu1 %v8695_v31 }
 0xb24   :  { %3806 = vmatpush1.bf16.msra.mxu0 %v8698_v17 }
 0xb25   :  { %6186 = vmatmul.mubr.msk.bf16.gmra.mxu1 %vm235_vm0, %v7539_v40  ;;  %6194 = vmatmul.mubr.msk.bf16.gmra.mxu0 %vm235_vm0, %v7539_v40 }
 0xb26   :  { %3322 = vmatprep.mubr.bf16.mxu1 %v9587_v47  ;;  %3435 = vmatprep.mubr.bf16.mxu0 %v9587_v47 }
 0xb27   :  { %3765 = vmatpush1.bf16.msra.mxu1 %v8703_v30  ;;  %3807 = vmatprep.subr.bf16.mxu0 %v8705_v35 }
 0xb28   :  { %3766 = vmatprep.subr.bf16.mxu1 %v8707_v63  ;;  %3808 = vmatpush1.bf16.msra.mxu0 %v8710_v25 }
 0xb29   :  { %3809 = vmatprep.subr.bf16.mxu0 %v8717_v4 }
 0xb2b   :  { %3767 = vmatpush1.bf16.msra.mxu1 %v8722_v39 }
 0xb2c   :  { %3768 = vmatprep.subr.bf16.mxu1 %v8726_v41  ;;  %3810 = vmatpush1.bf16.msra.mxu0 %v8729_v36 }
 0xb2d   :  { %6187 = vmatmul.mubr.msk.bf16.gmra.mxu1 %vm235_vm0, %v7540_v5  ;;  %6195 = vmatmul.mubr.msk.bf16.gmra.mxu0 %vm235_vm0, %v7540_v5 }
 0xb2e   :  { %3332 = vmatprep.mubr.bf16.mxu1 %v9587_v47  ;;  %3445 = vmatprep.mubr.bf16.mxu0 %v9587_v47 }
 0xb2f   :  { %3769 = vmatpush1.bf16.msra.mxu1 %v8733_v22  ;;  %3811 = vmatprep.subr.bf16.mxu0 %v8735_v3 }
 0xb30   :  { %3770 = vmatprep.subr.bf16.mxu1 %v8738_v18  ;;  %3812 = vmatpush1.bf16.msra.mxu0 %v8741_v19 }
 0xb31   :  { %3813 = vmatprep.subr.bf16.mxu0 %v8748_v8 }
 0xb33   :  { %3771 = vmatpush1.bf16.msra.mxu1 %v8753_v32 }
 0xb34   :  { %3772 = vmatprep.subr.bf16.mxu1 %v8758_v42  ;;  %3814 = vmatpush1.bf16.msra.mxu0 %v8760_v34 }
 0xb35   :  { %6188 = vmatmul.mubr.msk.bf16.gmra.mxu1 %vm235_vm0, %v7541_v59  ;;  %6196 = vmatmul.mubr.msk.bf16.gmra.mxu0 %vm235_vm0, %v7541_v59 }
 0xb36   :  { %3342 = vmatprep.mubr.bf16.mxu1 %v9587_v47  ;;  %3455 = vmatprep.mubr.bf16.mxu0 %v9587_v47 }
 0xb37   :  { %3773 = vmatpush1.bf16.msra.mxu1 %v8764_v11  ;;  %3815 = vmatprep.subr.bf16.mxu0 %v8766_v26 }
 0xb38   :  { %3816 = vmatpush1.bf16.msra.mxu0 %v8770_v14  ;;  %3774 = vmatprep.subr.bf16.mxu1 %v8772_v21 }
 0xb39   :  { %3817 = vmatprep.subr.bf16.mxu0 %v8779_v38 }
 0xb3b   :  { %3775 = vmatpush1.bf16.msra.mxu1 %v8785_v1 }
 0xb3c   :  { %3818 = vmatpush1.bf16.msra.mxu0 %v8789_v52  ;;  %3911 = vmatprep.subr.bf16.mxu1 %v8670_v43 }
 0xb3d   :  { %6189 = vmatmul.mubr.msk.bf16.gmra.mxu1 %vm235_vm0, %v7542_v62  ;;  %6197 = vmatmul.mubr.msk.bf16.gmra.mxu0 %vm235_vm0, %v7542_v62 }
 0xb3e   :  { %3352 = vmatprep.mubr.bf16.mxu1 %v9587_v47  ;;  %3465 = vmatprep.mubr.bf16.mxu0 %v9587_v47 }
 0xb3f   :  { %3954 = vmatprep.subr.bf16.mxu0 %v8672_v50 }
 0xb45   :  { %6190 = vmatmul.mubr.msk.bf16.gmra.mxu1 %vm235_vm0, %v7543_v13  ;;  %6198 = vmatmul.mubr.msk.bf16.gmra.mxu0 %vm235_vm0, %v7543_v13 }
 0xb46   :  { %3362 = vmatprep.mubr.bf16.mxu1 %v9587_v47  ;;  %3475 = vmatprep.mubr.bf16.mxu0 %v9587_v47 }
 0xb4d   :  { %6191 = vmatmul.mubr.msk.bf16.gmra.mxu1 %vm235_vm0, %v7544_v55  ;;  %6199 = vmatmul.mubr.msk.bf16.gmra.mxu0 %vm235_vm0, %v7544_v55 }
 0xb4e   :  { %3372 = vmatprep.mubr.bf16.mxu1 %v9587_v47  ;;  %3485 = vmatprep.mubr.bf16.mxu0 %v9587_v47 }
 0xb55   :  { %6192 = vmatmul.mubr.msk.bf16.gmra.mxu1 %vm235_vm0, %v7545_v9  ;;  %6200 = vmatmul.mubr.msk.bf16.gmra.mxu0 %vm235_vm0, %v7545_v9 }
 0xb56   :  { %3792 = vmatprep.mubr.bf16.mxu1 %v9587_v47  ;;  %3835 = vmatprep.mubr.bf16.mxu0 %v9587_v47 }
 0xb5d   :  { %3793 = vmatmul.mubr.bf16.vlgmr.msra.gmra.mxu1 %v9587_v47  ;;  %3836 = vmatmul.mubr.bf16.vlgmr.msra.gmra.mxu0 %v9587_v47 }
 0xb5e   :  { %3912 = vmatpush1.bf16.msra.mxu1 %v8674_v7  ;;  %3955 = vmatpush1.bf16.msra.mxu0 %v8680_v12 }
 0xb5f   :  { %3913 = vmatprep.subr.bf16.mxu1 %v8677_v0  ;;  %3956 = vmatprep.subr.bf16.mxu0 %v8687_v27 }
 0xb60   :  { %3943 = vmatprep.mubr.bf16.mxu1 %v9587_v47  ;;  %3986 = vmatprep.mubr.bf16.mxu0 %v9587_v47 }
 0xb62   :  { %3914 = vmatpush1.bf16.msra.mxu1 %v8691_v45  ;;  %3957 = vmatpush1.bf16.msra.mxu0 %v8698_v17 }
 0xb63   :  { %3915 = vmatprep.subr.bf16.mxu1 %v8695_v31  ;;  %3958 = vmatprep.subr.bf16.mxu0 %v8705_v35 }
 0xb66   :  { %3916 = vmatpush1.bf16.msra.mxu1 %v8703_v30  ;;  %3959 = vmatpush1.bf16.msra.mxu0 %v8710_v25 }
 0xb67   :  { %3917 = vmatprep.subr.bf16.mxu1 %v8707_v63  ;;  %3960 = vmatprep.subr.bf16.mxu0 %v8717_v4 }
 0xb6a   :  { %3918 = vmatpush1.bf16.msra.mxu1 %v8722_v39  ;;  %3961 = vmatpush1.bf16.msra.mxu0 %v8729_v36 }
 0xb6b   :  { %3919 = vmatprep.subr.bf16.mxu1 %v8726_v41  ;;  %3962 = vmatprep.subr.bf16.mxu0 %v8735_v3 }
 0xb6e   :  { %3920 = vmatpush1.bf16.msra.mxu1 %v8733_v22  ;;  %3963 = vmatpush1.bf16.msra.mxu0 %v8741_v19 }
 0xb6f   :  { %3921 = vmatprep.subr.bf16.mxu1 %v8738_v18  ;;  %3964 = vmatprep.subr.bf16.mxu0 %v8748_v8 }
 0xb72   :  { %3922 = vmatpush1.bf16.msra.mxu1 %v8753_v32  ;;  %3965 = vmatpush1.bf16.msra.mxu0 %v8760_v34 }
 0xb73   :  { %3923 = vmatprep.subr.bf16.mxu1 %v8758_v42  ;;  %3966 = vmatprep.subr.bf16.mxu0 %v8766_v26 }
 0xb76   :  { %3924 = vmatpush1.bf16.msra.mxu1 %v8764_v11  ;;  %3967 = vmatpush1.bf16.msra.mxu0 %v8770_v14 }
 0xb77   :  { %3925 = vmatprep.subr.bf16.mxu1 %v8772_v21  ;;  %3968 = vmatprep.subr.bf16.mxu0 %v8779_v38 }
 0xb7a   :  { %3926 = vmatpush1.bf16.msra.mxu1 %v8785_v1  ;;  %3969 = vmatpush1.bf16.msra.mxu0 %v8789_v52 }
 0xb7b   :  { %4062 = vmatprep.subr.bf16.mxu1 %v8670_v43  ;;  %4105 = vmatprep.subr.bf16.mxu0 %v8672_v50 }
 0xbdd   :  { %v8860_v61 = vpop.f32.mrf.mxu1  ;;  %v8862_v37 = vpop.f32.mrf.mxu0 }
 0xbdf   :  { %v8864_v49 = vpop.f32.mrf.mxu1  ;;  %v8866_v29 = vpop.f32.mrf.mxu0 }
 0xbe1   :  { %v8868_v53 = vpop.f32.mrf.mxu1  ;;  %v8870_v56 = vpop.f32.mrf.mxu0 }
 0xbe3   :  { %v8872_v20 = vpop.f32.mrf.mxu1  ;;  %v8874_v2 = vpop.f32.mrf.mxu0 }
 0xbe5   :  { %v3314_v57 = vpop.f32.mrf.mxu1  ;;  %v3427_v58 = vpop.f32.mrf.mxu0 }
 0xbe6   :  { %v8893_v46 = vadd.f32 %v3314_v57, %v8878_v15  ;;  %v8896_v48 = vadd.f32 %v3427_v58, %v8882_v60 }
 0xbe7   :  { %v3316_v24 = vpop.f32.mrf.mxu1  ;;  %v3429_v40 = vpop.f32.mrf.mxu0 }
 0xbe8   :  { %9637 = vst [vmem:[#allocation20_spill] sm:$0xff] %v8896_v48  ;;  %v8899_v5 = vadd.f32 %v3316_v24, %v8886_v51  ;;  %v8902_v59 = vadd.f32 %v3429_v40, %v8890_v33 }
 0xbe9   :  { %v3318_v62 = vpop.f32.mrf.mxu1  ;;  %v3431_v13 = vpop.f32.mrf.mxu0 }
 0xbea   :  { %9638 = vst [vmem:[#allocation22_spill] sm:$0xff] %v8902_v59  ;;  %v8905_v55 = vadd.f32 %v3318_v62, %v8878_v15  ;;  %v8908_v9 = vadd.f32 %v3431_v13, %v8882_v60 }
 0xbeb   :  { %v3320_v16 = vpop.f32.mrf.mxu1  ;;  %v3433_v44 = vpop.f32.mrf.mxu0 }
 0xbec   :  { %9639 = vst [vmem:[#allocation19_spill] sm:$0xff] %v8908_v9  ;;  %v8911_v6 = vadd.f32 %v3320_v16, %v8886_v51  ;;  %v8914_v54 = vadd.f32 %v3433_v44, %v8890_v33 }
 0xbed   :  { %v3324_v57 = vpop.f32.mrf.mxu1  ;;  %v3437_v58 = vpop.f32.mrf.mxu0 }
 0xbee   :  { %9640 = vst [vmem:[#allocation21_spill] sm:$0xff] %v8914_v54  ;;  %v8917_v23 = vadd.f32 %v3324_v57, %v8878_v15  ;;  %v8920_v10 = vadd.f32 %v3437_v58, %v8882_v60 }
 0xbef   :  { %v3326_v24 = vpop.f32.mrf.mxu1  ;;  %v3439_v40 = vpop.f32.mrf.mxu0 }
 0xbf0   :  { %9641 = vst [vmem:[#allocation23_spill] sm:$0xff] %v8917_v23  ;;  %9642 = vst [vmem:[#allocation25_spill] sm:$0xff] %v8920_v10  ;;  %v8923_v62 = vadd.f32 %v3326_v24, %v8886_v51  ;;  %v8926_v13 = vadd.f32 %v3439_v40, %v8890_v33 }
 0xbf1   :  { %v3328_v16 = vpop.f32.mrf.mxu1  ;;  %v3441_v28 = vpop.f32.mrf.mxu0 }
 0xbf2   :  { %9643 = vst [vmem:[#allocation29_spill] sm:$0xff] %v8923_v62  ;;  %9644 = vst [vmem:[#allocation27_spill] sm:$0xff] %v8926_v13  ;;  %v8929_v44 = vadd.f32 %v3328_v16, %v8878_v15  ;;  %v8932_v9 = vadd.f32 %v3441_v28, %v8882_v60 }
 0xbf3   :  { %v3330_v57 = vpop.f32.mrf.mxu1  ;;  %v3443_v23 = vpop.f32.mrf.mxu0 }
 0xbf4   :  { %9645 = vst [vmem:[#allocation26_spill] sm:$0xff] %v8929_v44  ;;  %9646 = vst [vmem:[#allocation30_spill] sm:$0xff] %v8932_v9  ;;  %v8935_v58 = vadd.f32 %v3330_v57, %v8886_v51  ;;  %v8938_v10 = vadd.f32 %v3443_v23, %v8890_v33 }
 0xbf5   :  { %v3334_v24 = vpop.f32.mrf.mxu1  ;;  %v3447_v62 = vpop.f32.mrf.mxu0 }
 0xbf6   :  { %9647 = vst [vmem:[#allocation24_spill] sm:$0xff] %v8935_v58  ;;  %9648 = vst [vmem:[#allocation28_spill] sm:$0xff] %v8938_v10  ;;  %v8941_v40 = vadd.f32 %v3334_v24, %v8878_v15  ;;  %v8944_v13 = vadd.f32 %v3447_v62, %v8882_v60 }
 0xbf7   :  { %v3336_v16 = vpop.f32.mrf.mxu1  ;;  %v3449_v44 = vpop.f32.mrf.mxu0 }
 0xbf8   :  { %9649 = vst [vmem:[#allocation31_spill] sm:$0xff] %v8941_v40  ;;  %9650 = vst [vmem:[#allocation33_spill] sm:$0xff] %v8944_v13  ;;  %v8947_v28 = vadd.f32 %v3336_v16, %v8886_v51  ;;  %v8950_v9 = vadd.f32 %v3449_v44, %v8890_v33 }
 0xbf9   :  { %v3338_v57 = vpop.f32.mrf.mxu1  ;;  %v3451_v58 = vpop.f32.mrf.mxu0 }
 0xbfa   :  { %9651 = vst [vmem:[#allocation37_spill] sm:$0xff] %v8947_v28  ;;  %9652 = vst [vmem:[#allocation35_spill] sm:$0xff] %v8950_v9  ;;  %v8953_v23 = vadd.f32 %v3338_v57, %v8878_v15  ;;  %v8956_v10 = vadd.f32 %v3451_v58, %v8882_v60 }
 0xbfb   :  { %v3340_v24 = vpop.f32.mrf.mxu1  ;;  %v3453_v40 = vpop.f32.mrf.mxu0 }
 0xbfc   :  { %9653 = vst [vmem:[#allocation34_spill] sm:$0xff] %v8953_v23  ;;  %9654 = vst [vmem:[#allocation38_spill] sm:$0xff] %v8956_v10  ;;  %v8959_v62 = vadd.f32 %v3340_v24, %v8886_v51  ;;  %v8962_v13 = vadd.f32 %v3453_v40, %v8890_v33 }
 0xbfd   :  { %v3344_v16 = vpop.f32.mrf.mxu1  ;;  %v3457_v28 = vpop.f32.mrf.mxu0 }
 0xbfe   :  { %9655 = vst [vmem:[#allocation32_spill] sm:$0xff] %v8959_v62  ;;  %9656 = vst [vmem:[#allocation36_spill] sm:$0xff] %v8962_v13  ;;  %v8965_v44 = vadd.f32 %v3344_v16, %v8878_v15  ;;  %v8968_v9 = vadd.f32 %v3457_v28, %v8882_v60 }
 0xbff   :  { %v3346_v57 = vpop.f32.mrf.mxu1  ;;  %v3459_v23 = vpop.f32.mrf.mxu0 }
 0xc00   :  { %9657 = vst [vmem:[#allocation39_spill] sm:$0xff] %v8965_v44  ;;  %9658 = vst [vmem:[#allocation41_spill] sm:$0xff] %v8968_v9  ;;  %v8971_v58 = vadd.f32 %v3346_v57, %v8886_v51  ;;  %v8974_v10 = vadd.f32 %v3459_v23, %v8890_v33 }
 0xc01   :  { %v3348_v24 = vpop.f32.mrf.mxu1  ;;  %v3461_v62 = vpop.f32.mrf.mxu0 }
 0xc02   :  { %9659 = vst [vmem:[#allocation45_spill] sm:$0xff] %v8971_v58  ;;  %9660 = vst [vmem:[#allocation43_spill] sm:$0xff] %v8974_v10  ;;  %v8977_v40 = vadd.f32 %v3348_v24, %v8878_v15  ;;  %v8980_v13 = vadd.f32 %v3461_v62, %v8882_v60 }
 0xc03   :  { %v3350_v16 = vpop.f32.mrf.mxu1  ;;  %v3463_v44 = vpop.f32.mrf.mxu0 }
 0xc04   :  { %9661 = vst [vmem:[#allocation42_spill] sm:$0xff] %v8977_v40  ;;  %9662 = vst [vmem:[#allocation46_spill] sm:$0xff] %v8980_v13  ;;  %v8983_v28 = vadd.f32 %v3350_v16, %v8886_v51  ;;  %v8986_v9 = vadd.f32 %v3463_v44, %v8890_v33 }
 0xc05   :  { %v3354_v57 = vpop.f32.mrf.mxu1  ;;  %v3467_v58 = vpop.f32.mrf.mxu0 }
 0xc06   :  { %9663 = vst [vmem:[#allocation40_spill] sm:$0xff] %v8983_v28  ;;  %9664 = vst [vmem:[#allocation44_spill] sm:$0xff] %v8986_v9  ;;  %v8989_v23 = vadd.f32 %v3354_v57, %v8878_v15  ;;  %v8992_v10 = vadd.f32 %v3467_v58, %v8882_v60 }
 0xc07   :  { %v3356_v24 = vpop.f32.mrf.mxu1  ;;  %v3469_v40 = vpop.f32.mrf.mxu0 }
 0xc08   :  { %9665 = vst [vmem:[#allocation47_spill] sm:$0xff] %v8989_v23  ;;  %9666 = vst [vmem:[#allocation49_spill] sm:$0xff] %v8992_v10  ;;  %v8995_v62 = vadd.f32 %v3356_v24, %v8886_v51  ;;  %v8998_v13 = vadd.f32 %v3469_v40, %v8890_v33 }
 0xc09   :  { %v3358_v16 = vpop.f32.mrf.mxu1  ;;  %v3471_v28 = vpop.f32.mrf.mxu0 }
 0xc0a   :  { %9667 = vst [vmem:[#allocation53_spill] sm:$0xff] %v8995_v62  ;;  %9668 = vst [vmem:[#allocation51_spill] sm:$0xff] %v8998_v13  ;;  %v9001_v44 = vadd.f32 %v3358_v16, %v8878_v15  ;;  %v9004_v9 = vadd.f32 %v3471_v28, %v8882_v60 }
 0xc0b   :  { %v3360_v57 = vpop.f32.mrf.mxu1  ;;  %v3473_v23 = vpop.f32.mrf.mxu0 }
 0xc0c   :  { %9669 = vst [vmem:[#allocation50_spill] sm:$0xff] %v9001_v44  ;;  %9670 = vst [vmem:[#allocation54_spill] sm:$0xff] %v9004_v9  ;;  %v9007_v58 = vadd.f32 %v3360_v57, %v8886_v51  ;;  %v9010_v10 = vadd.f32 %v3473_v23, %v8890_v33 }
 0xc0d   :  { %v3364_v24 = vpop.f32.mrf.mxu1  ;;  %v3477_v62 = vpop.f32.mrf.mxu0 }
 0xc0e   :  { %9671 = vst [vmem:[#allocation48_spill] sm:$0xff] %v9007_v58  ;;  %9672 = vst [vmem:[#allocation52_spill] sm:$0xff] %v9010_v10  ;;  %v9013_v40 = vadd.f32 %v3364_v24, %v8878_v15  ;;  %v9016_v13 = vadd.f32 %v3477_v62, %v8882_v60 }
 0xc0f   :  { %v3366_v16 = vpop.f32.mrf.mxu1  ;;  %v3479_v44 = vpop.f32.mrf.mxu0 }
 0xc10   :  { %9673 = vst [vmem:[#allocation55_spill] sm:$0xff] %v9013_v40  ;;  %9674 = vst [vmem:[#allocation57_spill] sm:$0xff] %v9016_v13  ;;  %v9019_v28 = vadd.f32 %v3366_v16, %v8886_v51  ;;  %v9022_v9 = vadd.f32 %v3479_v44, %v8890_v33 }
 0xc11   :  { %v3368_v57 = vpop.f32.mrf.mxu1  ;;  %v3481_v58 = vpop.f32.mrf.mxu0 }
 0xc12   :  { %9675 = vst [vmem:[#allocation61_spill] sm:$0xff] %v9019_v28  ;;  %9676 = vst [vmem:[#allocation59_spill] sm:$0xff] %v9022_v9  ;;  %v9025_v23 = vadd.f32 %v3368_v57, %v8878_v15  ;;  %v9028_v10 = vadd.f32 %v3481_v58, %v8882_v60 }
 0xc13   :  { %v3370_v24 = vpop.f32.mrf.mxu1  ;;  %v3483_v40 = vpop.f32.mrf.mxu0 }
 0xc14   :  { %9677 = vst [vmem:[#allocation58_spill] sm:$0xff] %v9025_v23  ;;  %9678 = vst [vmem:[#allocation62_spill] sm:$0xff] %v9028_v10  ;;  %v9031_v62 = vadd.f32 %v3370_v24, %v8886_v51  ;;  %v9034_v13 = vadd.f32 %v3483_v40, %v8890_v33 }
 0xc15   :  { %v3374_v16 = vpop.f32.mrf.mxu1  ;;  %v3487_v28 = vpop.f32.mrf.mxu0 }
 0xc16   :  { %9679 = vst [vmem:[#allocation56_spill] sm:$0xff] %v9031_v62  ;;  %9680 = vst [vmem:[#allocation60_spill] sm:$0xff] %v9034_v13  ;;  %v9037_v44 = vadd.f32 %v3374_v16, %v8878_v15  ;;  %v9040_v9 = vadd.f32 %v3487_v28, %v8882_v60  ;;  %v3305_v28 = vadd.f32 %v8860_v61, %v8878_v15 }
 0xc17   :  { %v3376_v57 = vpop.f32.mrf.mxu1  ;;  %v3489_v23 = vpop.f32.mrf.mxu0  ;;  %v3311_v61 = vadd.f32 %v8872_v20, %v8886_v51 }
 0xc18   :  { %9681 = vst [vmem:[#allocation18_spill] sm:$0xff] %v9037_v44  ;;  %9682 = vst [vmem:[#allocation63_spill] sm:$0xff] %v9040_v9  ;;  %v9043_v58 = vadd.f32 %v3376_v57, %v8886_v51  ;;  %v9046_v10 = vadd.f32 %v3489_v23, %v8890_v33 }
 0xc19   :  { %v3378_v24 = vpop.f32.mrf.mxu1  ;;  %v3491_v62 = vpop.f32.mrf.mxu0 }
 0xc1a   :  { %9683 = vst [vmem:[#allocation64_spill] sm:$0xff] %v9043_v58  ;;  %9684 = vst [vmem:[#allocation65_spill] sm:$0xff] %v9046_v10  ;;  %v9049_v40 = vadd.f32 %v3378_v24, %v8878_v15  ;;  %v9052_v13 = vadd.f32 %v3491_v62, %v8882_v60  ;;  %v3307_v10 = vadd.f32 %v8864_v49, %v8886_v51 }
 0xc1b   :  { %v3380_v16 = vpop.f32.mrf.mxu1  ;;  %v3493_v44 = vpop.f32.mrf.mxu0  ;;  %v3309_v62 = vadd.f32 %v8868_v53, %v8878_v15  ;;  %v3420_v53 = vadd.f32 %v8866_v29, %v8890_v33 }
 0xc1c   :  { %9685 = vst [vmem:[#allocation66_spill] sm:$0xff] %v9049_v40  ;;  %9686 = vst [vmem:[#allocation67_spill] sm:$0xff] %v9052_v13  ;;  %v9057_v9 = vadd.f32 %v3380_v16, %v8886_v51  ;;  %v9060_v57 = vadd.f32 %v3493_v44, %v8890_v33  ;;  %v3424_v51 = vadd.f32 %v8874_v2, %v8890_v33 }
 0xc1d   :  { %v3794_v23 = vpop.f32.mrf.mxu1  ;;  %v3837_v40 = vpop.f32.mrf.mxu0 }
 0xc1e   :  { %9687 = vst [vmem:[#allocation68_spill] sm:$0xff] %v9057_v9  ;;  %9688 = vst [vmem:[#allocation69_spill] sm:$0xff] %v9060_v57  ;;  %v3846_v24 = vadd.f32 %v3794_v23, %v3305_v28 }
 0xc1f   :  { %v3796_v58 = vpop.f32.mrf.mxu1  ;;  %v3839_v44 = vpop.f32.mrf.mxu0 }
 0xc20   :  { %v6233_v13 = vmul.f32 -1.442695, %v3846_v24  ;;  %v3847_v54 = vadd.f32 %v3796_v58, %v3307_v10  ;;  %v3849_v15 = vadd.f32 %v3839_v44, %v3420_v53  ;;  %v3418_v10 = vadd.f32 %v8862_v37, %v8882_v60 }
 0xc21   :  { %v3798_v48 = vpop.f32.mrf.mxu1  ;;  %v3841_v28 = vpop.f32.mrf.mxu0 }
 0xc22   :  { %7220 = vpow2.f32 %v6233_v13  ;;  %v6235_v16 = vmul.f32 -1.442695, %v3847_v54  ;;  %v3850_v57 = vadd.f32 %v3798_v48, %v3309_v62  ;;  %v3848_v48 = vadd.f32 %v3837_v40, %v3418_v10 }
 0xc23   :  { %v3800_v9 = vpop.f32.mrf.mxu1  ;;  %v3843_v20 = vpop.f32.mrf.mxu0  ;;  %v3422_v54 = vadd.f32 %v8870_v56, %v8882_v60 }
 0xc24   :  { %7222 = vpow2.f32 %v6235_v16  ;;  %v6234_v59 = vmul.f32 -1.442695, %v3850_v57  ;;  %v3851_v49 = vadd.f32 %v3800_v9, %v3311_v61  ;;  %v6237_v9 = vmul.f32 -1.442695, %v3849_v15 }
 0xc25   :  { %v3852_v58 = vadd.f32 %v3841_v28, %v3422_v54 }
 0xc26   :  { %7224 = vpow2.f32 %v6234_v59  ;;  %v6236_v23 = vmul.f32 -1.442695, %v3851_v49  ;;  %v3853_v59 = vadd.f32 %v3843_v20, %v3424_v51 }
 0xc28   :  { %7226 = vpow2.f32 %v6236_v23  ;;  %v6238_v24 = vmul.f32 -1.442695, %v3853_v59 }
 0xc29   :  { %7228 = vtanh.f32 %v3848_v48 }
 0xc2a   :  { %7230 = vpow2.f32 %v6237_v9 }
 0xc2f   :  { %v7221_v13 = vpop.eup %7220 }
 0xc30   :  { %v3860_v57 = vadd.f32 1.0, %v7221_v13 }
 0xc31   :  { %v7223_v29 = vpop.eup %7222 }
 0xc32   :  { %7232 = vrcp.f32 %v3860_v57  ;;  %v3872_v62 = vadd.f32 1.0, %v7223_v29 }
 0xc33   :  { %v7225_v37 = vpop.eup %7224  ;;  %7234 = vtanh.f32 %v3852_v58 }
 0xc34   :  { %7236 = vrcp.f32 %v3872_v62  ;;  %v3861_v61 = vadd.f32 1.0, %v7225_v37 }
 0xc35   :  { %v7227_v2 = vpop.eup %7226  ;;  %7238 = vpow2.f32 %v6238_v24 }
 0xc36   :  { %7240 = vrcp.f32 %v3861_v61  ;;  %v3873_v33 = vadd.f32 1.0, %v7227_v2  ;;  %v7229_v56 = vpop.eup %7228 }
 0xc37   :  { %v7231_v60 = vpop.eup %7230 }
 0xc38   :  { %7242 = vrcp.f32 %v3873_v33  ;;  %v3886_v15 = vadd.f32 1.0, %v7231_v60 }
 0xc3a   :  { %7244 = vrcp.f32 %v3886_v15 }
 0xc3f   :  { %v7233_v40 = vpop.eup %7232 }
 0xc40   :  { %v7235_v16 = vpop.eup %7234  ;;  %v3894_v44 = vmul.f32 %v7233_v40, %v7229_v56 }
 0xc41   :  { %v7237_v49 = vpop.eup %7236 }
 0xc42   :  { %v7239_v28 = vpop.eup %7238  ;;  %v3892_v23 = vmul.f32 0.0, %v7237_v49 }
 0xc43   :  { %v7241_v53 = vpop.eup %7240  ;;  %v3887_v48 = vadd.f32 1.0, %v7239_v28 }
 0xc44   :  { %v9076_v10 = vadd.f32 %v3894_v44, %v3892_v23  ;;  %v3895_v20 = vmul.f32 %v7241_v53, %v7235_v16 }
 0xc45   :  { %v7243_v51 = vpop.eup %7242 }
 0xc46   :  { %v3893_v54 = vmul.f32 0.0, %v7243_v51  ;;  %7246 = vtanh.f32 %v9076_v10 }
 0xc47   :  { %7248 = vrcp.f32 %v3887_v48  ;;  %v7245_v59 = vpop.eup %7244 }
 0xc48   :  { %v9079_v9 = vadd.f32 %v3895_v20, %v3893_v54  ;;  %v9690_v54 = vld [vmem:[#allocation20_spill] sm:$0xff] }
 0xc4a   :  { %7250 = vtanh.f32 %v9079_v9 }
 0xc53   :  { %v7247_v13 = vpop.eup %7246 }
 0xc54   :  { %v7249_v58 = vpop.eup %7248  ;;  %v3900_v29 = vmul.f32 %v7247_v13, %v7245_v59  ;;  %v9691_v13 = vld [vmem:[#allocation21_spill] sm:$0xff] }
 0xc57   :  { %v7251_v57 = vpop.eup %7250 }
 0xc58   :  { %v3901_v24 = vmul.f32 %v7251_v57, %v7249_v58 }
 0xc5a   :  { %v3902_v62 = vpack.c.bf16 %v3901_v24, %v3900_v29  ;;  %v9692_v29 = vld [vmem:[#allocation19_spill] sm:$0xff] }
 0xc5c   :  { %3944 = vmatmul.mubr.bf16.vlgmr.msra.gmra.mxu1 %v3902_v62  ;;  %3987 = vmatmul.mubr.bf16.vlgmr.msra.gmra.mxu0 %v3902_v62 }
 0xc5d   :  { %4063 = vmatpush1.bf16.msra.mxu1 %v8674_v7  ;;  %4106 = vmatpush1.bf16.msra.mxu0 %v8680_v12 }
 0xc5e   :  { %4064 = vmatprep.subr.bf16.mxu1 %v8677_v0  ;;  %4107 = vmatprep.subr.bf16.mxu0 %v8687_v27 }
 0xc5f   :  { %4094 = vmatprep.mubr.bf16.mxu1 %v9587_v47  ;;  %4137 = vmatprep.mubr.bf16.mxu0 %v9587_v47 }
 0xc61   :  { %4065 = vmatpush1.bf16.msra.mxu1 %v8691_v45  ;;  %4108 = vmatpush1.bf16.msra.mxu0 %v8698_v17 }
 0xc62   :  { %4066 = vmatprep.subr.bf16.mxu1 %v8695_v31  ;;  %4109 = vmatprep.subr.bf16.mxu0 %v8705_v35 }
 0xc65   :  { %4067 = vmatpush1.bf16.msra.mxu1 %v8703_v30  ;;  %4110 = vmatpush1.bf16.msra.mxu0 %v8710_v25 }
 0xc66   :  { %4068 = vmatprep.subr.bf16.mxu1 %v8707_v63  ;;  %4111 = vmatprep.subr.bf16.mxu0 %v8717_v4 }
 0xc69   :  { %4069 = vmatpush1.bf16.msra.mxu1 %v8722_v39  ;;  %4112 = vmatpush1.bf16.msra.mxu0 %v8729_v36 }
 0xc6a   :  { %4070 = vmatprep.subr.bf16.mxu1 %v8726_v41  ;;  %4113 = vmatprep.subr.bf16.mxu0 %v8735_v3 }
 0xc6d   :  { %4071 = vmatpush1.bf16.msra.mxu1 %v8733_v22  ;;  %4114 = vmatpush1.bf16.msra.mxu0 %v8741_v19 }
 0xc6e   :  { %4072 = vmatprep.subr.bf16.mxu1 %v8738_v18  ;;  %4115 = vmatprep.subr.bf16.mxu0 %v8748_v8 }
 0xc71   :  { %4073 = vmatpush1.bf16.msra.mxu1 %v8753_v32  ;;  %4116 = vmatpush1.bf16.msra.mxu0 %v8760_v34 }
 0xc72   :  { %4074 = vmatprep.subr.bf16.mxu1 %v8758_v42  ;;  %4117 = vmatprep.subr.bf16.mxu0 %v8766_v26 }
 0xc75   :  { %4075 = vmatpush1.bf16.msra.mxu1 %v8764_v11  ;;  %4118 = vmatpush1.bf16.msra.mxu0 %v8770_v14 }
 0xc76   :  { %4076 = vmatprep.subr.bf16.mxu1 %v8772_v21  ;;  %4119 = vmatprep.subr.bf16.mxu0 %v8779_v38 }
 0xc79   :  { %4077 = vmatpush1.bf16.msra.mxu1 %v8785_v1  ;;  %4120 = vmatpush1.bf16.msra.mxu0 %v8789_v52 }
 0xc7a   :  { %4213 = vmatprep.subr.bf16.mxu1 %v8670_v43  ;;  %4256 = vmatprep.subr.bf16.mxu0 %v8672_v50 }
 0xd1c   :  { %v3945_v37 = vpop.f32.mrf.mxu1  ;;  %v3988_v2 = vpop.f32.mrf.mxu0 }
 0xd1d   :  { %v3997_v61 = vadd.f32 %v3945_v37, %v8893_v46  ;;  %v9689_v46 = vld [vmem:[#allocation22_spill] sm:$0xff] }
 0xd1e   :  { %v3947_v33 = vpop.f32.mrf.mxu1  ;;  %v3990_v44 = vpop.f32.mrf.mxu0 }
 0xd1f   :  { %v6239_v56 = vmul.f32 -1.442695, %v3997_v61  ;;  %v3998_v60 = vadd.f32 %v3947_v33, %v8899_v5  ;;  %v4000_v51 = vadd.f32 %v3990_v44, %v9689_v46  ;;  %v3999_v5 = vadd.f32 %v3988_v2, %v9690_v54 }
 0xd20   :  { %v3949_v40 = vpop.f32.mrf.mxu1  ;;  %v3992_v15 = vpop.f32.mrf.mxu0 }
 0xd21   :  { %7252 = vpow2.f32 %v6239_v56  ;;  %v6241_v16 = vmul.f32 -1.442695, %v3998_v60  ;;  %v4001_v49 = vadd.f32 %v3949_v40, %v8905_v55  ;;  %v6243_v59 = vmul.f32 -1.442695, %v4000_v51 }
 0xd22   :  { %v3951_v28 = vpop.f32.mrf.mxu1  ;;  %v3994_v48 = vpop.f32.mrf.mxu0  ;;  %v4003_v55 = vadd.f32 %v3992_v15, %v9692_v29 }
 0xd23   :  { %7254 = vpow2.f32 %v6241_v16  ;;  %v6240_v23 = vmul.f32 -1.442695, %v4001_v49  ;;  %v4002_v53 = vadd.f32 %v3951_v28, %v8911_v6  ;;  %v4004_v58 = vadd.f32 %v3994_v48, %v9691_v13 }
 0xd25   :  { %7256 = vpow2.f32 %v6240_v23  ;;  %v6242_v20 = vmul.f32 -1.442695, %v4002_v53  ;;  %v6244_v6 = vmul.f32 -1.442695, %v4004_v58 }
 0xd27   :  { %7258 = vpow2.f32 %v6242_v20 }
 0xd28   :  { %7260 = vtanh.f32 %v3999_v5 }
 0xd29   :  { %7262 = vpow2.f32 %v6243_v59 }
 0xd2e   :  { %v7253_v57 = vpop.eup %7252 }
 0xd2f   :  { %v4011_v24 = vadd.f32 1.0, %v7253_v57 }
 0xd30   :  { %v7255_v62 = vpop.eup %7254 }
 0xd31   :  { %7264 = vrcp.f32 %v4011_v24  ;;  %v4023_v37 = vadd.f32 1.0, %v7255_v62  ;;  %v9700_v62 = vld [vmem:[#allocation30_spill] sm:$0xff] }
 0xd32   :  { %v7257_v61 = vpop.eup %7256  ;;  %7266 = vtanh.f32 %v4003_v55 }
 0xd33   :  { %7268 = vrcp.f32 %v4023_v37  ;;  %v4012_v33 = vadd.f32 1.0, %v7257_v61 }
 0xd34   :  { %v7259_v56 = vpop.eup %7258  ;;  %7270 = vpow2.f32 %v6244_v6 }
 0xd35   :  { %7272 = vrcp.f32 %v4012_v33  ;;  %v4024_v2 = vadd.f32 1.0, %v7259_v56  ;;  %v7261_v60 = vpop.eup %7260 }
 0xd36   :  { %v7263_v40 = vpop.eup %7262 }
 0xd37   :  { %7274 = vrcp.f32 %v4024_v2  ;;  %v4037_v20 = vadd.f32 1.0, %v7263_v40 }
 0xd39   :  { %7276 = vrcp.f32 %v4037_v20 }
 0xd3e   :  { %v7265_v16 = vpop.eup %7264 }
 0xd3f   :  { %v7267_v44 = vpop.eup %7266  ;;  %v4045_v49 = vmul.f32 %v7265_v16, %v7261_v60 }
 0xd40   :  { %v7269_v28 = vpop.eup %7268 }
 0xd41   :  { %v7271_v23 = vpop.eup %7270  ;;  %v4043_v53 = vmul.f32 %v7269_v28, %v9076_v10 }
 0xd42   :  { %v7273_v15 = vpop.eup %7272  ;;  %v4038_v54 = vadd.f32 1.0, %v7271_v23 }
 0xd43   :  { %v9125_v46 = vadd.f32 %v4045_v49, %v4043_v53  ;;  %v4046_v51 = vmul.f32 %v7273_v15, %v7267_v44 }
 0xd44   :  { %v7275_v48 = vpop.eup %7274 }
 0xd45   :  { %v4044_v5 = vmul.f32 %v7275_v48, %v9079_v9  ;;  %7278 = vtanh.f32 %v9125_v46 }
 0xd46   :  { %7280 = vrcp.f32 %v4038_v54  ;;  %v7277_v13 = vpop.eup %7276 }
 0xd47   :  { %v9129_v59 = vadd.f32 %v4046_v51, %v4044_v5 }
 0xd49   :  { %7282 = vtanh.f32 %v9129_v59 }
 0xd52   :  { %v7279_v58 = vpop.eup %7278 }
 0xd53   :  { %v7281_v10 = vpop.eup %7280  ;;  %v4051_v29 = vmul.f32 %v7279_v58, %v7277_v13 }
 0xd56   :  { %v7283_v57 = vpop.eup %7282 }
 0xd57   :  { %v4052_v55 = vmul.f32 %v7283_v57, %v7281_v10 }
 0xd59   :  { %v4053_v24 = vpack.c.bf16 %v4052_v55, %v4051_v29 }
 0xd5b   :  { %4095 = vmatmul.mubr.bf16.vlgmr.msra.gmra.mxu1 %v4053_v24  ;;  %4138 = vmatmul.mubr.bf16.vlgmr.msra.gmra.mxu0 %v4053_v24 }
 0xd5c   :  { %4214 = vmatpush1.bf16.msra.mxu1 %v8674_v7  ;;  %4257 = vmatpush1.bf16.msra.mxu0 %v8680_v12 }
 0xd5d   :  { %4215 = vmatprep.subr.bf16.mxu1 %v8677_v0  ;;  %4258 = vmatprep.subr.bf16.mxu0 %v8687_v27  ;;  %v9693_v0 = vld [vmem:[#allocation23_spill] sm:$0xff] }
 0xd5e   :  { %4245 = vmatprep.mubr.bf16.mxu1 %v9587_v47  ;;  %4288 = vmatprep.mubr.bf16.mxu0 %v9587_v47 }
 0xd60   :  { %4216 = vmatpush1.bf16.msra.mxu1 %v8691_v45  ;;  %4259 = vmatpush1.bf16.msra.mxu0 %v8698_v17  ;;  %v9694_v17 = vld [vmem:[#allocation29_spill] sm:$0xff] }
 0xd61   :  { %4217 = vmatprep.subr.bf16.mxu1 %v8695_v31  ;;  %4260 = vmatprep.subr.bf16.mxu0 %v8705_v35 }
 0xd64   :  { %4218 = vmatpush1.bf16.msra.mxu1 %v8703_v30  ;;  %4261 = vmatpush1.bf16.msra.mxu0 %v8710_v25 }
 0xd65   :  { %4219 = vmatprep.subr.bf16.mxu1 %v8707_v63  ;;  %4262 = vmatprep.subr.bf16.mxu0 %v8717_v4  ;;  %v9695_v4 = vld [vmem:[#allocation26_spill] sm:$0xff] }
 0xd68   :  { %4220 = vmatpush1.bf16.msra.mxu1 %v8722_v39  ;;  %4263 = vmatpush1.bf16.msra.mxu0 %v8729_v36 }
 0xd69   :  { %4221 = vmatprep.subr.bf16.mxu1 %v8726_v41  ;;  %4264 = vmatprep.subr.bf16.mxu0 %v8735_v3 }
 0xd6c   :  { %4222 = vmatpush1.bf16.msra.mxu1 %v8733_v22  ;;  %4265 = vmatpush1.bf16.msra.mxu0 %v8741_v19 }
 0xd6d   :  { %4223 = vmatprep.subr.bf16.mxu1 %v8738_v18  ;;  %4266 = vmatprep.subr.bf16.mxu0 %v8748_v8  ;;  %v9697_v18 = vld [vmem:[#allocation27_spill] sm:$0xff] }
 0xd70   :  { %4224 = vmatpush1.bf16.msra.mxu1 %v8753_v32  ;;  %4267 = vmatpush1.bf16.msra.mxu0 %v8760_v34  ;;  %v9698_v32 = vld [vmem:[#allocation25_spill] sm:$0xff] }
 0xd71   :  { %4225 = vmatprep.subr.bf16.mxu1 %v8758_v42  ;;  %4268 = vmatprep.subr.bf16.mxu0 %v8766_v26 }
 0xd74   :  { %4226 = vmatpush1.bf16.msra.mxu1 %v8764_v11  ;;  %4269 = vmatpush1.bf16.msra.mxu0 %v8770_v14  ;;  %v9699_v11 = vld [vmem:[#allocation28_spill] sm:$0xff] }
 0xd75   :  { %4227 = vmatprep.subr.bf16.mxu1 %v8772_v21  ;;  %4270 = vmatprep.subr.bf16.mxu0 %v8779_v38 }
 0xd78   :  { %4228 = vmatpush1.bf16.msra.mxu1 %v8785_v1  ;;  %4271 = vmatpush1.bf16.msra.mxu0 %v8789_v52 }
 0xd79   :  { %4364 = vmatprep.subr.bf16.mxu1 %v8670_v43  ;;  %4407 = vmatprep.subr.bf16.mxu0 %v8672_v50  ;;  %v9696_v43 = vld [vmem:[#allocation24_spill] sm:$0xff] }
 0xe1b   :  { %v4096_v7 = vpop.f32.mrf.mxu1  ;;  %v4139_v27 = vpop.f32.mrf.mxu0 }
 0xe1c   :  { %v4148_v12 = vadd.f32 %v4096_v7, %v9693_v0  ;;  %v4150_v42 = vadd.f32 %v4139_v27, %v9698_v32  ;;  %v9241_v32 = vld [vmem:[#allocation8 + $0x4c] ss:$16 sps:$4 sm:$0xff]  }
 0xe1d   :  { %v4098_v45 = vpop.f32.mrf.mxu1  ;;  %v4141_v25 = vpop.f32.mrf.mxu0 }
 0xe1e   :  { %v6245_v31 = vmul.f32 -1.442695, %v4148_v12  ;;  %v4149_v30 = vadd.f32 %v4098_v45, %v9694_v17  ;;  %v4151_v19 = vadd.f32 %v4141_v25, %v9697_v18  ;;  %v9182_v45 = vld [vmem:[#allocation8 + $0xe0] ss:$16 sps:$4 sm:$0xff]   ;;  %v9191_v17 = vld [vmem:[#allocation8 + $0xcc] ss:$16 sps:$4 sm:$0xff]  }
 0xe1f   :  { %v4100_v35 = vpop.f32.mrf.mxu1  ;;  %v4143_v50 = vpop.f32.mrf.mxu0  ;;  %v9205_v25 = vld [vmem:[#allocation8 + $0xac] ss:$16 sps:$4 sm:$0xff]   ;;  %v9232_v18 = vld [vmem:[#allocation8 + $0x60] ss:$16 sps:$4 sm:$0xff]  }
 0xe20   :  { %7284 = vpow2.f32 %v6245_v31  ;;  %v6247_v63 = vmul.f32 -1.442695, %v4149_v30  ;;  %v4152_v39 = vadd.f32 %v4100_v35, %v9695_v4  ;;  %v6249_v34 = vmul.f32 -1.442695, %v4151_v19  ;;  %v9188_v31 = vld [vmem:[#allocation8 + $0xc4] ss:$16 sps:$4 sm:$0xff]  }
 0xe21   :  { %v4102_v41 = vpop.f32.mrf.mxu1  ;;  %v4145_v8 = vpop.f32.mrf.mxu0  ;;  %v4154_v6 = vadd.f32 %v4143_v50, %v9700_v62  ;;  %v9196_v30 = vld [vmem:[#allocation8 + $0xc0] ss:$16 sps:$4 sm:$0xff]   ;;  %v9199_v35 = vld [vmem:[#allocation8 + $0xc8] ss:$16 sps:$4 sm:$0xff]   ;;  %v9226_v50 = vld [vmem:[#allocation8 + $0x64] ss:$16 sps:$4 sm:$0xff]  }
 0xe22   :  { %7286 = vpow2.f32 %v6247_v63  ;;  %v6246_v36 = vmul.f32 -1.442695, %v4152_v39  ;;  %v4153_v22 = vadd.f32 %v4102_v41, %v9696_v43  ;;  %v4155_v26 = vadd.f32 %v4145_v8, %v9699_v11  ;;  %v9202_v63 = vld [vmem:[#allocation8 + $0xa4] ss:$16 sps:$4 sm:$0xff]   ;;  %v9208_v4 = vld [vmem:[#allocation8 + $0xa0] ss:$16 sps:$4 sm:$0xff]  }
 0xe23   :  { %v9211_v39 = vld [vmem:[#allocation8 + $0xa8] ss:$16 sps:$4 sm:$0xff]   ;;  %v9214_v41 = vld [vmem:[#allocation8 + $0x84] ss:$16 sps:$4 sm:$0xff]   ;;  %v9220_v43 = vld [vmem:[#allocation8 + $0x80] ss:$16 sps:$4 sm:$0xff]  }
 0xe24   :  { %7288 = vpow2.f32 %v6246_v36  ;;  %v6248_v3 = vmul.f32 -1.442695, %v4153_v22  ;;  %v6250_v33 = vmul.f32 -1.442695, %v4155_v26  ;;  %v9217_v36 = vld [vmem:[#allocation8 + $0x8c] ss:$16 sps:$4 sm:$0xff]  }
 0xe25   :  { %v9223_v22 = vld [vmem:[#allocation8 + $0x88] ss:$16 sps:$4 sm:$0xff]   ;;  %v9238_v8 = vld [vmem:[#allocation8 + $0x44] ss:$16 sps:$4 sm:$0xff]   ;;  %v9253_v26 = vld [vmem:[#allocation8 + $0x2c] ss:$16 sps:$4 sm:$0xff]  }
 0xe26   :  { %7290 = vpow2.f32 %v6248_v3  ;;  %v9229_v3 = vld [vmem:[#allocation8 + $0x6c] ss:$16 sps:$4 sm:$0xff]   ;;  %v9235_v19 = vld [vmem:[#allocation8 + $0x68] ss:$16 sps:$4 sm:$0xff]   ;;  %v9250_v11 = vld [vmem:[#allocation8 + $0x24] ss:$16 sps:$4 sm:$0xff]  }
 0xe27   :  { %7292 = vtanh.f32 %v4150_v42  ;;  %v9244_v42 = vld [vmem:[#allocation8 + $0x40] ss:$16 sps:$4 sm:$0xff]   ;;  %v9264_v62 = vld [vmem:[#allocation8 + $0xe4] ss:$16 sps:$4 sm:$0xff]  }
 0xe28   :  { %7294 = vpow2.f32 %v6249_v34  ;;  %v9247_v34 = vld [vmem:[#allocation8 + $0x48] ss:$16 sps:$4 sm:$0xff]  }
 0xe2d   :  { %v7285_v9 = vpop.eup %7284 }
 0xe2e   :  { %v4162_v37 = vadd.f32 1.0, %v7285_v9  ;;  %v9256_v9 = vld [vmem:[#allocation8 + $0x20] ss:$16 sps:$4 sm:$0xff]  }
 0xe2f   :  { %v7287_v61 = vpop.eup %7286 }
 0xe30   :  { %7296 = vrcp.f32 %v4162_v37  ;;  %v4174_v56 = vadd.f32 1.0, %v7287_v61  ;;  %v9701_v61 = vld [vmem:[#allocation31_spill] sm:$0xff] }
 0xe31   :  { %v7289_v2 = vpop.eup %7288  ;;  %7298 = vtanh.f32 %v4154_v6  ;;  %v9267_v6 = vld [vmem:[#allocation8 + $0xec] ss:$16 sps:$4 sm:$0xff]  }
 0xe32   :  { %7300 = vrcp.f32 %v4174_v56  ;;  %v4163_v60 = vadd.f32 1.0, %v7289_v2  ;;  %v9702_v2 = vld [vmem:[#allocation37_spill] sm:$0xff] }
 0xe33   :  { %v7291_v40 = vpop.eup %7290  ;;  %7302 = vpow2.f32 %v6250_v33 }
 0xe34   :  { %7304 = vrcp.f32 %v4163_v60  ;;  %v4175_v16 = vadd.f32 1.0, %v7291_v40  ;;  %v7293_v44 = vpop.eup %7292  ;;  %v9703_v40 = vld [vmem:[#allocation34_spill] sm:$0xff] }
 0xe35   :  { %v7295_v49 = vpop.eup %7294 }
 0xe36   :  { %7306 = vrcp.f32 %v4175_v16  ;;  %v4188_v54 = vadd.f32 1.0, %v7295_v49 }
 0xe38   :  { %7308 = vrcp.f32 %v4188_v54  ;;  %v9706_v54 = vld [vmem:[#allocation33_spill] sm:$0xff] }
 0xe3d   :  { %v7297_v28 = vpop.eup %7296 }
 0xe3e   :  { %v7299_v23 = vpop.eup %7298  ;;  %v4196_v53 = vmul.f32 %v7297_v28, %v7293_v44  ;;  %v9704_v28 = vld [vmem:[#allocation32_spill] sm:$0xff] }
 0xe3f   :  { %v7301_v15 = vpop.eup %7300 }
 0xe40   :  { %v7303_v20 = vpop.eup %7302  ;;  %v4194_v51 = vmul.f32 %v7301_v15, %v9125_v46 }
 0xe41   :  { %v7305_v48 = vpop.eup %7304  ;;  %v4189_v10 = vadd.f32 1.0, %v7303_v20  ;;  %v9705_v20 = vld [vmem:[#allocation35_spill] sm:$0xff] }
 0xe42   :  { %v9175_v5 = vadd.f32 %v4196_v53, %v4194_v51  ;;  %v4197_v13 = vmul.f32 %v7305_v48, %v7299_v23 }
 0xe43   :  { %v7307_v58 = vpop.eup %7306 }
 0xe44   :  { %v4195_v57 = vmul.f32 %v7307_v58, %v9129_v59  ;;  %7310 = vtanh.f32 %v9175_v5  ;;  %v9185_v59 = vld [vmem:[#allocation8 + $0xe8] ss:$16 sps:$4 sm:$0xff]  }
 0xe45   :  { %7312 = vrcp.f32 %v4189_v10  ;;  %v7309_v55 = vpop.eup %7308  ;;  %v9707_v10 = vld [vmem:[#allocation36_spill] sm:$0xff] }
 0xe46   :  { %v9179_v29 = vadd.f32 %v4197_v13, %v4195_v57 }
 0xe48   :  { %7314 = vtanh.f32 %v9179_v29 }
 0xe51   :  { %v7311_v24 = vpop.eup %7310 }
 0xe52   :  { %v7313_v46 = vpop.eup %7312  ;;  %v4202_v0 = vmul.f32 %v7311_v24, %v7309_v55  ;;  %v9708_v24 = vld [vmem:[#allocation38_spill] sm:$0xff] }
 0xe55   :  { %v7315_v7 = vpop.eup %7314 }
 0xe56   :  { %v4203_v12 = vmul.f32 %v7315_v7, %v7313_v46 }
 0xe58   :  { %v4204_v27 = vpack.c.bf16 %v4203_v12, %v4202_v0 }
 0xe5a   :  { %4246 = vmatmul.mubr.bf16.vlgmr.msra.gmra.mxu1 %v4204_v27  ;;  %4289 = vmatmul.mubr.bf16.vlgmr.msra.gmra.mxu0 %v4204_v27 }
 0xe5b   :  { %4365 = vmatpush1.bf16.msra.mxu1 %v9182_v45  ;;  %4408 = vmatpush1.bf16.msra.mxu0 %v9185_v59 }
 0xe5c   :  { %4366 = vmatprep.subr.bf16.mxu1 %v9188_v31  ;;  %4409 = vmatprep.subr.bf16.mxu0 %v9191_v17 }
 0xe5d   :  { %4396 = vmatprep.mubr.bf16.mxu1 %v9587_v47  ;;  %4439 = vmatprep.mubr.bf16.mxu0 %v9587_v47 }
 0xe5f   :  { %4367 = vmatpush1.bf16.msra.mxu1 %v9196_v30  ;;  %4410 = vmatpush1.bf16.msra.mxu0 %v9199_v35 }
 0xe60   :  { %4368 = vmatprep.subr.bf16.mxu1 %v9202_v63  ;;  %4411 = vmatprep.subr.bf16.mxu0 %v9205_v25 }
 0xe63   :  { %4369 = vmatpush1.bf16.msra.mxu1 %v9208_v4  ;;  %4412 = vmatpush1.bf16.msra.mxu0 %v9211_v39 }
 0xe64   :  { %4370 = vmatprep.subr.bf16.mxu1 %v9214_v41  ;;  %4413 = vmatprep.subr.bf16.mxu0 %v9217_v36 }
 0xe67   :  { %4371 = vmatpush1.bf16.msra.mxu1 %v9220_v43  ;;  %4414 = vmatpush1.bf16.msra.mxu0 %v9223_v22 }
 0xe68   :  { %4372 = vmatprep.subr.bf16.mxu1 %v9226_v50  ;;  %4415 = vmatprep.subr.bf16.mxu0 %v9229_v3 }
 0xe6b   :  { %4373 = vmatpush1.bf16.msra.mxu1 %v9232_v18  ;;  %4416 = vmatpush1.bf16.msra.mxu0 %v9235_v19 }
 0xe6c   :  { %4374 = vmatprep.subr.bf16.mxu1 %v9238_v8  ;;  %4417 = vmatprep.subr.bf16.mxu0 %v9241_v32 }
 0xe6f   :  { %4375 = vmatpush1.bf16.msra.mxu1 %v9244_v42  ;;  %4418 = vmatpush1.bf16.msra.mxu0 %v9247_v34 }
 0xe70   :  { %4376 = vmatprep.subr.bf16.mxu1 %v9250_v11  ;;  %4419 = vmatprep.subr.bf16.mxu0 %v9253_v26 }
 0xe73   :  { %4377 = vmatpush1.bf16.msra.mxu1 %v9256_v9  ;;  %4420 = vmatpush1.bf16.msra.mxu0 %v8770_v14 }
 0xe74   :  { %4378 = vmatprep.subr.bf16.mxu1 %v8772_v21  ;;  %4421 = vmatprep.subr.bf16.mxu0 %v8779_v38 }
 0xe77   :  { %4379 = vmatpush1.bf16.msra.mxu1 %v8785_v1  ;;  %4422 = vmatpush1.bf16.msra.mxu0 %v8789_v52 }
 0xe78   :  { %4515 = vmatprep.subr.bf16.mxu1 %v9264_v62  ;;  %4558 = vmatprep.subr.bf16.mxu0 %v9267_v6 }
 0xf1a   :  { %v4247_v37 = vpop.f32.mrf.mxu1  ;;  %v4290_v14 = vpop.f32.mrf.mxu0 }
 0xf1b   :  { %v4299_v33 = vadd.f32 %v4247_v37, %v9701_v61  ;;  %v4301_v13 = vadd.f32 %v4290_v14, %v9706_v54 }
 0xf1c   :  { %v4249_v56 = vpop.f32.mrf.mxu1  ;;  %v4292_v52 = vpop.f32.mrf.mxu0 }
 0xf1d   :  { %v6251_v21 = vmul.f32 -1.442695, %v4299_v33  ;;  %v4300_v38 = vadd.f32 %v4249_v56, %v9702_v2  ;;  %v4302_v51 = vadd.f32 %v4292_v52, %v9705_v20 }
 0xf1e   :  { %v4251_v60 = vpop.f32.mrf.mxu1  ;;  %v4294_v53 = vpop.f32.mrf.mxu0 }
 0xf1f   :  { %7316 = vpow2.f32 %v6251_v21  ;;  %v6253_v1 = vmul.f32 -1.442695, %v4300_v38  ;;  %v4303_v16 = vadd.f32 %v4251_v60, %v9703_v40  ;;  %v6255_v58 = vmul.f32 -1.442695, %v4302_v51 }
 0xf20   :  { %v4253_v44 = vpop.f32.mrf.mxu1  ;;  %v4296_v48 = vpop.f32.mrf.mxu0  ;;  %v4305_v46 = vadd.f32 %v4294_v53, %v9708_v24  ;;  %v9322_v24 = vld [vmem:[#allocation8] ss:$16 sps:$4 sm:$0xff]  }
 0xf21   :  { %7318 = vpow2.f32 %v6253_v1  ;;  %v6252_v49 = vmul.f32 -1.442695, %v4303_v16  ;;  %v4304_v23 = vadd.f32 %v4253_v44, %v9704_v28  ;;  %v4306_v57 = vadd.f32 %v4296_v48, %v9707_v10 }
 0xf23   :  { %7320 = vpow2.f32 %v6252_v49  ;;  %v6254_v15 = vmul.f32 -1.442695, %v4304_v23  ;;  %v6256_v12 = vmul.f32 -1.442695, %v4306_v57  ;;  %v9316_v57 = vld [vmem:[#allocation8 + $0x4] ss:$16 sps:$4 sm:$0xff]  }
 0xf25   :  { %7322 = vpow2.f32 %v6254_v15 }
 0xf26   :  { %7324 = vtanh.f32 %v4301_v13 }
 0xf27   :  { %7326 = vpow2.f32 %v6255_v58 }
 0xf2c   :  { %v7317_v55 = vpop.eup %7316 }
 0xf2d   :  { %v4313_v7 = vadd.f32 1.0, %v7317_v55  ;;  %v9319_v55 = vld [vmem:[#allocation8 + $0xc] ss:$16 sps:$4 sm:$0xff]  }
 0xf2e   :  { %v7319_v0 = vpop.eup %7318 }
 0xf2f   :  { %7328 = vrcp.f32 %v4313_v7  ;;  %v4325_v27 = vadd.f32 1.0, %v7319_v0  ;;  %v9709_v0 = vld [vmem:[#allocation39_spill] sm:$0xff] }
 0xf30   :  { %v7321_v37 = vpop.eup %7320  ;;  %7330 = vtanh.f32 %v4305_v46  ;;  %v9325_v46 = vld [vmem:[#allocation8 + $0x8] ss:$16 sps:$4 sm:$0xff]  }
 0xf31   :  { %7332 = vrcp.f32 %v4325_v27  ;;  %v4314_v61 = vadd.f32 1.0, %v7321_v37 }
 0xf32   :  { %v7323_v33 = vpop.eup %7322  ;;  %7334 = vpow2.f32 %v6256_v12 }
 0xf33   :  { %7336 = vrcp.f32 %v4314_v61  ;;  %v4326_v14 = vadd.f32 1.0, %v7323_v33  ;;  %v7325_v56 = vpop.eup %7324  ;;  %v9710_v33 = vld [vmem:[#allocation45_spill] sm:$0xff] }
 0xf34   :  { %v7327_v21 = vpop.eup %7326 }
 0xf35   :  { %7338 = vrcp.f32 %v4326_v14  ;;  %v4339_v44 = vadd.f32 1.0, %v7327_v21 }
 0xf37   :  { %7340 = vrcp.f32 %v4339_v44 }
 0xf3c   :  { %v7329_v2 = vpop.eup %7328 }
 0xf3d   :  { %v7331_v38 = vpop.eup %7330  ;;  %v4347_v60 = vmul.f32 %v7329_v2, %v7325_v56 }
 0xf3e   :  { %v7333_v1 = vpop.eup %7332 }
 0xf3f   :  { %v7335_v52 = vpop.eup %7334  ;;  %v4345_v40 = vmul.f32 %v7333_v1, %v9175_v5 }
 0xf40   :  { %v7337_v16 = vpop.eup %7336  ;;  %v4340_v53 = vadd.f32 1.0, %v7335_v52 }
 0xf41   :  { %v9279_v49 = vadd.f32 %v4347_v60, %v4345_v40  ;;  %v4348_v28 = vmul.f32 %v7337_v16, %v7331_v38  ;;  %v9711_v38 = vld [vmem:[#allocation42_spill] sm:$0xff]  ;;  %v9712_v40 = vld [vmem:[#allocation40_spill] sm:$0xff] }
 0xf42   :  { %v7339_v23 = vpop.eup %7338 }
 0xf43   :  { %v4346_v15 = vmul.f32 %v7339_v23, %v9179_v29  ;;  %7342 = vtanh.f32 %v9279_v49  ;;  %v9313_v29 = vld [vmem:[#allocation8 + $0x28] ss:$16 sps:$4 sm:$0xff]   ;;  %v9713_v23 = vld [vmem:[#allocation43_spill] sm:$0xff] }
 0xf44   :  { %7344 = vrcp.f32 %v4340_v53  ;;  %v7341_v51 = vpop.eup %7340 }
 0xf45   :  { %v9283_v20 = vadd.f32 %v4348_v28, %v4346_v15 }
 0xf47   :  { %7346 = vtanh.f32 %v9283_v20 }
 0xf50   :  { %v7343_v48 = vpop.eup %7342 }
 0xf51   :  { %v7345_v5 = vpop.eup %7344  ;;  %v4353_v13 = vmul.f32 %v7343_v48, %v7341_v51  ;;  %v9714_v51 = vld [vmem:[#allocation41_spill] sm:$0xff] }
 0xf54   :  { %v7347_v54 = vpop.eup %7346 }
 0xf55   :  { %v4354_v58 = vmul.f32 %v7347_v54, %v7345_v5  ;;  %v9715_v54 = vld [vmem:[#allocation44_spill] sm:$0xff] }
 0xf57   :  { %v4355_v10 = vpack.c.bf16 %v4354_v58, %v4353_v13 }
 0xf59   :  { %4397 = vmatmul.mubr.bf16.vlgmr.msra.gmra.mxu1 %v4355_v10  ;;  %4440 = vmatmul.mubr.bf16.vlgmr.msra.gmra.mxu0 %v4355_v10  ;;  %v9716_v10 = vld [vmem:[#allocation46_spill] sm:$0xff] }
 0xf5a   :  { %4516 = vmatpush1.bf16.msra.mxu1 %v9182_v45  ;;  %4559 = vmatpush1.bf16.msra.mxu0 %v9185_v59 }
 0xf5b   :  { %4517 = vmatprep.subr.bf16.mxu1 %v9188_v31  ;;  %4560 = vmatprep.subr.bf16.mxu0 %v9191_v17 }
 0xf5c   :  { %4547 = vmatprep.mubr.bf16.mxu1 %v9587_v47  ;;  %4590 = vmatprep.mubr.bf16.mxu0 %v9587_v47 }
 0xf5e   :  { %4518 = vmatpush1.bf16.msra.mxu1 %v9196_v30  ;;  %4561 = vmatpush1.bf16.msra.mxu0 %v9199_v35 }
 0xf5f   :  { %4519 = vmatprep.subr.bf16.mxu1 %v9202_v63  ;;  %4562 = vmatprep.subr.bf16.mxu0 %v9205_v25 }
 0xf62   :  { %4520 = vmatpush1.bf16.msra.mxu1 %v9208_v4  ;;  %4563 = vmatpush1.bf16.msra.mxu0 %v9211_v39 }
 0xf63   :  { %4521 = vmatprep.subr.bf16.mxu1 %v9214_v41  ;;  %4564 = vmatprep.subr.bf16.mxu0 %v9217_v36 }
 0xf66   :  { %4522 = vmatpush1.bf16.msra.mxu1 %v9220_v43  ;;  %4565 = vmatpush1.bf16.msra.mxu0 %v9223_v22 }
 0xf67   :  { %4523 = vmatprep.subr.bf16.mxu1 %v9226_v50  ;;  %4566 = vmatprep.subr.bf16.mxu0 %v9229_v3 }
 0xf6a   :  { %4524 = vmatpush1.bf16.msra.mxu1 %v9232_v18  ;;  %4567 = vmatpush1.bf16.msra.mxu0 %v9235_v19 }
 0xf6b   :  { %4525 = vmatprep.subr.bf16.mxu1 %v9238_v8  ;;  %4568 = vmatprep.subr.bf16.mxu0 %v9241_v32 }
 0xf6e   :  { %4526 = vmatpush1.bf16.msra.mxu1 %v9244_v42  ;;  %4569 = vmatpush1.bf16.msra.mxu0 %v9247_v34 }
 0xf6f   :  { %4527 = vmatprep.subr.bf16.mxu1 %v9250_v11  ;;  %4570 = vmatprep.subr.bf16.mxu0 %v9253_v26 }
 0xf72   :  { %4528 = vmatpush1.bf16.msra.mxu1 %v9256_v9  ;;  %4571 = vmatpush1.bf16.msra.mxu0 %v9313_v29 }
 0xf73   :  { %4529 = vmatprep.subr.bf16.mxu1 %v9316_v57  ;;  %4572 = vmatprep.subr.bf16.mxu0 %v9319_v55 }
 0xf76   :  { %4530 = vmatpush1.bf16.msra.mxu1 %v9322_v24  ;;  %4573 = vmatpush1.bf16.msra.mxu0 %v9325_v46 }
 0xf77   :  { %4666 = vmatprep.subr.bf16.mxu1 %v9264_v62  ;;  %4709 = vmatprep.subr.bf16.mxu0 %v9267_v6 }
0x1019   :  { %v4398_v7 = vpop.f32.mrf.mxu1  ;;  %v4441_v27 = vpop.f32.mrf.mxu0 }
0x101a   :  { %v4450_v12 = vadd.f32 %v4398_v7, %v9709_v0  ;;  %v4452_v48 = vadd.f32 %v4441_v27, %v9714_v51 }
0x101b   :  { %v4400_v37 = vpop.f32.mrf.mxu1  ;;  %v4443_v2 = vpop.f32.mrf.mxu0 }
0x101c   :  { %v6257_v61 = vmul.f32 -1.442695, %v4450_v12  ;;  %v4451_v14 = vadd.f32 %v4400_v37, %v9710_v33  ;;  %v4453_v53 = vadd.f32 %v4443_v2, %v9713_v23 }
0x101d   :  { %v4402_v56 = vpop.f32.mrf.mxu1  ;;  %v4445_v44 = vpop.f32.mrf.mxu0 }
0x101e   :  { %7348 = vpow2.f32 %v6257_v61  ;;  %v6259_v21 = vmul.f32 -1.442695, %v4451_v14  ;;  %v4454_v60 = vadd.f32 %v4402_v56, %v9711_v38  ;;  %v6261_v5 = vmul.f32 -1.442695, %v4453_v53 }
0x101f   :  { %v4404_v1 = vpop.f32.mrf.mxu1  ;;  %v4447_v15 = vpop.f32.mrf.mxu0  ;;  %v4456_v7 = vadd.f32 %v4445_v44, %v9716_v10 }
0x1020   :  { %7350 = vpow2.f32 %v6259_v21  ;;  %v6258_v52 = vmul.f32 -1.442695, %v4454_v60  ;;  %v4455_v16 = vadd.f32 %v4404_v1, %v9712_v40  ;;  %v4457_v13 = vadd.f32 %v4447_v15, %v9715_v54 }
0x1022   :  { %7352 = vpow2.f32 %v6258_v52  ;;  %v6260_v28 = vmul.f32 -1.442695, %v4455_v16  ;;  %v6262_v37 = vmul.f32 -1.442695, %v4457_v13 }
0x1024   :  { %7354 = vpow2.f32 %v6260_v28 }
0x1025   :  { %7356 = vtanh.f32 %v4452_v48 }
0x1026   :  { %7358 = vpow2.f32 %v6261_v5 }
0x102b   :  { %v7349_v58 = vpop.eup %7348 }
0x102c   :  { %v4464_v0 = vadd.f32 1.0, %v7349_v58 }
0x102d   :  { %v7351_v12 = vpop.eup %7350 }
0x102e   :  { %7360 = vrcp.f32 %v4464_v0  ;;  %v4476_v61 = vadd.f32 1.0, %v7351_v12  ;;  %v9717_v12 = vld [vmem:[#allocation47_spill] sm:$0xff] }
0x102f   :  { %v7353_v33 = vpop.eup %7352  ;;  %7362 = vtanh.f32 %v4456_v7 }
0x1030   :  { %7364 = vrcp.f32 %v4476_v61  ;;  %v4465_v14 = vadd.f32 1.0, %v7353_v33 }
0x1031   :  { %v7355_v56 = vpop.eup %7354  ;;  %7366 = vpow2.f32 %v6262_v37 }
0x1032   :  { %7368 = vrcp.f32 %v4465_v14  ;;  %v4477_v27 = vadd.f32 1.0, %v7355_v56  ;;  %v7357_v21 = vpop.eup %7356  ;;  %v9718_v56 = vld [vmem:[#allocation53_spill] sm:$0xff] }
0x1033   :  { %v7359_v2 = vpop.eup %7358 }
0x1034   :  { %7370 = vrcp.f32 %v4477_v27  ;;  %v4490_v28 = vadd.f32 1.0, %v7359_v2 }
0x1036   :  { %7372 = vrcp.f32 %v4490_v28  ;;  %v9721_v28 = vld [vmem:[#allocation51_spill] sm:$0xff] }
0x103b   :  { %v7361_v38 = vpop.eup %7360 }
0x103c   :  { %v7363_v60 = vpop.eup %7362  ;;  %v4498_v1 = vmul.f32 %v7361_v38, %v7357_v21 }
0x103d   :  { %v7365_v52 = vpop.eup %7364 }
0x103e   :  { %v7367_v40 = vpop.eup %7366  ;;  %v4496_v16 = vmul.f32 %v7365_v52, %v9279_v49 }
0x103f   :  { %v7369_v44 = vpop.eup %7368  ;;  %v4491_v51 = vadd.f32 1.0, %v7367_v40 }
0x1040   :  { %v9339_v23 = vadd.f32 %v4498_v1, %v4496_v16  ;;  %v4499_v53 = vmul.f32 %v7369_v44, %v7363_v60  ;;  %v9719_v60 = vld [vmem:[#allocation50_spill] sm:$0xff] }
0x1041   :  { %v7371_v15 = vpop.eup %7370 }
0x1042   :  { %v4497_v48 = vmul.f32 %v7371_v15, %v9283_v20  ;;  %7374 = vtanh.f32 %v9339_v23 }
0x1043   :  { %7376 = vrcp.f32 %v4491_v51  ;;  %v7373_v54 = vpop.eup %7372  ;;  %v9722_v51 = vld [vmem:[#allocation49_spill] sm:$0xff] }
0x1044   :  { %v9343_v5 = vadd.f32 %v4499_v53, %v4497_v48 }
0x1046   :  { %7378 = vtanh.f32 %v9343_v5 }
0x104f   :  { %v7375_v13 = vpop.eup %7374 }
0x1050   :  { %v7377_v49 = vpop.eup %7376  ;;  %v4504_v10 = vmul.f32 %v7375_v13, %v7373_v54  ;;  %v9723_v13 = vld [vmem:[#allocation52_spill] sm:$0xff] }
0x1053   :  { %v7379_v58 = vpop.eup %7378 }
0x1054   :  { %v4505_v7 = vmul.f32 %v7379_v58, %v7377_v49 }
0x1056   :  { %v4506_v0 = vpack.c.bf16 %v4505_v7, %v4504_v10  ;;  %v9724_v10 = vld [vmem:[#allocation54_spill] sm:$0xff] }
0x1058   :  { %4548 = vmatmul.mubr.bf16.vlgmr.msra.gmra.mxu1 %v4506_v0  ;;  %4591 = vmatmul.mubr.bf16.vlgmr.msra.gmra.mxu0 %v4506_v0 }
0x1059   :  { %4667 = vmatpush1.bf16.msra.mxu1 %v9182_v45  ;;  %4710 = vmatpush1.bf16.msra.mxu0 %v9185_v59 }
0x105a   :  { %4668 = vmatprep.subr.bf16.mxu1 %v9188_v31  ;;  %4711 = vmatprep.subr.bf16.mxu0 %v9191_v17 }
0x105b   :  { %4698 = vmatprep.mubr.bf16.mxu1 %v9587_v47  ;;  %4741 = vmatprep.mubr.bf16.mxu0 %v9587_v47 }
0x105d   :  { %4669 = vmatpush1.bf16.msra.mxu1 %v9196_v30  ;;  %4712 = vmatpush1.bf16.msra.mxu0 %v9199_v35 }
0x105e   :  { %4670 = vmatprep.subr.bf16.mxu1 %v9202_v63  ;;  %4713 = vmatprep.subr.bf16.mxu0 %v9205_v25 }
0x1061   :  { %4671 = vmatpush1.bf16.msra.mxu1 %v9208_v4  ;;  %4714 = vmatpush1.bf16.msra.mxu0 %v9211_v39 }
0x1062   :  { %4672 = vmatprep.subr.bf16.mxu1 %v9214_v41  ;;  %4715 = vmatprep.subr.bf16.mxu0 %v9217_v36 }
0x1065   :  { %4673 = vmatpush1.bf16.msra.mxu1 %v9220_v43  ;;  %4716 = vmatpush1.bf16.msra.mxu0 %v9223_v22 }
0x1066   :  { %4674 = vmatprep.subr.bf16.mxu1 %v9226_v50  ;;  %4717 = vmatprep.subr.bf16.mxu0 %v9229_v3 }
0x1069   :  { %4675 = vmatpush1.bf16.msra.mxu1 %v9232_v18  ;;  %4718 = vmatpush1.bf16.msra.mxu0 %v9235_v19 }
0x106a   :  { %4676 = vmatprep.subr.bf16.mxu1 %v9238_v8  ;;  %4719 = vmatprep.subr.bf16.mxu0 %v9241_v32 }
0x106d   :  { %4677 = vmatpush1.bf16.msra.mxu1 %v9244_v42  ;;  %4720 = vmatpush1.bf16.msra.mxu0 %v9247_v34 }
0x106e   :  { %4678 = vmatprep.subr.bf16.mxu1 %v9250_v11  ;;  %4721 = vmatprep.subr.bf16.mxu0 %v9253_v26 }
0x1071   :  { %4679 = vmatpush1.bf16.msra.mxu1 %v9256_v9  ;;  %4722 = vmatpush1.bf16.msra.mxu0 %v9313_v29 }
0x1072   :  { %4680 = vmatprep.subr.bf16.mxu1 %v9316_v57  ;;  %4723 = vmatprep.subr.bf16.mxu0 %v9319_v55 }
0x1075   :  { %4681 = vmatpush1.bf16.msra.mxu1 %v9322_v24  ;;  %4724 = vmatpush1.bf16.msra.mxu0 %v9325_v46 }
0x1076   :  { %4817 = vmatprep.subr.bf16.mxu1 %v9264_v62  ;;  %4860 = vmatprep.subr.bf16.mxu0 %v9267_v6  ;;  %v9720_v62 = vld [vmem:[#allocation48_spill] sm:$0xff] }
0x1118   :  { %v4549_v20 = vpop.f32.mrf.mxu1  ;;  %v4592_v61 = vpop.f32.mrf.mxu0 }
0x1119   :  { %v4601_v37 = vadd.f32 %v4549_v20, %v9717_v12  ;;  %v4603_v48 = vadd.f32 %v4592_v61, %v9722_v51 }
0x111a   :  { %v4551_v33 = vpop.f32.mrf.mxu1  ;;  %v4594_v38 = vpop.f32.mrf.mxu0 }
0x111b   :  { %v6263_v14 = vmul.f32 -1.442695, %v4601_v37  ;;  %v4602_v27 = vadd.f32 %v4551_v33, %v9718_v56  ;;  %v4604_v53 = vadd.f32 %v4594_v38, %v9721_v28 }
0x111c   :  { %v4553_v21 = vpop.f32.mrf.mxu1  ;;  %v4596_v6 = vpop.f32.mrf.mxu0 }
0x111d   :  { %7380 = vpow2.f32 %v6263_v14  ;;  %v6265_v2 = vmul.f32 -1.442695, %v4602_v27  ;;  %v4605_v1 = vadd.f32 %v4553_v21, %v9719_v60  ;;  %v6267_v54 = vmul.f32 -1.442695, %v4604_v53 }
0x111e   :  { %v4555_v52 = vpop.f32.mrf.mxu1  ;;  %v4598_v15 = vpop.f32.mrf.mxu0  ;;  %v4607_v7 = vadd.f32 %v4596_v6, %v9724_v10 }
0x111f   :  { %7382 = vpow2.f32 %v6265_v2  ;;  %v6264_v40 = vmul.f32 -1.442695, %v4605_v1  ;;  %v4606_v16 = vadd.f32 %v4555_v52, %v9720_v62  ;;  %v4608_v49 = vadd.f32 %v4598_v15, %v9723_v13 }
0x1121   :  { %7384 = vpow2.f32 %v6264_v40  ;;  %v6266_v44 = vmul.f32 -1.442695, %v4606_v16  ;;  %v6268_v12 = vmul.f32 -1.442695, %v4608_v49 }
0x1123   :  { %7386 = vpow2.f32 %v6266_v44 }
0x1124   :  { %7388 = vtanh.f32 %v4603_v48 }
0x1125   :  { %7390 = vpow2.f32 %v6267_v54 }
0x112a   :  { %v7381_v58 = vpop.eup %7380 }
0x112b   :  { %v4615_v0 = vadd.f32 1.0, %v7381_v58 }
0x112c   :  { %v7383_v20 = vpop.eup %7382 }
0x112d   :  { %7392 = vrcp.f32 %v4615_v0  ;;  %v4627_v37 = vadd.f32 1.0, %v7383_v20 }
0x112e   :  { %v7385_v33 = vpop.eup %7384  ;;  %7394 = vtanh.f32 %v4607_v7 }
0x112f   :  { %7396 = vrcp.f32 %v4627_v37  ;;  %v4616_v14 = vadd.f32 1.0, %v7385_v33 }
0x1130   :  { %v7387_v56 = vpop.eup %7386  ;;  %7398 = vpow2.f32 %v6268_v12 }
0x1131   :  { %7400 = vrcp.f32 %v4616_v14  ;;  %v4628_v61 = vadd.f32 1.0, %v7387_v56  ;;  %v7389_v27 = vpop.eup %7388 }
0x1132   :  { %v7391_v21 = vpop.eup %7390 }
0x1133   :  { %7402 = vrcp.f32 %v4628_v61  ;;  %v4641_v16 = vadd.f32 1.0, %v7391_v21 }
0x1135   :  { %7404 = vrcp.f32 %v4641_v16 }
0x113a   :  { %v7393_v2 = vpop.eup %7392 }
0x113b   :  { %v7395_v38 = vpop.eup %7394  ;;  %v4649_v60 = vmul.f32 %v7393_v2, %v7389_v27 }
0x113c   :  { %v7397_v1 = vpop.eup %7396 }
0x113d   :  { %v7399_v52 = vpop.eup %7398  ;;  %v4647_v40 = vmul.f32 %v7397_v1, %v9339_v23 }
0x113e   :  { %v7401_v62 = vpop.eup %7400  ;;  %v4642_v53 = vadd.f32 1.0, %v7399_v52 }
0x113f   :  { %v9389_v6 = vadd.f32 %v4649_v60, %v4647_v40  ;;  %v4650_v44 = vmul.f32 %v7401_v62, %v7395_v38 }
0x1140   :  { %v7403_v28 = vpop.eup %7402 }
0x1141   :  { %v4648_v15 = vmul.f32 %v7403_v28, %v9343_v5  ;;  %7406 = vtanh.f32 %v9389_v6 }
0x1142   :  { %7408 = vrcp.f32 %v4642_v53  ;;  %v7405_v48 = vpop.eup %7404 }
0x1143   :  { %v9393_v51 = vadd.f32 %v4650_v44, %v4648_v15 }
0x1145   :  { %7410 = vtanh.f32 %v9393_v51 }
0x114e   :  { %v7407_v54 = vpop.eup %7406 }
0x114f   :  { %v7409_v23 = vpop.eup %7408  ;;  %v4655_v49 = vmul.f32 %v7407_v54, %v7405_v48 }
0x1152   :  { %v7411_v13 = vpop.eup %7410 }
0x1153   :  { %v4656_v58 = vmul.f32 %v7411_v13, %v7409_v23 }
0x1155   :  { %v4657_v10 = vpack.c.bf16 %v4656_v58, %v4655_v49 }
0x1157   :  { %4699 = vmatmul.mubr.bf16.vlgmr.msra.gmra.mxu1 %v4657_v10  ;;  %4742 = vmatmul.mubr.bf16.vlgmr.msra.gmra.mxu0 %v4657_v10  ;;  %v9734_v10 = vld [vmem:[#allocation18_spill] sm:$0xff] }
0x1158   :  { %4818 = vmatpush1.bf16.msra.mxu1 %v9182_v45  ;;  %4861 = vmatpush1.bf16.msra.mxu0 %v9185_v59  ;;  %v9726_v59 = vld [vmem:[#allocation55_spill] sm:$0xff] }
0x1159   :  { %4819 = vmatprep.subr.bf16.mxu1 %v9188_v31  ;;  %4862 = vmatprep.subr.bf16.mxu0 %v9191_v17 }
0x115a   :  { %4849 = vmatprep.mubr.bf16.mxu1 %v9587_v47  ;;  %4892 = vmatprep.mubr.bf16.mxu0 %v9587_v47  ;;  %v9725_v47 = vmov 0.0  }
0x115c   :  { %4820 = vmatpush1.bf16.msra.mxu1 %v9196_v30  ;;  %4863 = vmatpush1.bf16.msra.mxu0 %v9199_v35 }
0x115d   :  { %4821 = vmatprep.subr.bf16.mxu1 %v9202_v63  ;;  %4864 = vmatprep.subr.bf16.mxu0 %v9205_v25  ;;  %v9727_v63 = vld [vmem:[#allocation61_spill] sm:$0xff] }
0x1160   :  { %4822 = vmatpush1.bf16.msra.mxu1 %v9208_v4  ;;  %4865 = vmatpush1.bf16.msra.mxu0 %v9211_v39 }
0x1161   :  { %4823 = vmatprep.subr.bf16.mxu1 %v9214_v41  ;;  %4866 = vmatprep.subr.bf16.mxu0 %v9217_v36  ;;  %v9728_v36 = vld [vmem:[#allocation58_spill] sm:$0xff] }
0x1164   :  { %4824 = vmatpush1.bf16.msra.mxu1 %v9220_v43  ;;  %4867 = vmatpush1.bf16.msra.mxu0 %v9223_v22 }
0x1165   :  { %4825 = vmatprep.subr.bf16.mxu1 %v9226_v50  ;;  %4868 = vmatprep.subr.bf16.mxu0 %v9229_v3  ;;  %v9729_v3 = vld [vmem:[#allocation56_spill] sm:$0xff] }
0x1168   :  { %4826 = vmatpush1.bf16.msra.mxu1 %v9232_v18  ;;  %4869 = vmatpush1.bf16.msra.mxu0 %v9235_v19 }
0x1169   :  { %4827 = vmatprep.subr.bf16.mxu1 %v9238_v8  ;;  %4870 = vmatprep.subr.bf16.mxu0 %v9241_v32  ;;  %v9730_v32 = vld [vmem:[#allocation59_spill] sm:$0xff] }
0x116c   :  { %4828 = vmatpush1.bf16.msra.mxu1 %v9244_v42  ;;  %4871 = vmatpush1.bf16.msra.mxu0 %v9247_v34 }
0x116d   :  { %4829 = vmatprep.subr.bf16.mxu1 %v9250_v11  ;;  %4872 = vmatprep.subr.bf16.mxu0 %v9253_v26  ;;  %v9731_v11 = vld [vmem:[#allocation57_spill] sm:$0xff] }
0x1170   :  { %4830 = vmatpush1.bf16.msra.mxu1 %v9256_v9  ;;  %4873 = vmatpush1.bf16.msra.mxu0 %v9313_v29  ;;  %v9732_v29 = vld [vmem:[#allocation60_spill] sm:$0xff] }
0x1171   :  { %4831 = vmatprep.subr.bf16.mxu1 %v9316_v57  ;;  %4874 = vmatprep.subr.bf16.mxu0 %v9319_v55 }
0x1174   :  { %4832 = vmatpush1.bf16.msra.mxu1 %v9322_v24  ;;  %4875 = vmatpush1.bf16.msra.mxu0 %v9325_v46  ;;  %v9733_v24 = vld [vmem:[#allocation62_spill] sm:$0xff] }
0x1175   :  { %6604 = vmatprep.subr.bf16.mxu1 %v9725_v47  ;;  %6610 = vmatprep.subr.bf16.mxu0 %v9725_v47 }
0x1217   :  { %v4700_v45 = vpop.f32.mrf.mxu1  ;;  %v4743_v17 = vpop.f32.mrf.mxu0 }
0x1218   :  { %v4752_v31 = vadd.f32 %v4700_v45, %v9726_v59  ;;  %v4754_v26 = vadd.f32 %v4743_v17, %v9731_v11 }
0x1219   :  { %v4702_v30 = vpop.f32.mrf.mxu1  ;;  %v4745_v41 = vpop.f32.mrf.mxu0 }
0x121a   :  { %v6269_v35 = vmul.f32 -1.442695, %v4752_v31  ;;  %v4753_v25 = vadd.f32 %v4702_v30, %v9727_v63  ;;  %v4755_v42 = vadd.f32 %v4745_v41, %v9730_v32  ;;  %v9735_v30 = vld [vmem:[#allocation64_spill] sm:$0xff] }
0x121b   :  { %v4704_v4 = vpop.f32.mrf.mxu1  ;;  %v4747_v19 = vpop.f32.mrf.mxu0 }
0x121c   :  { %7412 = vpow2.f32 %v6269_v35  ;;  %v6271_v39 = vmul.f32 -1.442695, %v4753_v25  ;;  %v4756_v43 = vadd.f32 %v4704_v4, %v9728_v36  ;;  %v6273_v9 = vmul.f32 -1.442695, %v4755_v42  ;;  %v9739_v42 = vld [vmem:[#allocation63_spill] sm:$0xff] }
0x121d   :  { %v4706_v22 = vpop.f32.mrf.mxu1  ;;  %v4749_v34 = vpop.f32.mrf.mxu0  ;;  %v4758_v46 = vadd.f32 %v4747_v19, %v9733_v24  ;;  %v9738_v19 = vld [vmem:[#allocation65_spill] sm:$0xff] }
0x121e   :  { %7414 = vpow2.f32 %v6271_v39  ;;  %v6270_v50 = vmul.f32 -1.442695, %v4756_v43  ;;  %v4757_v18 = vadd.f32 %v4706_v22, %v9729_v3  ;;  %v4759_v57 = vadd.f32 %v4749_v34, %v9732_v29  ;;  %v9736_v39 = vld [vmem:[#allocation66_spill] sm:$0xff]  ;;  %v9737_v22 = vld [vmem:[#allocation68_spill] sm:$0xff] }
0x1220   :  { %7416 = vpow2.f32 %v6270_v50  ;;  %v6272_v8 = vmul.f32 -1.442695, %v4757_v18  ;;  %v6274_v0 = vmul.f32 -1.442695, %v4759_v57  ;;  %v9741_v57 = vld [vmem:[#allocation67_spill] sm:$0xff] }
0x1222   :  { %7418 = vpow2.f32 %v6272_v8 }
0x1223   :  { %7420 = vtanh.f32 %v4754_v26  ;;  %v9740_v26 = vld [vmem:[#allocation69_spill] sm:$0xff] }
0x1224   :  { %7422 = vpow2.f32 %v6273_v9 }
0x1229   :  { %v7413_v55 = vpop.eup %7412 }
0x122a   :  { %v4766_v5 = vadd.f32 1.0, %v7413_v55 }
0x122b   :  { %v7415_v7 = vpop.eup %7414 }
0x122c   :  { %7424 = vrcp.f32 %v4766_v5  ;;  %v4778_v20 = vadd.f32 1.0, %v7415_v7 }
0x122d   :  { %v7417_v12 = vpop.eup %7416  ;;  %7426 = vtanh.f32 %v4758_v46 }
0x122e   :  { %7428 = vrcp.f32 %v4778_v20  ;;  %v4767_v37 = vadd.f32 1.0, %v7417_v12 }
0x122f   :  { %v7419_v33 = vpop.eup %7418  ;;  %7430 = vpow2.f32 %v6274_v0 }
0x1230   :  { %7432 = vrcp.f32 %v4767_v37  ;;  %v4779_v14 = vadd.f32 1.0, %v7419_v33  ;;  %v7421_v56 = vpop.eup %7420 }
0x1231   :  { %v7423_v61 = vpop.eup %7422 }
0x1232   :  { %7434 = vrcp.f32 %v4779_v14  ;;  %v4792_v40 = vadd.f32 1.0, %v7423_v61 }
0x1234   :  { %7436 = vrcp.f32 %v4792_v40 }
0x1239   :  { %v7425_v27 = vpop.eup %7424 }
0x123a   :  { %v7427_v21 = vpop.eup %7426  ;;  %v4800_v2 = vmul.f32 %v7425_v27, %v7421_v56 }
0x123b   :  { %v7429_v38 = vpop.eup %7428 }
0x123c   :  { %v7431_v60 = vpop.eup %7430  ;;  %v4798_v1 = vmul.f32 %v7429_v38, %v9389_v6 }
0x123d   :  { %v7433_v52 = vpop.eup %7432  ;;  %v4793_v28 = vadd.f32 1.0, %v7431_v60 }
0x123e   :  { %v9439_v62 = vadd.f32 %v4800_v2, %v4798_v1  ;;  %v4801_v16 = vmul.f32 %v7433_v52, %v7427_v21 }
0x123f   :  { %v7435_v44 = vpop.eup %7434 }
0x1240   :  { %v4799_v53 = vmul.f32 %v7435_v44, %v9393_v51  ;;  %7438 = vtanh.f32 %v9439_v62 }
0x1241   :  { %7440 = vrcp.f32 %v4793_v28  ;;  %v7437_v48 = vpop.eup %7436 }
0x1242   :  { %v9443_v15 = vadd.f32 %v4801_v16, %v4799_v53 }
0x1244   :  { %7442 = vtanh.f32 %v9443_v15 }
0x124d   :  { %v7439_v54 = vpop.eup %7438 }
0x124e   :  { %v7441_v6 = vpop.eup %7440  ;;  %v4806_v13 = vmul.f32 %v7439_v54, %v7437_v48 }
0x1251   :  { %v7443_v23 = vpop.eup %7442 }
0x1252   :  { %v4807_v49 = vmul.f32 %v7443_v23, %v7441_v6 }
0x1254   :  { %v4808_v58 = vpack.c.bf16 %v4807_v49, %v4806_v13 }
0x1256   :  { %4850 = vmatmul.mubr.bf16.vlgmr.msra.gmra.mxu1 %v4808_v58  ;;  %4893 = vmatmul.mubr.bf16.vlgmr.msra.gmra.mxu0 %v4808_v58 }
0x1257   :  { %6606 = vmatprep.mubr.msk.bf16.mxu1 %vm7739_vm1, %v9725_v47  ;;  %6612 = vmatprep.mubr.msk.bf16.mxu0 %vm7739_vm1, %v9725_v47 }
0x1316   :  { %v4851_v51 = vpop.f32.mrf.mxu1  ;;  %v4894_v59 = vpop.f32.mrf.mxu0 }
0x1317   :  { %v4903_v45 = vadd.f32 %v4851_v51, %v9734_v10  ;;  %v4905_v34 = vadd.f32 %v4894_v59, %v9739_v42  ;;  %v6902_v51 = vld [vmem:[%s9520_s1 + $0x8] sm:$0xff]   ;;  %v6904_v10 = vld [vmem:[%s9520_s1 + $0x18] sm:$0xff]   ;;  %v6905_v59 = vld [vmem:[%s9520_s1 + $0x20] sm:$0xff]  }
0x1318   :  { %v4853_v31 = vpop.f32.mrf.mxu1  ;;  %v4896_v4 = vpop.f32.mrf.mxu0  ;;  %v6924_v42 = vld [vmem:[#allocation11 + $0x50] sm:$0xff]  }
0x1319   :  { %v6275_v17 = vmul.f32 -1.442695, %v4903_v45  ;;  %v4904_v35 = vadd.f32 %v4853_v31, %v9735_v30  ;;  %v4906_v8 = vadd.f32 %v4896_v4, %v9738_v19  ;;  %v6908_v45 = vld [vmem:[#allocation11 + $0x78] sm:$0xff]   ;;  %v6906_v31 = vld [vmem:[%s9520_s1 + $0x28] sm:$0xff]   ;;  %v6907_v4 = vld [vmem:[%s9520_s1 + $0x30] sm:$0xff]  }
0x131a   :  { %v4855_v63 = vpop.f32.mrf.mxu1  ;;  %v4898_v3 = vpop.f32.mrf.mxu0  ;;  %v6913_v30 = vld [vmem:[#allocation11 + $0xf8] sm:$0xff]   ;;  %v6923_v19 = vld [vmem:[#allocation11 + $0xa8] sm:$0xff]  }
0x131b   :  { %7444 = vpow2.f32 %v6275_v17  ;;  %v6277_v25 = vmul.f32 -1.442695, %v4904_v35  ;;  %v4907_v41 = vadd.f32 %v4855_v63, %v9736_v39  ;;  %v6279_v11 = vmul.f32 -1.442695, %v4906_v8  ;;  %v6909_v17 = vld [vmem:[#allocation11 + $0x38] sm:$0xff]   ;;  %v6910_v35 = vld [vmem:[#allocation11 + $0x70] sm:$0xff]  }
0x131c   :  { %v4857_v36 = vpop.f32.mrf.mxu1  ;;  %v4900_v32 = vpop.f32.mrf.mxu0  ;;  %v4909_v55 = vadd.f32 %v4898_v3, %v9741_v57  ;;  %v6911_v63 = vld [vmem:[#allocation11 + $0x30] sm:$0xff]   ;;  %v6915_v39 = vld [vmem:[#allocation11 + $0xb8] sm:$0xff]   ;;  %v6921_v3 = vld [vmem:[#allocation11 + $0xe8] sm:$0xff]  }
0x131d   :  { %7446 = vpow2.f32 %v6277_v25  ;;  %v6276_v43 = vmul.f32 -1.442695, %v4907_v41  ;;  %v4908_v50 = vadd.f32 %v4857_v36, %v9737_v22  ;;  %v4910_v9 = vadd.f32 %v4900_v32, %v9740_v26  ;;  %v6912_v25 = vld [vmem:[#allocation11 + $0x68] sm:$0xff]   ;;  %v6917_v36 = vld [vmem:[#allocation11 + $0xf0] sm:$0xff]   ;;  %v6922_v8 = vld [vmem:[#allocation11 + $0x18] sm:$0xff]  }
0x131e   :  { %v6914_v41 = vld [vmem:[#allocation11 + $0x28] sm:$0xff]   ;;  %v6919_v22 = vld [vmem:[#allocation11 + $0xb0] sm:$0xff]   ;;  %v6925_v32 = vld [vmem:[#allocation11 + $0xe0] sm:$0xff]  }
0x131f   :  { %7448 = vpow2.f32 %v6276_v43  ;;  %v6278_v18 = vmul.f32 -1.442695, %v4908_v50  ;;  %v6280_v5 = vmul.f32 -1.442695, %v4910_v9  ;;  %v6916_v43 = vld [vmem:[#allocation11 + $0x60] sm:$0xff]   ;;  %v6929_v26 = vld [vmem:[#allocation11 + $0xd8] sm:$0xff]  }
0x1320   :  { %v6918_v50 = vld [vmem:[#allocation11 + $0x20] sm:$0xff]   ;;  %v6928_v9 = vld [vmem:[#allocation11 + $0x48] sm:$0xff]   ;;  %v6931_v57 = vld [vmem:[#allocation11 + $0x98] sm:$0xff]  }
0x1321   :  { %7450 = vpow2.f32 %v6278_v18  ;;  %v6920_v18 = vld [vmem:[#allocation11 + $0x58] sm:$0xff]  }
0x1322   :  { %7452 = vtanh.f32 %v4905_v34  ;;  %v6927_v34 = vld [vmem:[#allocation11 + $0xa0] sm:$0xff]  }
0x1323   :  { %7454 = vpow2.f32 %v6279_v11  ;;  %v6926_v11 = vld [vmem:[#allocation11 + $0x10] sm:$0xff]  }
0x1328   :  { %v7445_v29 = vpop.eup %7444 }
0x1329   :  { %v4917_v24 = vadd.f32 1.0, %v7445_v29  ;;  %v6930_v29 = vld [vmem:[#allocation11 + $0x8] sm:$0xff]  }
0x132a   :  { %v7447_v46 = vpop.eup %7446 }
0x132b   :  { %7456 = vrcp.f32 %v4917_v24  ;;  %v4929_v7 = vadd.f32 1.0, %v7447_v46  ;;  %v6933_v24 = vld [vmem:[#allocation11 + $0xd0] sm:$0xff]   ;;  %v6934_v46 = vld [vmem:[#allocation11] sm:$0xff]  }
0x132c   :  { %v7449_v0 = vpop.eup %7448  ;;  %7458 = vtanh.f32 %v4909_v55  ;;  %v6932_v55 = vld [vmem:[#allocation11 + $0x40] sm:$0xff]  }
0x132d   :  { %7460 = vrcp.f32 %v4929_v7  ;;  %v4918_v20 = vadd.f32 1.0, %v7449_v0  ;;  %v6936_v7 = vld [vmem:[#allocation11 + $0xc8] sm:$0xff]   ;;  %v6937_v0 = vld [vmem:[#allocation11 + $0x178] sm:$0xff]  }
0x132e   :  { %v7451_v12 = vpop.eup %7450  ;;  %7462 = vpow2.f32 %v6280_v5  ;;  %v6935_v5 = vld [vmem:[#allocation11 + $0x90] sm:$0xff]  }
0x132f   :  { %7464 = vrcp.f32 %v4918_v20  ;;  %v4930_v37 = vadd.f32 1.0, %v7451_v12  ;;  %v7453_v33 = vpop.eup %7452  ;;  %v6938_v20 = vld [vmem:[#allocation11 + $0x88] sm:$0xff]   ;;  %v6940_v12 = vld [vmem:[#allocation11 + $0xc0] sm:$0xff]  }
0x1330   :  { %v7455_v14 = vpop.eup %7454 }
0x1331   :  { %7466 = vrcp.f32 %v4930_v37  ;;  %v4943_v2 = vadd.f32 1.0, %v7455_v14  ;;  %v6942_v37 = vld [vmem:[#allocation11 + $0x80] sm:$0xff]  }
0x1333   :  { %7468 = vrcp.f32 %v4943_v2 }
0x1338   :  { %v7457_v56 = vpop.eup %7456 }
0x1339   :  { %v7459_v61 = vpop.eup %7458  ;;  %v4951_v27 = vmul.f32 %v7457_v56, %v7453_v33 }
0x133a   :  { %v7461_v21 = vpop.eup %7460 }
0x133b   :  { %v7463_v38 = vpop.eup %7462  ;;  %v4949_v60 = vmul.f32 %v7461_v21, %v9439_v62  ;;  %v6901_v62 = vld [vmem:[%s9520_s1] sm:$0xff]  }
0x133c   :  { %v7465_v1 = vpop.eup %7464  ;;  %v4944_v44 = vadd.f32 1.0, %v7463_v38 }
0x133d   :  { %v4953_v52 = vadd.f32 %v4951_v27, %v4949_v60  ;;  %v4952_v40 = vmul.f32 %v7465_v1, %v7459_v61  ;;  %v6939_v60 = vld [vmem:[#allocation11 + $0x138] sm:$0xff]  }
0x133e   :  { %v7467_v16 = vpop.eup %7466 }
0x133f   :  { %7470 = vtanh.f32 %v4953_v52  ;;  %v4950_v28 = vmul.f32 %v7467_v16, %v9443_v15  ;;  %v6903_v15 = vld [vmem:[%s9520_s1 + $0x10] sm:$0xff]  }
0x1340   :  { %7472 = vrcp.f32 %v4944_v44  ;;  %v7469_v48 = vpop.eup %7468 }
0x1341   :  { %v4954_v53 = vadd.f32 %v4952_v40, %v4950_v28  ;;  %v6941_v40 = vld [vmem:[#allocation11 + $0x170] sm:$0xff]  }
0x1342   :  { %v6943_v28 = vld [vmem:[#allocation11 + $0x130] sm:$0xff]  }
0x1343   :  { %7474 = vtanh.f32 %v4954_v53 }
0x134c   :  { %v7471_v54 = vpop.eup %7470 }
0x134d   :  { %v4957_v6 = vmul.f32 %v7471_v54, %v7469_v48  ;;  %v7473_v23 = vpop.eup %7472  ;;  %v6944_v54 = vld [vmem:[#allocation11 + $0x168] sm:$0xff]  }
0x1350   :  { %v7475_v13 = vpop.eup %7474 }
0x1351   :  { %v4958_v49 = vmul.f32 %v7475_v13, %v7473_v23 }
0x1353   :  { %v4959_v58 = vpack.c.bf16 %v4958_v49, %v4957_v6 }
0x1355   :  { %6605 = vmatpush3.bf16.msra.mxu1 %v4959_v58  ;;  %6611 = vmatpush3.bf16.msra.mxu0 %v4959_v58 }
0x1356   :  { %6616 = vmatprep.subr.bf16.mxu1 %v9725_v47  ;;  %6622 = vmatprep.subr.bf16.mxu0 %v9725_v47 }
0x1358   :  { %6607 = vmatmul.mubr.msk.bf16.vlgmr.msra.gmra.mxu1 %vm235_vm0, %v6901_v62  ;;  %6613 = vmatmul.mubr.msk.bf16.vlgmr.msra.gmra.mxu0 %vm235_vm0, %v6902_v51  ;;  %v6946_v62 = vld [vmem:[#allocation11 + $0x1b8] sm:$0xff]  }
0x1359   :  { %6617 = vmatpush3.bf16.msra.mxu1 %v4959_v58  ;;  %6623 = vmatpush3.bf16.msra.mxu0 %v4959_v58 }
0x135a   :  { %6618 = vmatprep.mubr.msk.bf16.mxu1 %vm7739_vm1, %v9725_v47  ;;  %6624 = vmatprep.mubr.msk.bf16.mxu0 %vm7739_vm1, %v9725_v47 }
0x135b   :  { %6628 = vmatprep.subr.bf16.mxu1 %v9725_v47  ;;  %6634 = vmatprep.subr.bf16.mxu0 %v9725_v47 }
0x1360   :  { %6619 = vmatmul.mubr.msk.bf16.vlgmr.msra.gmra.mxu1 %vm235_vm0, %v6903_v15  ;;  %6625 = vmatmul.mubr.msk.bf16.vlgmr.msra.gmra.mxu0 %vm235_vm0, %v6904_v10  ;;  %v6947_v10 = vld [vmem:[#allocation11 + $0x160] sm:$0xff]  }
0x1361   :  { %6629 = vmatpush3.bf16.msra.mxu1 %v4959_v58  ;;  %6635 = vmatpush3.bf16.msra.mxu0 %v4959_v58 }
0x1362   :  { %6630 = vmatprep.mubr.msk.bf16.mxu1 %vm7739_vm1, %v9725_v47  ;;  %6640 = vmatprep.subr.bf16.mxu1 %v9725_v47 }
0x1363   :  { %6636 = vmatprep.mubr.msk.bf16.mxu0 %vm7739_vm1, %v9725_v47  ;;  %6467 = vmatprep.subr.bf16.mxu0 %v6908_v45 }
0x1368   :  { %6631 = vmatmul.mubr.msk.bf16.vlgmr.msra.gmra.mxu1 %vm235_vm0, %v6905_v59  ;;  %6637 = vmatmul.mubr.msk.bf16.vlgmr.msra.gmra.mxu0 %vm235_vm0, %v6906_v31  ;;  %v6948_v31 = vld [vmem:[#allocation11 + $0x120] sm:$0xff]  }
0x1369   :  { %6641 = vmatpush3.bf16.msra.mxu1 %v4959_v58  ;;  %6642 = vmatprep.mubr.msk.bf16.mxu1 %vm7739_vm1, %v9725_v47  ;;  %v6945_v58 = vld [vmem:[#allocation11 + $0x128] sm:$0xff]  }
0x136a   :  { %6468 = vmatpush3.bf16.msra.mxu0 %v6909_v17  ;;  %6489 = vmatprep.subr.bf16.mxu1 %v6913_v30  ;;  %v6949_v17 = vld [vmem:[#allocation11 + $0x1b0] sm:$0xff]   ;;  %v6950_v30 = vld [vmem:[#allocation11 + $0x158] sm:$0xff]  }
0x136b   :  { %6469 = vmatprep.subr.bf16.mxu0 %v6910_v35 }
0x136e   :  { %6470 = vmatpush3.bf16.msra.mxu0 %v6911_v63 }
0x136f   :  { %6471 = vmatprep.subr.bf16.mxu0 %v6912_v25 }
0x1370   :  { %6643 = vmatmul.mubr.msk.bf16.vlgmr.msra.gmra.mxu1 %vm235_vm0, %v6907_v4 }
0x1371   :  { %6490 = vmatpush3.bf16.msra.mxu1 %v6915_v39  ;;  %v6951_v39 = vld [vmem:[#allocation11 + $0x118] sm:$0xff]  }
0x1372   :  { %6472 = vmatpush3.bf16.msra.mxu0 %v6914_v41  ;;  %6491 = vmatprep.subr.bf16.mxu1 %v6917_v36  ;;  %v6952_v41 = vld [vmem:[#allocation11 + $0x1a8] sm:$0xff]  }
0x1373   :  { %6473 = vmatprep.subr.bf16.mxu0 %v6916_v43  ;;  %v6953_v43 = vld [vmem:[#allocation11 + $0x150] sm:$0xff]  }
0x1375   :  { %6492 = vmatpush3.bf16.msra.mxu1 %v6919_v22 }
0x1376   :  { %6474 = vmatpush3.bf16.msra.mxu0 %v6918_v50  ;;  %6493 = vmatprep.subr.bf16.mxu1 %v6921_v3 }
0x1377   :  { %6475 = vmatprep.subr.bf16.mxu0 %v6920_v18  ;;  %v6954_v18 = vld [vmem:[#allocation11 + $0x110] sm:$0xff]  }
0x1379   :  { %6494 = vmatpush3.bf16.msra.mxu1 %v6923_v19  ;;  %v6955_v19 = vld [vmem:[#allocation11 + $0x1a0] sm:$0xff]  }
0x137a   :  { %6476 = vmatpush3.bf16.msra.mxu0 %v6922_v8  ;;  %6495 = vmatprep.subr.bf16.mxu1 %v6925_v32  ;;  %v6956_v8 = vld [vmem:[#allocation11 + $0x148] sm:$0xff]  }
0x137b   :  { %6477 = vmatprep.subr.bf16.mxu0 %v6924_v42 }
0x137d   :  { %6496 = vmatpush3.bf16.msra.mxu1 %v6927_v34  ;;  %v6957_v34 = vld [vmem:[#allocation11 + $0x108] sm:$0xff]  }
0x137e   :  { %6478 = vmatpush3.bf16.msra.mxu0 %v6926_v11  ;;  %6497 = vmatprep.subr.bf16.mxu1 %v6929_v26  ;;  %v6958_v11 = vld [vmem:[#allocation11 + $0x198] sm:$0xff]   ;;  %v6959_v26 = vld [vmem:[#allocation11 + $0x140] sm:$0xff]  }
0x137f   :  { %6479 = vmatprep.subr.bf16.mxu0 %v6928_v9 }
0x1381   :  { %6498 = vmatpush3.bf16.msra.mxu1 %v6931_v57  ;;  %v6961_v57 = vld [vmem:[#allocation11 + $0x190] sm:$0xff]  }
0x1382   :  { %6480 = vmatpush3.bf16.msra.mxu0 %v6930_v29  ;;  %6499 = vmatprep.subr.bf16.mxu1 %v6933_v24  ;;  %v6960_v29 = vld [vmem:[#allocation11 + $0x100] sm:$0xff]  }
0x1383   :  { %6481 = vmatprep.subr.bf16.mxu0 %v6932_v55  ;;  %v6962_v55 = vld [vmem:[#allocation11 + $0x188] sm:$0xff]  }
0x1385   :  { %6500 = vmatpush3.bf16.msra.mxu1 %v6935_v5 }
0x1386   :  { %6482 = vmatpush3.bf16.msra.mxu0 %v6934_v46  ;;  %6501 = vmatprep.subr.bf16.mxu1 %v6936_v7  ;;  %v6963_v46 = vld [vmem:[#allocation11 + $0x180] sm:$0xff]  }
0x1387   :  { %6511 = vmatprep.subr.bf16.mxu0 %v6937_v0 }
0x1389   :  { %6502 = vmatpush3.bf16.msra.mxu1 %v6938_v20 }
0x138a   :  { %6503 = vmatprep.subr.bf16.mxu1 %v6940_v12 }
0x138d   :  { %6504 = vmatpush3.bf16.msra.mxu1 %v6942_v37 }
0x138e   :  { %6646 = vmatprep.subr.bf16.mxu1 %v9725_v47 }
0x1418   :  { %v5004_v33 = vpop.f32.mrf.mxu1  ;;  %v5055_v14 = vpop.f32.mrf.mxu0 }
0x141a   :  { %v6608_v56 = vpop.f32.mrf.mxu1  ;;  %v6614_v61 = vpop.f32.mrf.mxu0 }
0x141b   :  { %v6307_v61 = vld [vmem:[#allocation13] ss:$0 sm:$0xff] }
0x141c   :  { %v5007_v27 = vpop.f32.mrf.mxu1  ;;  %v5058_v21 = vpop.f32.mrf.mxu0 }
0x141d   :  { %v5317_v2 = vpack.c.bf16 %v5007_v27, %v5004_v33  ;;  %v5318_v38 = vpack.c.bf16 %v5058_v21, %v5055_v14 }
0x141e   :  { %v6609_v1 = vpop.f32.mrf.mxu1  ;;  %v6615_v52 = vpop.f32.mrf.mxu0 }
0x141f   :  { %5811 = vmatprep.mubr.bf16.mxu0 %v5318_v38 }
0x1420   :  { %v5106_v16 = vpop.f32.mrf.mxu1  ;;  %v5157_v44 = vpop.f32.mrf.mxu0  ;;  %5812 = vmatmul.mubr.bf16.vlgmr.msra.gmra.mxu0 %v5317_v2 }
0x1421   :  { %6512 = vmatpush3.bf16.msra.mxu0 %v6939_v60 }
0x1422   :  { %v6620_v53 = vpop.f32.mrf.mxu1  ;;  %v6626_v48 = vpop.f32.mrf.mxu0  ;;  %6513 = vmatprep.subr.bf16.mxu0 %v6941_v40 }
0x1424   :  { %v5109_v6 = vpop.f32.mrf.mxu1  ;;  %v5160_v23 = vpop.f32.mrf.mxu0 }
0x1425   :  { %v5319_v13 = vpack.c.bf16 %v5109_v6, %v5106_v16  ;;  %v5320_v49 = vpack.c.bf16 %v5160_v23, %v5157_v44  ;;  %6514 = vmatpush3.bf16.msra.mxu0 %v6943_v28 }
0x1426   :  { %v6621_v51 = vpop.f32.mrf.mxu1  ;;  %v6627_v15 = vpop.f32.mrf.mxu0  ;;  %6515 = vmatprep.subr.bf16.mxu0 %v6944_v54 }
0x1427   :  { %5852 = vmatprep.mubr.bf16.mxu1 %v5320_v49 }
0x1428   :  { %5853 = vmatmul.mubr.bf16.vlgmr.msra.gmra.mxu1 %v5319_v13  ;;  %v5208_v45 = vpop.f32.mrf.mxu1  ;;  %v5259_v59 = vpop.f32.mrf.mxu0 }
0x1429   :  { %6516 = vmatpush3.bf16.msra.mxu0 %v6945_v58  ;;  %6647 = vmatpush3.bf16.msra.mxu1 %v6946_v62 }
0x142a   :  { %6517 = vmatprep.subr.bf16.mxu0 %v6947_v10  ;;  %6648 = vmatprep.subr.bf16.mxu1 %v9725_v47  ;;  %v6632_v35 = vpop.f32.mrf.mxu1  ;;  %v6638_v63 = vpop.f32.mrf.mxu0 }
0x142b   :  { %6662 = vmatprep.mubr.msk.bf16.mxu1 %vm7739_vm1, %v9725_v47 }
0x142c   :  { %v5211_v25 = vpop.f32.mrf.mxu1  ;;  %v5262_v4 = vpop.f32.mrf.mxu0 }
0x142d   :  { %6518 = vmatpush3.bf16.msra.mxu0 %v6948_v31  ;;  %6649 = vmatpush3.bf16.msra.mxu1 %v6949_v17  ;;  %v5322_v36 = vpack.c.bf16 %v5262_v4, %v5259_v59  ;;  %v5321_v24 = vpack.c.bf16 %v5211_v25, %v5208_v45 }
0x142e   :  { %6519 = vmatprep.subr.bf16.mxu0 %v6950_v30  ;;  %6650 = vmatprep.subr.bf16.mxu1 %v9725_v47  ;;  %v6633_v22 = vpop.f32.mrf.mxu1  ;;  %v6639_v50 = vpop.f32.mrf.mxu0 }
0x142f   :  { %5893 = vmatprep.mubr.bf16.mxu0 %v5322_v36 }
0x1430   :  { %v5310_v3 = vpop.f32.mrf.mxu1 }
0x1431   :  { %6520 = vmatpush3.bf16.msra.mxu0 %v6951_v39  ;;  %6651 = vmatpush3.bf16.msra.mxu1 %v6952_v41 }
0x1432   :  { %6521 = vmatprep.subr.bf16.mxu0 %v6953_v43  ;;  %6652 = vmatprep.subr.bf16.mxu1 %v9725_v47  ;;  %v6644_v32 = vpop.f32.mrf.mxu1 }
0x1434   :  { %v5313_v42 = vpop.f32.mrf.mxu1 }
0x1435   :  { %6522 = vmatpush3.bf16.msra.mxu0 %v6954_v18  ;;  %6653 = vmatpush3.bf16.msra.mxu1 %v6955_v19  ;;  %v5323_v5 = vpack.c.bf16 %v5313_v42, %v5310_v3 }
0x1436   :  { %6523 = vmatprep.subr.bf16.mxu0 %v6956_v8  ;;  %6654 = vmatprep.subr.bf16.mxu1 %v9725_v47  ;;  %v6645_v9 = vpop.f32.mrf.mxu1 }
0x1439   :  { %6524 = vmatpush3.bf16.msra.mxu0 %v6957_v34  ;;  %6655 = vmatpush3.bf16.msra.mxu1 %v6958_v11 }
0x143a   :  { %6525 = vmatprep.subr.bf16.mxu0 %v6959_v26  ;;  %6656 = vmatprep.subr.bf16.mxu1 %v9725_v47 }
0x143d   :  { %6526 = vmatpush3.bf16.msra.mxu0 %v6960_v29  ;;  %6657 = vmatpush3.bf16.msra.mxu1 %v6961_v57 }
0x143e   :  { %6658 = vmatprep.subr.bf16.mxu1 %v9725_v47 }
0x1440   :  { %5894 = vmatmul.mubr.bf16.vlgmr.msra.gmra.mxu0 %v5321_v24 }
0x1441   :  { %6659 = vmatpush3.bf16.msra.mxu1 %v6962_v55 }
0x1442   :  { %6660 = vmatprep.subr.bf16.mxu1 %v9725_v47 }
0x1445   :  { %6661 = vmatpush3.bf16.msra.mxu1 %v6963_v46 }
0x1448   :  { %6663 = vmatmul.mubr.bf16.vlgmr.msra.gmra.mxu1 %v5323_v5 }
0x14e0   :  { %v6483_v7 = vpop.f32.mrf.mxu0 }
0x14e2   :  { %v6484_v0 = vpop.f32.mrf.mxu0 }
0x14e3   :  { %v6485_v56 = vadd.f32 %v6484_v0, %v6483_v7 }
0x14e4   :  { %v6486_v12 = vpop.f32.mrf.mxu0 }
0x14e5   :  { %v5814_v60 = vadd.f32 %v6485_v56, %v6307_v61 }
0x14e6   :  { %v6487_v33 = vpop.f32.mrf.mxu0 }
0x14e7   :  { %v6488_v1 = vadd.f32 %v6487_v33, %v6486_v12 }
0x14e8   :  { %v6505_v20 = vpop.f32.mrf.mxu1 }
0x14e9   :  { %v5817_v28 = vadd.f32 %v6488_v1, %v6307_v61 }
0x14ea   :  { %v6506_v37 = vpop.f32.mrf.mxu1 }
0x14eb   :  { %v6507_v21 = vadd.f32 %v6506_v37, %v6505_v20 }
0x14ec   :  { %v6508_v14 = vpop.f32.mrf.mxu1 }
0x14ed   :  { %v5855_v40 = vadd.f32 %v6507_v21, %v5814_v60 }
0x14ee   :  { %v6509_v2 = vpop.f32.mrf.mxu1 }
0x14ef   :  { %v6510_v16 = vadd.f32 %v6509_v2, %v6508_v14 }
0x14f1   :  { %v5858_v6 = vadd.f32 %v6510_v16, %v5817_v28 }
0x1500   :  { %v6527_v27 = vpop.f32.mrf.mxu0 }
0x1502   :  { %v6528_v38 = vpop.f32.mrf.mxu0 }
0x1503   :  { %v6529_v52 = vadd.f32 %v6528_v38, %v6527_v27 }
0x1504   :  { %v6530_v47 = vpop.f32.mrf.mxu0 }
0x1505   :  { %v5896_v48 = vadd.f32 %v6529_v52, %v5855_v40 }
0x1506   :  { %v6531_v44 = vpop.f32.mrf.mxu0 }
0x1507   :  { %v6532_v53 = vadd.f32 %v6531_v44, %v6530_v47 }
0x1508   :  { %v5936_v54 = vpop.f32.mrf.mxu1 }
0x1509   :  { %v5937_v23 = vadd.f32 %v5936_v54, %v5896_v48  ;;  %v5899_v58 = vadd.f32 %v6532_v53, %v5858_v6 }
0x150a   :  { %v6664_v13 = vpop.f32.mrf.mxu1 }
0x150b   :  { %v5943_v49 = vmax.f32 %v5937_v23, 0.0 }
0x150c   :  { %v5939_v62 = vpop.f32.mrf.mxu1 }
0x150d   :  { %5945 = vst [vmem:[%s9531_s12] sm:$0xff] %v5943_v49  ;;  %v5940_v51 = vadd.f32 %v5939_v62, %v5899_v58 }
0x150e   :  { %v6665_v15 = vpop.f32.mrf.mxu1 }
0x150f   :  { %v5944_v10 = vmax.f32 %v5940_v51, 0.0 }
0x1511   :  { %5946 = vst [vmem:[%s9531_s12 + $0x8] sm:$0xff] %v5944_v10 }
0x1512   :  { %5951 = vsyncpa [#allocation4], 1 }
0x1513   :  { %5952 = vsyncpa [#allocation6], 1 }
0x1514   :  { %5953 = vsyncpa [#allocation9], 1 }
0x1515   :  { %5954 = vsyncpa [#allocation12], 1 }

</bundles_post_ra>
